<compile_context>
chip_gen: v5e
topology: v5e:2x2
jax: 0.10.0
libtpu: 0.0.40
codegen_flags: <defaults>
</compile_context>

<pallas_src>
import functools

import jax
import jax.numpy as jnp
from jax import lax
from jax.experimental import pallas as pl
from jax.experimental.pallas import tpu as pltpu


def _vmem_limit_bytes():
    """Generation-aware scoped-VMEM limit (v7x has 64 MiB/TC vs 128 MiB)."""
    kind = ""
    try:
        kind = jax.devices()[0].device_kind.lower()
    except Exception:
        pass
    if "v7" in kind:
        return 48 * 1024 * 1024
    return 64 * 1024 * 1024


def _pick_batch_block(batch, n, vmem_limit):
    """Largest divisor of `batch` whose working set fits the VMEM budget."""
    mat_bytes = 4 * n * n
    live_mats = 5  # price-folded scratch + ~4 live (tb,n,n) loop temporaries
    # double-buffered in/out blocks (the (n,1) outputs are lane-padded to 128)
    io_bytes = 2 * 2 * (n * 128 * 4) + 2 * 2 * (8 * n * 4)
    per_batch = live_mats * mat_bytes + io_bytes
    budget = int(0.8 * vmem_limit)
    if per_batch > budget:
        # TODO(synk): row-tiled auction (stream TRxn negD slabs recomputed from
        # the (8,n) inputs) so the reference n%1024 (n up to 8192) regime runs.
        raise NotImplementedError(
            f"n={n}: (n,n) cost slab does not fit the {vmem_limit>>20} MiB "
            "VMEM budget; the row-tiled auction path is not implemented yet.")
    tb_cap = max(1, budget // per_batch)
    tb = 1
    for d in range(1, batch + 1):
        if batch % d == 0 and d <= tb_cap:
            tb = d
    return tb


def _emd_auction_kernel(eps_ref, p1_ref, p2_ref, dist_ref, assign_ref,
                        negd_ref, price_ref, done_ref, *, iters):
    # eps_ref   : SMEM f32[1]
    # p1_ref    : VMEM (TB, 8, n) f32  (coords on sublanes, rows 3..7 zero)
    # p2_ref    : VMEM (TB, 8, n) f32
    # dist_ref  : VMEM (TB, n, 1) f32  (output)
    # assign_ref: VMEM (TB, n, 1) i32  (output; also the working assignment)
    # negd_ref  : VMEM (TB, n, n) f32  scratch, holds negD - cumulative price
    # price_ref : VMEM (TB, 1, n) f32  scratch, cumulative price (epilogue only)
    # done_ref  : SMEM i32[1]          early-exit flag
    n = p1_ref.shape[-1]
    eps = eps_ref[0]

    # ---- cost matrix via one augmented-coordinate matmul ------------------
    # negD[i,j] = 2<p1_i,p2_j> - |p1_i|^2 - |p2_j|^2 with i on sublanes and j
    # on lanes, so no (1,n)<->(n,1) transposes are required anywhere.
    c1 = p1_ref[...]                                        # (TB, 8, n)
    c2 = p2_ref[...]                                        # (TB, 8, n)
    sq1 = jnp.sum(c1 * c1, axis=1, keepdims=True)           # (TB, 1, n)
    sq2 = jnp.sum(c2 * c2, axis=1, keepdims=True)           # (TB, 1, n)
    cidx = lax.broadcasted_iota(jnp.int32, (1, 8, 1), 1)    # coord slot index
    aug1 = jnp.where(
        cidx < 3, 2.0 * c1,
        jnp.where(cidx == 3, -sq1,
                  jnp.where(cidx == 4, jnp.float32(1.0), jnp.float32(0.0))))
    aug2 = jnp.where(
        cidx < 3, c2,
        jnp.where(cidx == 3, jnp.float32(1.0),
                  jnp.where(cidx == 4, -sq2, jnp.float32(0.0))))
    negd = jnp.einsum("bci,bcj->bij", aug1, aug2,
                      preferred_element_type=jnp.float32)   # (TB, n, n)
    # clamp against f32 cancellation making distances slightly negative
    negd_ref[...] = jnp.minimum(negd, 0.0)

    # ---- init --------------------------------------------------------------
    price_ref[...] = jnp.zeros_like(price_ref)
    assign_ref[...] = jnp.full_like(assign_ref, -1)
    done_ref[0] = 0

    col_j = lax.broadcasted_iota(jnp.int32, (1, 1, n), 2)   # item index j
    row_i = lax.broadcasted_iota(jnp.int32, (1, n, 1), 1)   # bidder index i
    neg_big = jnp.float32(-1e30)
    pos_big = jnp.float32(1e30)

    @pl.loop(0, iters)
    def _iteration(_):
        # Skip all heavy work once the auction has converged (early exit).
        @pl.when(done_ref[0] == 0)
        def _run():
            # price already folded: scratch holds negD - cumulative price.
            value = negd_ref[...]                                   # (TB,n,n)

            # top-1 / top-2 value per bidder, best item j1 (lowest-index tie).
            top1 = jnp.max(value, axis=2, keepdims=True)            # (TB,n,1)
            j1 = jnp.min(jnp.where(value >= top1, col_j, n),
                         axis=2, keepdims=True)                     # (TB,n,1)
            bid_mask = col_j == j1                                  # (TB,n,n)
            top2 = jnp.max(jnp.where(bid_mask, neg_big, value),
                           axis=2, keepdims=True)                   # (TB,n,1)

            # only unassigned bidders bid (folded into the (n,1) bid value).
            assign_cur = assign_ref[...]                            # (TB,n,1)
            bid_val = jnp.where(assign_cur < 0, top1 - top2 + eps,
                                jnp.float32(-1.0))                  # (TB,n,1)
            bids = jnp.where(bid_mask, bid_val, jnp.float32(-1.0))  # (TB,n,n)

            col_max = jnp.max(bids, axis=1, keepdims=True)          # (TB,1,n)
            # legal bids are >= eps >= 0, sentinel is -1 (handles eps == 0).
            has_bid = col_max >= 0.0                                # (TB,1,n)

            # winner per item = lowest-index bidder achieving the max bid
            # (CUDA breaks ties via atomic races; here deterministic).
            eff_max = jnp.where(has_bid, col_max, pos_big)
            winner_i = jnp.min(jnp.where(bids >= eff_max, row_i, n),
                               axis=1, keepdims=True)               # (TB,1,n)
            bid_item = jnp.where(has_bid, col_j, -2)                # (TB,1,n)

            # merged membership tests: bit0 = "row i won its bid item",
            # bit1 = "the item row i owns received a bid".  The two are
            # mutually exclusive per row (only unassigned rows bid), so a
            # single max-reduction recovers both flags.
            packed = (jnp.where(row_i == winner_i, 1, 0)
                      + jnp.where(assign_cur == bid_item, 2, 0))    # (TB,n,n)
            flags = jnp.max(packed, axis=2, keepdims=True)          # (TB,n,1)
            new_assign = jnp.where(
                flags == 1, j1,
                jnp.where(flags == 2, jnp.int32(-1), assign_cur))
            assign_ref[...] = new_assign

            # fold this iteration's price increase into the cost scratch.
            price_delta = jnp.where(has_bid, col_max, 0.0)          # (TB,1,n)
            price_ref[...] = price_ref[...] + price_delta
            negd_ref[...] = value - price_delta

            # converged once nothing is unassigned any more.
            min_assign = jnp.min(new_assign)
            done_ref[0] = jnp.where(min_assign < 0, 0, 1).astype(jnp.int32)

    # ---- epilogue: dist[i] = D[i, assignment[i]] (0 if unassigned) ---------
    stored = negd_ref[...]            # negD - total price
    price = price_ref[...]            # total price
    a_cur = assign_ref[...]           # (TB, n, 1)
    sel = col_j == a_cur                                            # (TB,n,n)
    d_match = -jnp.sum(jnp.where(sel, stored, 0.0), axis=2, keepdims=True)
    p_match = jnp.sum(jnp.where(sel, price, 0.0), axis=2, keepdims=True)
    dist_ref[...] = jnp.maximum(d_match - p_match, 0.0)


def emd_module_forward(p1, p2, eps, iters):
    """Pallas equivalent of emdModule()(p1, p2, eps, iters).

    p1, p2: (B, n, 3) float32. Returns (dist (B, n) f32, assignment (B, n) i32).
    """
    B, n, c = p1.shape
    assert c == 3 and p2.shape == p1.shape
    assert n % 128 == 0, "n must be lane-aligned for this kernel"

    vmem_limit = _vmem_limit_bytes()
    tb = _pick_batch_block(B, n, vmem_limit)

    # layout: (B, n, 3) -> (B, 3, n) -> zero-pad coords to (B, 8, n) so the
    # point index lives on lanes and the coord axis is a full sublane group.
    p1_t = jnp.transpose(p1, (0, 2, 1)).astype(jnp.float32)
    p2_t = jnp.transpose(p2, (0, 2, 1)).astype(jnp.float32)
    pad = ((0, 0), (0, 8 - c), (0, 0))
    p1_p = jnp.pad(p1_t, pad)
    p2_p = jnp.pad(p2_t, pad)
    eps_arr = jnp.asarray([eps], dtype=jnp.float32)

    kernel = functools.partial(_emd_auction_kernel, iters=int(iters))
    dist3, assign3 = pl.pallas_call(
        kernel,
        out_shape=(jax.ShapeDtypeStruct((B, n, 1), jnp.float32),
                   jax.ShapeDtypeStruct((B, n, 1), jnp.int32)),
        grid=(B // tb,),
        in_specs=[
            pl.BlockSpec(memory_space=pltpu.MemorySpace.SMEM),   # eps scalar
            pl.BlockSpec((tb, 8, n), lambda b: (b, 0, 0)),       # p1 (padded)
            pl.BlockSpec((tb, 8, n), lambda b: (b, 0, 0)),       # p2 (padded)
        ],
        out_specs=(
            pl.BlockSpec((tb, n, 1), lambda b: (b, 0, 0)),       # dist
            pl.BlockSpec((tb, n, 1), lambda b: (b, 0, 0)),       # assignment
        ),
        scratch_shapes=[
            pltpu.VMEM((tb, n, n), jnp.float32),   # negD - cumulative price
            pltpu.VMEM((tb, 1, n), jnp.float32),   # cumulative price
            pltpu.SMEM((1,), jnp.int32),           # early-exit flag
        ],
        compiler_params=pltpu.CompilerParams(
            dimension_semantics=("parallel",),
            vmem_limit_bytes=vmem_limit),
    )(eps_arr, p1_p, p2_p)

    # trivial squeeze (relayout) handled by XLA outside the kernel
    return dist3[:, :, 0], assign3[:, :, 0]


if __name__ == "__main__":
    key = jax.random.PRNGKey(0)
    k1, k2 = jax.random.split(key)
    B, n = 2, 128
    p1 = jax.random.uniform(k1, (B, n, 3), dtype=jnp.float32)
    p2 = jax.random.uniform(k2, (B, n, 3), dtype=jnp.float32)

    dist, assignment = emd_module_forward(p1, p2, eps=0.05, iters=50)
    jax.block_until_ready((dist, assignment))

    assert dist.shape == (B, n) and dist.dtype == jnp.float32
    assert assignment.shape == (B, n) and assignment.dtype == jnp.int32
    assert bool(jnp.all(jnp.isfinite(dist)))
    assert bool(jnp.all(assignment < n))

    print("KERNEL_OK")
</pallas_src>

<mosaic_0001>
module attributes {stable_mosaic.version = 11 : i64} {
  func.func @_emd_auction_kernel(%arg0: i32, %arg1: memref<1xf32, #tpu.memory_space<smem>>, %arg2: memref<2x8x128xf32, #tpu.memory_space<vmem>>, %arg3: memref<2x8x128xf32, #tpu.memory_space<vmem>>, %arg4: memref<2x128x1xf32, #tpu.memory_space<vmem>>, %arg5: memref<2x128x1xi32, #tpu.memory_space<vmem>>, %arg6: memref<2x128x128xf32, #tpu.memory_space<vmem>>, %arg7: memref<2x1x128xf32, #tpu.memory_space<vmem>>, %arg8: memref<1xi32, #tpu.memory_space<smem>>) attributes {dimension_semantics = [#tpu.dimension_semantics<parallel>], iteration_bounds = array<i64: 1>, scalar_prefetch = 0 : i64, scratch_operands = 3 : i64, tpu.core_type = #tpu.core_type<tc>, window_params = [{transform_indices = @transform_0, window_bounds = array<i64: 1>}, {transform_indices = @transform_1, window_bounds = array<i64: 2, 8, 128>}, {transform_indices = @transform_2, window_bounds = array<i64: 2, 8, 128>}, {transform_indices = @transform_3, window_bounds = array<i64: 2, 128, 1>}, {transform_indices = @transform_4, window_bounds = array<i64: 2, 128, 1>}]} {
    %c0 = arith.constant 0 : index
    %0 = memref.load %arg1[%c0] : memref<1xf32, #tpu.memory_space<smem>>
    %c0_0 = arith.constant 0 : index
    %c0_1 = arith.constant 0 : index
    %c0_2 = arith.constant 0 : index
    %1 = vector.load %arg2[%c0_0, %c0_1, %c0_2] : memref<2x8x128xf32, #tpu.memory_space<vmem>>, vector<2x8x128xf32>
    %c0_3 = arith.constant 0 : index
    %c0_4 = arith.constant 0 : index
    %c0_5 = arith.constant 0 : index
    %2 = vector.load %arg3[%c0_3, %c0_4, %c0_5] : memref<2x8x128xf32, #tpu.memory_space<vmem>>, vector<2x8x128xf32>
    %3 = arith.mulf %1, %1 : vector<2x8x128xf32>
    %cst = arith.constant dense<0.000000e+00> : vector<2x128xf32>
    %4 = vector.multi_reduction <add>, %3, %cst [1] : vector<2x8x128xf32> to vector<2x128xf32>
    %5 = vector.shape_cast %4 : vector<2x128xf32> to vector<2x1x128xf32>
    %6 = arith.mulf %2, %2 : vector<2x8x128xf32>
    %cst_6 = arith.constant dense<0.000000e+00> : vector<2x128xf32>
    %7 = vector.multi_reduction <add>, %6, %cst_6 [1] : vector<2x8x128xf32> to vector<2x128xf32>
    %8 = vector.shape_cast %7 : vector<2x128xf32> to vector<2x1x128xf32>
    %9 = tpu.iota {dimensions = array<i32: 1>} : vector<1x8x1xi32>
    %c3_i32 = arith.constant 3 : i32
    %10 = vector.broadcast %c3_i32 : i32 to vector<1x8x1xi32>
    %11 = arith.cmpi slt, %9, %10 : vector<1x8x1xi32>
    %cst_7 = arith.constant 2.000000e+00 : f32
    %12 = vector.broadcast %cst_7 : f32 to vector<2x8x128xf32>
    %13 = arith.mulf %12, %1 : vector<2x8x128xf32>
    %c3_i32_8 = arith.constant 3 : i32
    %14 = vector.broadcast %c3_i32_8 : i32 to vector<1x8x1xi32>
    %15 = arith.cmpi eq, %9, %14 : vector<1x8x1xi32>
    %cst_9 = arith.constant 0.000000e+00 : f32
    %16 = vector.broadcast %cst_9 : f32 to vector<2x1x128xf32>
    %17 = arith.subf %16, %5 : vector<2x1x128xf32>
    %c4_i32 = arith.constant 4 : i32
    %18 = vector.broadcast %c4_i32 : i32 to vector<1x8x1xi32>
    %19 = arith.cmpi eq, %9, %18 : vector<1x8x1xi32>
    %cst_10 = arith.constant 1.000000e+00 : f32
    %cst_11 = arith.constant 0.000000e+00 : f32
    %20 = vector.broadcast %cst_10 : f32 to vector<1x8x1xf32>
    %21 = vector.broadcast %cst_11 : f32 to vector<1x8x1xf32>
    %22 = arith.select %19, %20, %21 : vector<1x8x1xi1>, vector<1x8x1xf32>
    %23 = vector.shape_cast %15 : vector<1x8x1xi1> to vector<1x8x1xi1>
    %24 = vector.broadcast %23 : vector<1x8x1xi1> to vector<2x8x128xi1>
    %25 = vector.shape_cast %17 : vector<2x1x128xf32> to vector<2x1x128xf32>
    %26 = vector.broadcast %25 : vector<2x1x128xf32> to vector<2x8x128xf32>
    %27 = vector.shape_cast %22 : vector<1x8x1xf32> to vector<1x8x1xf32>
    %28 = vector.broadcast %27 : vector<1x8x1xf32> to vector<2x8x128xf32>
    %29 = arith.select %24, %26, %28 : vector<2x8x128xi1>, vector<2x8x128xf32>
    %30 = vector.shape_cast %11 : vector<1x8x1xi1> to vector<1x8x1xi1>
    %31 = vector.broadcast %30 : vector<1x8x1xi1> to vector<2x8x128xi1>
    %32 = arith.select %31, %13, %29 : vector<2x8x128xi1>, vector<2x8x128xf32>
    %c3_i32_12 = arith.constant 3 : i32
    %33 = vector.broadcast %c3_i32_12 : i32 to vector<1x8x1xi32>
    %34 = arith.cmpi slt, %9, %33 : vector<1x8x1xi32>
    %c3_i32_13 = arith.constant 3 : i32
    %35 = vector.broadcast %c3_i32_13 : i32 to vector<1x8x1xi32>
    %36 = arith.cmpi eq, %9, %35 : vector<1x8x1xi32>
    %c4_i32_14 = arith.constant 4 : i32
    %37 = vector.broadcast %c4_i32_14 : i32 to vector<1x8x1xi32>
    %38 = arith.cmpi eq, %9, %37 : vector<1x8x1xi32>
    %cst_15 = arith.constant 0.000000e+00 : f32
    %39 = vector.broadcast %cst_15 : f32 to vector<2x1x128xf32>
    %40 = arith.subf %39, %8 : vector<2x1x128xf32>
    %cst_16 = arith.constant 0.000000e+00 : f32
    %41 = vector.shape_cast %38 : vector<1x8x1xi1> to vector<1x8x1xi1>
    %42 = vector.broadcast %41 : vector<1x8x1xi1> to vector<2x8x128xi1>
    %43 = vector.shape_cast %40 : vector<2x1x128xf32> to vector<2x1x128xf32>
    %44 = vector.broadcast %43 : vector<2x1x128xf32> to vector<2x8x128xf32>
    %45 = vector.broadcast %cst_16 : f32 to vector<2x8x128xf32>
    %46 = arith.select %42, %44, %45 : vector<2x8x128xi1>, vector<2x8x128xf32>
    %cst_17 = arith.constant 1.000000e+00 : f32
    %47 = vector.shape_cast %36 : vector<1x8x1xi1> to vector<1x8x1xi1>
    %48 = vector.broadcast %47 : vector<1x8x1xi1> to vector<2x8x128xi1>
    %49 = vector.broadcast %cst_17 : f32 to vector<2x8x128xf32>
    %50 = arith.select %48, %49, %46 : vector<2x8x128xi1>, vector<2x8x128xf32>
    %51 = vector.shape_cast %34 : vector<1x8x1xi1> to vector<1x8x1xi1>
    %52 = vector.broadcast %51 : vector<1x8x1xi1> to vector<2x8x128xi1>
    %53 = arith.select %52, %2, %50 : vector<2x8x128xi1>, vector<2x8x128xf32>
    "tpu.trace_start"() <{level = 10 : i32, message = "bci,bcj->bij"}> : () -> ()
    %cst_18 = arith.constant dense<0.000000e+00> : vector<2x128x128xf32>
    %54 = tpu.matmul %32, %53, %cst_18 {dimension_numbers = #tpu.dot_dimension_numbers<[1], [1], [2], [2], [0, 0, 0, 2, 1, 2], [0], [0]>} : vector<2x8x128xf32>, vector<2x8x128xf32>, vector<2x128x128xf32> -> vector<2x128x128xf32>
    "tpu.trace_stop"() : () -> ()
    %cst_19 = arith.constant 0.000000e+00 : f32
    %55 = vector.broadcast %cst_19 : f32 to vector<2x128x128xf32>
    %56 = arith.minimumf %54, %55 : vector<2x128x128xf32>
    %c0_20 = arith.constant 0 : index
    %c0_21 = arith.constant 0 : index
    %c0_22 = arith.constant 0 : index
    %57 = vector.load %arg6[%c0_20, %c0_21, %c0_22] : memref<2x128x128xf32, #tpu.memory_space<vmem>>, vector<2x128x128xf32>
    tpu.vector_store %arg6[%c0_20, %c0_21, %c0_22], %56 {strides = array<i32>} : memref<2x128x128xf32, #tpu.memory_space<vmem>>, vector<2x128x128xf32>,
    %cst_23 = arith.constant 0.000000e+00 : f32
    %58 = vector.broadcast %cst_23 : f32 to vector<2x1x128xf32>
    %c0_24 = arith.constant 0 : index
    %c0_25 = arith.constant 0 : index
    %c0_26 = arith.constant 0 : index
    %59 = vector.load %arg7[%c0_24, %c0_25, %c0_26] : memref<2x1x128xf32, #tpu.memory_space<vmem>>, vector<2x1x128xf32>
    tpu.vector_store %arg7[%c0_24, %c0_25, %c0_26], %58 {strides = array<i32>} : memref<2x1x128xf32, #tpu.memory_space<vmem>>, vector<2x1x128xf32>,
    %c-1_i32 = arith.constant -1 : i32
    %60 = vector.broadcast %c-1_i32 : i32 to vector<2x128x1xi32>
    %c0_27 = arith.constant 0 : index
    %c0_28 = arith.constant 0 : index
    %c0_29 = arith.constant 0 : index
    %61 = vector.load %arg5[%c0_27, %c0_28, %c0_29] : memref<2x128x1xi32, #tpu.memory_space<vmem>>, vector<2x128x1xi32>
    tpu.vector_store %arg5[%c0_27, %c0_28, %c0_29], %60 {strides = array<i32>} : memref<2x128x1xi32, #tpu.memory_space<vmem>>, vector<2x128x1xi32>,
    %c0_i32 = arith.constant 0 : i32
    %c0_30 = arith.constant 0 : index
    %62 = memref.load %arg8[%c0_30] : memref<1xi32, #tpu.memory_space<smem>>
    memref.store %c0_i32, %arg8[%c0_30] : memref<1xi32, #tpu.memory_space<smem>>
    %63 = tpu.iota {dimensions = array<i32: 2>} : vector<1x1x128xi32>
    %64 = tpu.iota {dimensions = array<i32: 1>} : vector<1x128x1xi32>
    %cst_31 = arith.constant -1.000000e+30 : f32
    %cst_32 = arith.constant 1.000000e+30 : f32
    %c0_i32_33 = arith.constant 0 : i32
    %c50_i32 = arith.constant 50 : i32
    %65 = arith.addi %c0_i32_33, %c50_i32 : i32
    %c1_i32 = arith.constant 1 : i32
    scf.for %arg9 = %c0_i32_33 to %65 step %c1_i32  : i32 {
      %c0_52 = arith.constant 0 : index
      %88 = memref.load %arg8[%c0_52] : memref<1xi32, #tpu.memory_space<smem>>
      %c0_i32_53 = arith.constant 0 : i32
      %89 = arith.cmpi eq, %88, %c0_i32_53 : i32
      %90 = arith.extui %89 : i1 to i32
      %c0_i32_54 = arith.constant 0 : i32
      %91 = arith.cmpi ne, %90, %c0_i32_54 : i32
      scf.if %91 {
        %c0_55 = arith.constant 0 : index
        %c0_56 = arith.constant 0 : index
        %c0_57 = arith.constant 0 : index
        %92 = vector.load %arg6[%c0_55, %c0_56, %c0_57] : memref<2x128x128xf32, #tpu.memory_space<vmem>>, vector<2x128x128xf32>
        %cst_58 = arith.constant dense<0xFF800000> : vector<2x128xf32>
        %93 = vector.multi_reduction <maximumf>, %92, %cst_58 [2] : vector<2x128x128xf32> to vector<2x128xf32>
        %94 = vector.shape_cast %93 : vector<2x128xf32> to vector<2x128x1xf32>
        %95 = vector.broadcast %94 : vector<2x128x1xf32> to vector<2x128x128xf32>
        %96 = arith.cmpf oge, %92, %95 : vector<2x128x128xf32>
        %c128_i32 = arith.constant 128 : i32
        %97 = vector.shape_cast %63 : vector<1x1x128xi32> to vector<1x1x128xi32>
        %98 = vector.broadcast %97 : vector<1x1x128xi32> to vector<2x128x128xi32>
        %99 = vector.broadcast %c128_i32 : i32 to vector<2x128x128xi32>
        %100 = arith.select %96, %98, %99 : vector<2x128x128xi1>, vector<2x128x128xi32>
        %cst_59 = arith.constant dense<2147483647> : vector<2x128xi32>
        %101 = vector.multi_reduction <minsi>, %100, %cst_59 [2] : vector<2x128x128xi32> to vector<2x128xi32>
        %102 = vector.shape_cast %101 : vector<2x128xi32> to vector<2x128x1xi32>
        %103 = vector.broadcast %63 : vector<1x1x128xi32> to vector<2x128x128xi32>
        %104 = vector.broadcast %102 : vector<2x128x1xi32> to vector<2x128x128xi32>
        %105 = arith.cmpi eq, %103, %104 : vector<2x128x128xi32>
        %106 = vector.broadcast %cst_31 : f32 to vector<2x128x128xf32>
        %107 = arith.select %105, %106, %92 : vector<2x128x128xi1>, vector<2x128x128xf32>
        %cst_60 = arith.constant dense<0xFF800000> : vector<2x128xf32>
        %108 = vector.multi_reduction <maximumf>, %107, %cst_60 [2] : vector<2x128x128xf32> to vector<2x128xf32>
        %109 = vector.shape_cast %108 : vector<2x128xf32> to vector<2x128x1xf32>
        %c0_61 = arith.constant 0 : index
        %c0_62 = arith.constant 0 : index
        %c0_63 = arith.constant 0 : index
        %110 = vector.load %arg5[%c0_61, %c0_62, %c0_63] : memref<2x128x1xi32, #tpu.memory_space<vmem>>, vector<2x128x1xi32>
        %c0_i32_64 = arith.constant 0 : i32
        %111 = vector.broadcast %c0_i32_64 : i32 to vector<2x128x1xi32>
        %112 = arith.cmpi slt, %110, %111 : vector<2x128x1xi32>
        %113 = arith.subf %94, %109 : vector<2x128x1xf32>
        %114 = vector.broadcast %0 : f32 to vector<2x128x1xf32>
        %115 = arith.addf %113, %114 : vector<2x128x1xf32>
        %cst_65 = arith.constant -1.000000e+00 : f32
        %116 = vector.broadcast %cst_65 : f32 to vector<2x128x1xf32>
        %117 = arith.select %112, %115, %116 : vector<2x128x1xi1>, vector<2x128x1xf32>
        %cst_66 = arith.constant -1.000000e+00 : f32
        %118 = vector.shape_cast %117 : vector<2x128x1xf32> to vector<2x128x1xf32>
        %119 = vector.broadcast %118 : vector<2x128x1xf32> to vector<2x128x128xf32>
        %120 = vector.broadcast %cst_66 : f32 to vector<2x128x128xf32>
        %121 = arith.select %105, %119, %120 : vector<2x128x128xi1>, vector<2x128x128xf32>
        %cst_67 = arith.constant dense<0xFF800000> : vector<2x128xf32>
        %122 = vector.multi_reduction <maximumf>, %121, %cst_67 [1] : vector<2x128x128xf32> to vector<2x128xf32>
        %123 = vector.shape_cast %122 : vector<2x128xf32> to vector<2x1x128xf32>
        %cst_68 = arith.constant 0.000000e+00 : f32
        %124 = vector.broadcast %cst_68 : f32 to vector<2x1x128xf32>
        %125 = arith.cmpf oge, %123, %124 : vector<2x1x128xf32>
        %126 = vector.broadcast %cst_32 : f32 to vector<2x1x128xf32>
        %127 = arith.select %125, %123, %126 : vector<2x1x128xi1>, vector<2x1x128xf32>
        %128 = vector.broadcast %127 : vector<2x1x128xf32> to vector<2x128x128xf32>
        %129 = arith.cmpf oge, %121, %128 : vector<2x128x128xf32>
        %c128_i32_69 = arith.constant 128 : i32
        %130 = vector.shape_cast %64 : vector<1x128x1xi32> to vector<1x128x1xi32>
        %131 = vector.broadcast %130 : vector<1x128x1xi32> to vector<2x128x128xi32>
        %132 = vector.broadcast %c128_i32_69 : i32 to vector<2x128x128xi32>
        %133 = arith.select %129, %131, %132 : vector<2x128x128xi1>, vector<2x128x128xi32>
        %cst_70 = arith.constant dense<2147483647> : vector<2x128xi32>
        %134 = vector.multi_reduction <minsi>, %133, %cst_70 [1] : vector<2x128x128xi32> to vector<2x128xi32>
        %135 = vector.shape_cast %134 : vector<2x128xi32> to vector<2x1x128xi32>
        %c-2_i32 = arith.constant -2 : i32
        %136 = vector.shape_cast %63 : vector<1x1x128xi32> to vector<1x1x128xi32>
        %137 = vector.broadcast %136 : vector<1x1x128xi32> to vector<2x1x128xi32>
        %138 = vector.broadcast %c-2_i32 : i32 to vector<2x1x128xi32>
        %139 = arith.select %125, %137, %138 : vector<2x1x128xi1>, vector<2x1x128xi32>
        %140 = vector.broadcast %64 : vector<1x128x1xi32> to vector<2x128x128xi32>
        %141 = vector.broadcast %135 : vector<2x1x128xi32> to vector<2x128x128xi32>
        %142 = arith.cmpi eq, %140, %141 : vector<2x128x128xi32>
        %c1_i32_71 = arith.constant 1 : i32
        %c0_i32_72 = arith.constant 0 : i32
        %143 = vector.broadcast %c1_i32_71 : i32 to vector<2x128x128xi32>
        %144 = vector.broadcast %c0_i32_72 : i32 to vector<2x128x128xi32>
        %145 = arith.select %142, %143, %144 : vector<2x128x128xi1>, vector<2x128x128xi32>
        %146 = vector.broadcast %110 : vector<2x128x1xi32> to vector<2x128x128xi32>
        %147 = vector.broadcast %139 : vector<2x1x128xi32> to vector<2x128x128xi32>
        %148 = arith.cmpi eq, %146, %147 : vector<2x128x128xi32>
        %c2_i32 = arith.constant 2 : i32
        %c0_i32_73 = arith.constant 0 : i32
        %149 = vector.broadcast %c2_i32 : i32 to vector<2x128x128xi32>
        %150 = vector.broadcast %c0_i32_73 : i32 to vector<2x128x128xi32>
        %151 = arith.select %148, %149, %150 : vector<2x128x128xi1>, vector<2x128x128xi32>
        %152 = arith.addi %145, %151 : vector<2x128x128xi32>
        %cst_74 = arith.constant dense<-2147483648> : vector<2x128xi32>
        %153 = vector.multi_reduction <maxsi>, %152, %cst_74 [2] : vector<2x128x128xi32> to vector<2x128xi32>
        %154 = vector.shape_cast %153 : vector<2x128xi32> to vector<2x128x1xi32>
        %c1_i32_75 = arith.constant 1 : i32
        %155 = vector.broadcast %c1_i32_75 : i32 to vector<2x128x1xi32>
        %156 = arith.cmpi eq, %154, %155 : vector<2x128x1xi32>
        %c2_i32_76 = arith.constant 2 : i32
        %157 = vector.broadcast %c2_i32_76 : i32 to vector<2x128x1xi32>
        %158 = arith.cmpi eq, %154, %157 : vector<2x128x1xi32>
        %c-1_i32_77 = arith.constant -1 : i32
        %159 = vector.broadcast %c-1_i32_77 : i32 to vector<2x128x1xi32>
        %160 = arith.select %158, %159, %110 : vector<2x128x1xi1>, vector<2x128x1xi32>
        %161 = arith.select %156, %102, %160 : vector<2x128x1xi1>, vector<2x128x1xi32>
        %c0_78 = arith.constant 0 : index
        %c0_79 = arith.constant 0 : index
        %c0_80 = arith.constant 0 : index
        %162 = vector.load %arg5[%c0_78, %c0_79, %c0_80] : memref<2x128x1xi32, #tpu.memory_space<vmem>>, vector<2x128x1xi32>
        tpu.vector_store %arg5[%c0_78, %c0_79, %c0_80], %161 {strides = array<i32>} : memref<2x128x1xi32, #tpu.memory_space<vmem>>, vector<2x128x1xi32>,
        %cst_81 = arith.constant 0.000000e+00 : f32
        %163 = vector.broadcast %cst_81 : f32 to vector<2x1x128xf32>
        %164 = arith.select %125, %123, %163 : vector<2x1x128xi1>, vector<2x1x128xf32>
        %c0_82 = arith.constant 0 : index
        %c0_83 = arith.constant 0 : index
        %c0_84 = arith.constant 0 : index
        %165 = vector.load %arg7[%c0_82, %c0_83, %c0_84] : memref<2x1x128xf32, #tpu.memory_space<vmem>>, vector<2x1x128xf32>
        %166 = arith.addf %165, %164 : vector<2x1x128xf32>
        %c0_85 = arith.constant 0 : index
        %c0_86 = arith.constant 0 : index
        %c0_87 = arith.constant 0 : index
        %167 = vector.load %arg7[%c0_85, %c0_86, %c0_87] : memref<2x1x128xf32, #tpu.memory_space<vmem>>, vector<2x1x128xf32>
        tpu.vector_store %arg7[%c0_85, %c0_86, %c0_87], %166 {strides = array<i32>} : memref<2x1x128xf32, #tpu.memory_space<vmem>>, vector<2x1x128xf32>,
        %168 = vector.broadcast %164 : vector<2x1x128xf32> to vector<2x128x128xf32>
        %169 = arith.subf %92, %168 : vector<2x128x128xf32>
        %c0_88 = arith.constant 0 : index
        %c0_89 = arith.constant 0 : index
        %c0_90 = arith.constant 0 : index
        %170 = vector.load %arg6[%c0_88, %c0_89, %c0_90] : memref<2x128x128xf32, #tpu.memory_space<vmem>>, vector<2x128x128xf32>
        tpu.vector_store %arg6[%c0_88, %c0_89, %c0_90], %169 {strides = array<i32>} : memref<2x128x128xf32, #tpu.memory_space<vmem>>, vector<2x128x128xf32>,
        %171 = vector.shape_cast %161 : vector<2x128x1xi32> to vector<1x2x128x1xi32>
        %cst_91 = arith.constant dense<2147483647> : vector<1xi32>
        %172 = vector.multi_reduction <minsi>, %171, %cst_91 [1, 2, 3] : vector<1x2x128x1xi32> to vector<1xi32>
        %173 = vector.shape_cast %172 : vector<1xi32> to vector<1x1x1x1xi32>
        %174 = vector.extract %173[0, 0, 0, 0] : i32 from vector<1x1x1x1xi32>
        %c0_i32_92 = arith.constant 0 : i32
        %175 = arith.cmpi slt, %174, %c0_i32_92 : i32
        %c0_i32_93 = arith.constant 0 : i32
        %c1_i32_94 = arith.constant 1 : i32
        %176 = arith.select %175, %c0_i32_93, %c1_i32_94 : i32
        %c0_95 = arith.constant 0 : index
        %177 = memref.load %arg8[%c0_95] : memref<1xi32, #tpu.memory_space<smem>>
        memref.store %176, %arg8[%c0_95] : memref<1xi32, #tpu.memory_space<smem>>
      } else {
      }
    }
    %c0_34 = arith.constant 0 : index
    %c0_35 = arith.constant 0 : index
    %c0_36 = arith.constant 0 : index
    %66 = vector.load %arg6[%c0_34, %c0_35, %c0_36] : memref<2x128x128xf32, #tpu.memory_space<vmem>>, vector<2x128x128xf32>
    %c0_37 = arith.constant 0 : index
    %c0_38 = arith.constant 0 : index
    %c0_39 = arith.constant 0 : index
    %67 = vector.load %arg7[%c0_37, %c0_38, %c0_39] : memref<2x1x128xf32, #tpu.memory_space<vmem>>, vector<2x1x128xf32>
    %c0_40 = arith.constant 0 : index
    %c0_41 = arith.constant 0 : index
    %c0_42 = arith.constant 0 : index
    %68 = vector.load %arg5[%c0_40, %c0_41, %c0_42] : memref<2x128x1xi32, #tpu.memory_space<vmem>>, vector<2x128x1xi32>
    %69 = vector.broadcast %63 : vector<1x1x128xi32> to vector<2x128x128xi32>
    %70 = vector.broadcast %68 : vector<2x128x1xi32> to vector<2x128x128xi32>
    %71 = arith.cmpi eq, %69, %70 : vector<2x128x128xi32>
    %cst_43 = arith.constant 0.000000e+00 : f32
    %72 = vector.broadcast %cst_43 : f32 to vector<2x128x128xf32>
    %73 = arith.select %71, %66, %72 : vector<2x128x128xi1>, vector<2x128x128xf32>
    %cst_44 = arith.constant dense<0.000000e+00> : vector<2x128xf32>
    %74 = vector.multi_reduction <add>, %73, %cst_44 [2] : vector<2x128x128xf32> to vector<2x128xf32>
    %75 = vector.shape_cast %74 : vector<2x128xf32> to vector<2x128x1xf32>
    %cst_45 = arith.constant 0.000000e+00 : f32
    %76 = vector.broadcast %cst_45 : f32 to vector<2x128x1xf32>
    %77 = arith.subf %76, %75 : vector<2x128x1xf32>
    %cst_46 = arith.constant 0.000000e+00 : f32
    %78 = vector.shape_cast %67 : vector<2x1x128xf32> to vector<2x1x128xf32>
    %79 = vector.broadcast %78 : vector<2x1x128xf32> to vector<2x128x128xf32>
    %80 = vector.broadcast %cst_46 : f32 to vector<2x128x128xf32>
    %81 = arith.select %71, %79, %80 : vector<2x128x128xi1>, vector<2x128x128xf32>
    %cst_47 = arith.constant dense<0.000000e+00> : vector<2x128xf32>
    %82 = vector.multi_reduction <add>, %81, %cst_47 [2] : vector<2x128x128xf32> to vector<2x128xf32>
    %83 = vector.shape_cast %82 : vector<2x128xf32> to vector<2x128x1xf32>
    %84 = arith.subf %77, %83 : vector<2x128x1xf32>
    %cst_48 = arith.constant 0.000000e+00 : f32
    %85 = vector.broadcast %cst_48 : f32 to vector<2x128x1xf32>
    %86 = arith.maximumf %84, %85 : vector<2x128x1xf32>
    %c0_49 = arith.constant 0 : index
    %c0_50 = arith.constant 0 : index
    %c0_51 = arith.constant 0 : index
    %87 = vector.load %arg4[%c0_49, %c0_50, %c0_51] : memref<2x128x1xf32, #tpu.memory_space<vmem>>, vector<2x128x1xf32>
    tpu.vector_store %arg4[%c0_49, %c0_50, %c0_51], %86 {strides = array<i32>} : memref<2x128x1xf32, #tpu.memory_space<vmem>>, vector<2x128x1xf32>,
    return
  }
  func.func @transform_0(%arg0: i32) -> i32 {
    %c0_i32 = arith.constant 0 : i32
    %c0_i32_0 = arith.constant 0 : i32
    return %c0_i32 : i32
  }
  func.func @transform_1(%arg0: i32) -> (i32, i32, i32) {
    %c0_i32 = arith.constant 0 : i32
    %c0_i32_0 = arith.constant 0 : i32
    %c0_i32_1 = arith.constant 0 : i32
    return %arg0, %c0_i32, %c0_i32_0 : i32, i32, i32
  }
  func.func @transform_2(%arg0: i32) -> (i32, i32, i32) {
    %c0_i32 = arith.constant 0 : i32
    %c0_i32_0 = arith.constant 0 : i32
    %c0_i32_1 = arith.constant 0 : i32
    return %arg0, %c0_i32, %c0_i32_0 : i32, i32, i32
  }
  func.func @transform_3(%arg0: i32) -> (i32, i32, i32) {
    %c0_i32 = arith.constant 0 : i32
    %c0_i32_0 = arith.constant 0 : i32
    %c0_i32_1 = arith.constant 0 : i32
    return %arg0, %c0_i32, %c0_i32_0 : i32, i32, i32
  }
  func.func @transform_4(%arg0: i32) -> (i32, i32, i32) {
    %c0_i32 = arith.constant 0 : i32
    %c0_i32_0 = arith.constant 0 : i32
    %c0_i32_1 = arith.constant 0 : i32
    return %arg0, %c0_i32, %c0_i32_0 : i32, i32, i32
  }
}

</mosaic_0001>

<bundles_post_ra>
// kernel: tpu_custom_call.1
= control target key start
LH: loop header
LB: loop body
LE: loop exit
PB: predicated region body
PF: predicated region fallthrough
CT: control target
= control target key end

     0   :  { %11 = vsyncpa [#allocation7], 0  ;;  %s7165_s0 = inlined_call_operand.<no memory space> [shape: f32[1], index: 0, kind: input, shape index: {}]   ;;  %s7166_s1 = inlined_call_operand.hbm [shape: f32[2,8,128], index: 1, kind: input, shape index: {}]   ;;  %s7167_s2 = inlined_call_operand.hbm [shape: f32[2,8,128], index: 2, kind: input, shape index: {}]   ;;  %s7168_s3 = inlined_call_operand.vmem [shape: f32[2,128,1], index: 3, kind: output, shape index: {0}]   ;;  %s7169_s4 = inlined_call_operand.vmem [shape: s32[2,128,1], index: 4, kind: output, shape index: {1}]  }
   0x1   :  { %s19_s17 = sshll.u32 %s7166_s1, 4  ;;  %s20_s17 = int_to_ptr.hbm [resolvable:$true] %s19_s17 }
   0x2   :  { %12 = vsyncpa [#allocation9], 0  ;;  %s3609_s18 = smov [#allocation6]   ;;  %s32_s22 = sshll.u32 %s7167_s2, 4  ;;  %s33_s22 = int_to_ptr.hbm [resolvable:$true] %s32_s22 }
   0x3   :  { %s21_s19 = sshll.u32 %s3609_s18, 4  ;;  %s3610_s23 = smov 128   ;;  %s22_s19 = int_to_ptr.vmem [resolvable:$true] %s21_s19 }
   0x4   :  { %s3611_s24 = smov 8   ;;  %s3612_s25 = smov [#allocation8]  }
   0x5   :  { %27 = dma.hbm_to_vmem [thread:$0]  %s20_s17, 256, %s22_s19, [#allocation7], %s3610_s23, %s3610_s23, %s3611_s24  }
   0x6   :  { %s34_s26 = sshll.u32 %s3612_s25, 4  ;;  %s35_s26 = int_to_ptr.vmem [resolvable:$true] %s34_s26 }
   0x7   :  { %40 = dma.hbm_to_vmem [thread:$0]  %s33_s22, 256, %s35_s26, [#allocation9], %s3610_s23, %s3610_s23, %s3611_s24  }
   0x8   :  { %3601 = dma.done.wait [#allocation7], 256  }
   0x9   :  { %3602 = vsyncadd [#allocation7], 4294967040 }
   0xa   :  { %3603 = dma.done.wait [#allocation9], 256  }
   0xb   :  { %3604 = vsyncadd [#allocation9], 4294967040  ;;  %vm7240_vm0 = vcmask 7168   ;;  %v82_v0 = vlaneseq  ;;  %v3613_v1 = vmov 4294967295   ;;  %s3614_s2 = smov 0   ;;  %v50_v12 = vld [vmem:[#allocation6] sm:$0xff] }
   0xc   :  { %468 = vst.msk [vmem:[%s7169_s4] sm:$0xff] %vm7240_vm0, %v3613_v1  ;;  %501 = sst [smem:[#allocation4]] %s3614_s2  ;;  %v54_v17 = vmul.f32 %v50_v12, %v50_v12  ;;  %v85_v27 = vmul.f32 2.0, %v50_v12  ;;  %v3615_v28 = vmov 0.0   ;;  %v51_v33 = vld [vmem:[#allocation6 + $0x8] sm:$0xff]  ;;  %v52_v36 = vld [vmem:[#allocation8] sm:$0xff] }
   0xd   :  { %469 = vst.msk [vmem:[%s7169_s4 + $0x8] sm:$0xff] %vm7240_vm0, %v3613_v1  ;;  %v3659_v2 = vshrl.u32 %v82_v0, 7  ;;  %v3661_v3 = vand.u32 127, %v82_v0  ;;  %v55_v34 = vmul.f32 %v51_v33, %v51_v33  ;;  %v68_v37 = vmul.f32 %v52_v36, %v52_v36  ;;  %s3915_s8 = smov 0  }
   0xe   :  { %470 = vst.msk [vmem:[%s7169_s4 + $0x10] sm:$0xff] %vm7240_vm0, %v3613_v1  ;;  %v56_v21 = vrot.slane %v54_v17, 4  ;;  %v86_v54 = vmul.f32 2.0, %v51_v33  ;;  %vm142_vm4 = vcmask 64512  }
   0xf   :  { %7348 = vst [vmem:[#allocation12_spill] sm:$0xff] %v3659_v2  ;;  %v3674_v4 = vadd.s32 8, %v3659_v2  ;;  %v3682_v5 = vadd.s32 16, %v3659_v2  ;;  %v3685_v6 = vadd.s32 24, %v3659_v2  ;;  %v3688_v7 = vadd.s32 32, %v3659_v2 }
  0x10   :  { %7349 = vst [vmem:[#allocation13_spill] sm:$0xff] %v3661_v3  ;;  %v3696_v8 = vadd.s32 40, %v3659_v2  ;;  %v3699_v9 = vadd.s32 48, %v3659_v2  ;;  %v3702_v10 = vadd.s32 56, %v3659_v2  ;;  %v3705_v11 = vadd.s32 64, %v3659_v2 }
  0x11   :  { %471 = vst.msk [vmem:[%s7169_s4 + $0x18] sm:$0xff] %vm7240_vm0, %v3613_v1  ;;  %v3713_v13 = vadd.s32 72, %v3659_v2  ;;  %v3716_v14 = vadd.s32 80, %v3659_v2  ;;  %v3719_v15 = vadd.s32 88, %v3659_v2  ;;  %v3722_v16 = vadd.s32 96, %v3659_v2 }
  0x12   :  { %7350 = vst [vmem:[#allocation14_spill] sm:$0xff] %v3674_v4  ;;  %v3730_v18 = vadd.s32 104, %v3659_v2  ;;  %v3733_v19 = vadd.s32 112, %v3659_v2  ;;  %v3741_v20 = vadd.s32 120, %v3659_v2  ;;  %v57_v22 = vadd.f32 %v56_v21, %v54_v17  ;;  %v53_v17 = vld [vmem:[#allocation8 + $0x8] sm:$0xff] }
  0x13   :  { %472 = vst.msk [vmem:[%s7169_s4 + $0x20] sm:$0xff] %vm7240_vm0, %v3613_v1  ;;  %vm90_vm1 = vcmp.eq.s32.totalorder %v3659_v2, 4  ;;  %vm87_vm2 = vcmp.eq.s32.totalorder %v3659_v2, 3  ;;  %vm84_vm3 = vcmp.lt.s32.totalorder %v3659_v2, 3  ;;  %v62_v35 = vrot.slane %v55_v34, 4 }
  0x14   :  { %7351 = vst [vmem:[#allocation15_spill] sm:$0xff] %v3682_v5  ;;  %v58_v23 = vrot.slane %v57_v22, 2  ;;  %v91_v29 = vsel %vm90_vm1, 1.0, %v3615_v28  ;;  %v70_v39 = vrot.slane %v68_v37, 4  ;;  %v69_v21 = vmul.f32 %v53_v17, %v53_v17 }
  0x15   :  { %7352 = vst [vmem:[#allocation16_spill] sm:$0xff] %v3685_v6  ;;  %v63_v38 = vadd.f32 %v62_v35, %v55_v34 }
  0x16   :  { %7353 = vst [vmem:[#allocation17_spill] sm:$0xff] %v3688_v7  ;;  %v59_v24 = vadd.f32 %v58_v23, %v57_v22  ;;  %v71_v40 = vadd.f32 %v70_v39, %v68_v37  ;;  %v76_v22 = vrot.slane %v69_v21, 4 }
  0x17   :  { %473 = vst.msk [vmem:[%s7169_s4 + $0x28] sm:$0xff] %vm7240_vm0, %v3613_v1  ;;  %v64_v41 = vrot.slane %v63_v38, 2 }
  0x18   :  { %7354 = vst [vmem:[#allocation18_spill] sm:$0xff] %v3696_v8  ;;  %v60_v25 = vrot.slane %v59_v24, 1  ;;  %v72_v42 = vrot.slane %v71_v40, 2 }
  0x19   :  { %7355 = vst [vmem:[#allocation19_spill] sm:$0xff] %v3699_v9  ;;  %v65_v44 = vadd.f32 %v64_v41, %v63_v38 }
  0x1a   :  { %7356 = vst [vmem:[#allocation20_spill] sm:$0xff] %v3702_v10  ;;  %v61_v26 = vadd.f32 %v60_v25, %v59_v24  ;;  %v73_v43 = vadd.f32 %v72_v42, %v71_v40  ;;  %v77_v24 = vadd.f32 %v76_v22, %v69_v21 }
  0x1b   :  { %7357 = vst [vmem:[#allocation21_spill] sm:$0xff] %v3705_v11  ;;  %v66_v47 = vrot.slane %v65_v44, 1 }
  0x1c   :  { %474 = vst.msk [vmem:[%s7169_s4 + $0x30] sm:$0xff] %vm7240_vm0, %v3613_v1  ;;  %v88_v30 = vsub.f32 0.0, %v61_v26  ;;  %v74_v45 = vrot.slane %v73_v43, 1  ;;  %v78_v25 = vrot.slane %v77_v24, 2 }
  0x1d   :  { %7358 = vst [vmem:[#allocation22_spill] sm:$0xff] %v3713_v13  ;;  %v67_v50 = vadd.f32 %v66_v47, %v65_v44 }
  0x1e   :  { %7359 = vst [vmem:[#allocation23_spill] sm:$0xff] %v3716_v14  ;;  %v94_v31 = vsel %vm87_vm2, %v88_v30, %v91_v29  ;;  %v75_v46 = vadd.f32 %v74_v45, %v73_v43  ;;  %v79_v26 = vadd.f32 %v78_v25, %v77_v24 }
  0x1f   :  { %7360 = vst [vmem:[#allocation24_spill] sm:$0xff] %v3719_v15  ;;  %v98_v32 = vsel %vm84_vm3, %v85_v27, %v94_v31  ;;  %v89_v53 = vsub.f32 0.0, %v67_v50 }
  0x20   :  { %7361 = vst [vmem:[#allocation25_spill] sm:$0xff] %v3722_v16  ;;  %110 = vxpose.xlu0.b32.start.end [1/1] (short) %v98_v32, 128  ;;  %v100_v48 = vsub.f32 0.0, %v75_v46  ;;  %v80_v27 = vrot.slane %v79_v26, 1 }
  0x21   :  { %475 = vst.msk [vmem:[%s7169_s4 + $0x38] sm:$0xff] %vm7240_vm0, %v3613_v1  ;;  %v95_v55 = vsel %vm87_vm2, %v89_v53, %v91_v29 }
  0x22   :  { %7362 = vst [vmem:[#allocation26_spill] sm:$0xff] %v3730_v18  ;;  %v104_v49 = vsel %vm90_vm1, %v100_v48, 0.0  ;;  %v99_v56 = vsel %vm84_vm3, %v86_v54, %v95_v55  ;;  %v81_v29 = vadd.f32 %v80_v27, %v79_v26 }
  0x23   :  { %7363 = vst [vmem:[#allocation27_spill] sm:$0xff] %v3733_v19  ;;  %v106_v51 = vsel %vm87_vm2, 1.0, %v104_v49 }
  0x24   :  { %476 = vst.msk [vmem:[%s7169_s4 + $0x40] sm:$0xff] %vm7240_vm0, %v3613_v1  ;;  %v108_v52 = vsel %vm84_vm3, %v52_v36, %v106_v51  ;;  %v101_v30 = vsub.f32 0.0, %v81_v29 }
  0x25   :  { %7364 = vst [vmem:[#allocation28_spill] sm:$0xff] %v3741_v20  ;;  %206 = vmatpush.msra.mxu0 %v108_v52  ;;  %3434 = vmatpush.msra.mxu2 %v108_v52 }
  0x26   :  { %477 = vst.msk [vmem:[%s7169_s4 + $0x48] sm:$0xff] %vm7240_vm0, %v3613_v1  ;;  %v105_v31 = vsel %vm90_vm1, %v101_v30, 0.0 }
  0x27   :  { %478 = vst.msk [vmem:[%s7169_s4 + $0x50] sm:$0xff] %vm7240_vm0, %v3613_v1  ;;  %v107_v32 = vsel %vm87_vm2, 1.0, %v105_v31 }
  0x28   :  { %479 = vst.msk [vmem:[%s7169_s4 + $0x58] sm:$0xff] %vm7240_vm0, %v3613_v1  ;;  %v109_v33 = vsel %vm84_vm3, %v53_v17, %v107_v32 }
  0x29   :  { %480 = vst.msk [vmem:[%s7169_s4 + $0x60] sm:$0xff] %vm7240_vm0, %v3613_v1  ;;  %351 = vmatpush.msra.mxu1 %v109_v33  ;;  %3435 = vmatpush.msra.mxu3 %v109_v33 }
  0x2a   :  { %481 = vst.msk [vmem:[%s7169_s4 + $0x68] sm:$0xff] %vm7240_vm0, %v3613_v1 }
  0x2b   :  { %482 = vst.msk [vmem:[%s7169_s4 + $0x70] sm:$0xff] %vm7240_vm0, %v3613_v1 }
  0x2c   :  { %483 = vst.msk [vmem:[%s7169_s4 + $0x78] sm:$0xff] %vm7240_vm0, %v3613_v1 }
  0x2d   :  { %484 = vst.msk [vmem:[%s7169_s4 + $0x80] sm:$0xff] %vm7240_vm0, %v3613_v1 }
  0x2e   :  { %485 = vst.msk [vmem:[%s7169_s4 + $0x88] sm:$0xff] %vm7240_vm0, %v3613_v1 }
  0x2f   :  { %486 = vst.msk [vmem:[%s7169_s4 + $0x90] sm:$0xff] %vm7240_vm0, %v3613_v1 }
  0x30   :  { %487 = vst.msk [vmem:[%s7169_s4 + $0x98] sm:$0xff] %vm7240_vm0, %v3613_v1 }
  0x31   :  { %488 = vst.msk [vmem:[%s7169_s4 + $0xa0] sm:$0xff] %vm7240_vm0, %v3613_v1 }
  0x32   :  { %489 = vst.msk [vmem:[%s7169_s4 + $0xa8] sm:$0xff] %vm7240_vm0, %v3613_v1 }
  0x33   :  { %490 = vst.msk [vmem:[%s7169_s4 + $0xb0] sm:$0xff] %vm7240_vm0, %v3613_v1 }
  0x34   :  { %491 = vst.msk [vmem:[%s7169_s4 + $0xb8] sm:$0xff] %vm7240_vm0, %v3613_v1 }
  0x35   :  { %492 = vst.msk [vmem:[%s7169_s4 + $0xc0] sm:$0xff] %vm7240_vm0, %v3613_v1 }
  0x36   :  { %493 = vst.msk [vmem:[%s7169_s4 + $0xc8] sm:$0xff] %vm7240_vm0, %v3613_v1 }
  0x37   :  { %494 = vst.msk [vmem:[%s7169_s4 + $0xd0] sm:$0xff] %vm7240_vm0, %v3613_v1 }
  0x38   :  { %495 = vst.msk [vmem:[%s7169_s4 + $0xd8] sm:$0xff] %vm7240_vm0, %v3613_v1 }
  0x39   :  { %496 = vst.msk [vmem:[%s7169_s4 + $0xe0] sm:$0xff] %vm7240_vm0, %v3613_v1 }
  0x3a   :  { %497 = vst.msk [vmem:[%s7169_s4 + $0xe8] sm:$0xff] %vm7240_vm0, %v3613_v1 }
  0x3b   :  { %498 = vst.msk [vmem:[%s7169_s4 + $0xf0] sm:$0xff] %vm7240_vm0, %v3613_v1 }
  0x3c   :  { %499 = vst.msk [vmem:[%s7169_s4 + $0xf8] sm:$0xff] %vm7240_vm0, %v3613_v1 }
  0x3d   :  { %465 = vst [vmem:[#allocation3] sm:$0x1] %v3615_v28 }
  0x3e   :  { %466 = vst [vmem:[#allocation3 + $0x1] sm:$0x1] %v3615_v28 }
  0xa0   :  { %256 = vxpose.xlu0.b32.start.end [1/1] (short) %v99_v56, 128 }
  0xc4   :  { %v126_v57 = vpop.trf.xlu0 }
  0xc5   :  { %3401 = vmatmul.msk.f32.vlgmr.msra.gmra.mxu0 %vm142_vm4, %v126_v57 }
  0xcc   :  { %v127_v58 = vpop.trf.xlu0 }
  0xcd   :  { %3402 = vmatmul.msk.f32.gmra.mxu0 %vm142_vm4, %v127_v58 }
  0xd4   :  { %v128_v59 = vpop.trf.xlu0 }
  0xd5   :  { %3403 = vmatmul.msk.f32.gmra.mxu0 %vm142_vm4, %v128_v59 }
  0xdc   :  { %v129_v60 = vpop.trf.xlu0 }
  0xdd   :  { %3404 = vmatmul.msk.f32.gmra.mxu0 %vm142_vm4, %v129_v60 }
  0xe4   :  { %v130_v61 = vpop.trf.xlu0 }
  0xe5   :  { %3405 = vmatmul.msk.f32.gmra.mxu0 %vm142_vm4, %v130_v61 }
  0xec   :  { %v131_v62 = vpop.trf.xlu0 }
  0xed   :  { %3406 = vmatmul.msk.f32.gmra.mxu0 %vm142_vm4, %v131_v62 }
  0xf4   :  { %v132_v63 = vpop.trf.xlu0 }
  0xf5   :  { %3407 = vmatmul.msk.f32.gmra.mxu0 %vm142_vm4, %v132_v63 }
  0xfc   :  { %v133_v0 = vpop.trf.xlu0 }
  0xfd   :  { %3408 = vmatmul.msk.f32.gmra.mxu0 %vm142_vm4, %v133_v0 }
 0x104   :  { %v134_v1 = vpop.trf.xlu0 }
 0x105   :  { %3409 = vmatmul.msk.f32.vlgmr.msra.gmra.mxu2 %vm142_vm4, %v134_v1 }
 0x10c   :  { %v135_v12 = vpop.trf.xlu0 }
 0x10d   :  { %3410 = vmatmul.msk.f32.gmra.mxu2 %vm142_vm4, %v135_v12 }
 0x114   :  { %v136_v23 = vpop.trf.xlu0 }
 0x115   :  { %3411 = vmatmul.msk.f32.gmra.mxu2 %vm142_vm4, %v136_v23 }
 0x11c   :  { %v137_v28 = vpop.trf.xlu0 }
 0x11d   :  { %3412 = vmatmul.msk.f32.gmra.mxu2 %vm142_vm4, %v137_v28 }
 0x124   :  { %v138_v34 = vpop.trf.xlu0 }
 0x125   :  { %3413 = vmatmul.msk.f32.gmra.mxu2 %vm142_vm4, %v138_v34 }
 0x12c   :  { %v139_v35 = vpop.trf.xlu0 }
 0x12d   :  { %3414 = vmatmul.msk.f32.gmra.mxu2 %vm142_vm4, %v139_v35 }
 0x134   :  { %v140_v36 = vpop.trf.xlu0 }
 0x135   :  { %3415 = vmatmul.msk.f32.gmra.mxu2 %vm142_vm4, %v140_v36 }
 0x13c   :  { %v141_v37 = vpop.trf.xlu0 }
 0x13d   :  { %3416 = vmatmul.msk.f32.gmra.mxu2 %vm142_vm4, %v141_v37 }
 0x142   :  { %v208_v38 = vpop.f32.mrf.mxu0 }
 0x143   :  { %v401_v39 = vmin.f32 %v208_v38, 0.0 }
 0x144   :  { %v272_v40 = vpop.trf.xlu0 }
 0x145   :  { %433 = vst [vmem:[#allocation2 + $0xb0] sm:$0xff] %v401_v39  ;;  %3417 = vmatmul.msk.f32.vlgmr.msra.gmra.mxu1 %vm142_vm4, %v272_v40 }
 0x14a   :  { %v211_v41 = vpop.f32.mrf.mxu0 }
 0x14b   :  { %v402_v42 = vmin.f32 %v211_v41, 0.0 }
 0x14c   :  { %v273_v43 = vpop.trf.xlu0 }
 0x14d   :  { %434 = vst [vmem:[#allocation2] sm:$0xff] %v402_v42  ;;  %3418 = vmatmul.msk.f32.gmra.mxu1 %vm142_vm4, %v273_v43 }
 0x152   :  { %v214_v44 = vpop.f32.mrf.mxu0 }
 0x153   :  { %v403_v45 = vmin.f32 %v214_v44, 0.0 }
 0x154   :  { %v274_v46 = vpop.trf.xlu0 }
 0x155   :  { %435 = vst [vmem:[#allocation2 + $0xd8] sm:$0xff] %v403_v45  ;;  %3419 = vmatmul.msk.f32.gmra.mxu1 %vm142_vm4, %v274_v46 }
 0x15a   :  { %v217_v47 = vpop.f32.mrf.mxu0 }
 0x15b   :  { %v404_v48 = vmin.f32 %v217_v47, 0.0 }
 0x15c   :  { %v275_v49 = vpop.trf.xlu0 }
 0x15d   :  { %436 = vst [vmem:[#allocation2 + $0x18] sm:$0xff] %v404_v48  ;;  %3420 = vmatmul.msk.f32.gmra.mxu1 %vm142_vm4, %v275_v49 }
 0x162   :  { %v220_v50 = vpop.f32.mrf.mxu0 }
 0x163   :  { %v405_v51 = vmin.f32 %v220_v50, 0.0 }
 0x164   :  { %v276_v52 = vpop.trf.xlu0 }
 0x165   :  { %437 = vst [vmem:[#allocation2 + $0x50] sm:$0xff] %v405_v51  ;;  %3421 = vmatmul.msk.f32.gmra.mxu1 %vm142_vm4, %v276_v52 }
 0x16a   :  { %v223_v53 = vpop.f32.mrf.mxu0 }
 0x16b   :  { %v406_v54 = vmin.f32 %v223_v53, 0.0 }
 0x16c   :  { %v277_v55 = vpop.trf.xlu0 }
 0x16d   :  { %438 = vst [vmem:[#allocation2 + $0x68] sm:$0xff] %v406_v54  ;;  %3422 = vmatmul.msk.f32.gmra.mxu1 %vm142_vm4, %v277_v55 }
 0x172   :  { %v226_v56 = vpop.f32.mrf.mxu0 }
 0x173   :  { %v407_v57 = vmin.f32 %v226_v56, 0.0 }
 0x174   :  { %v278_v58 = vpop.trf.xlu0 }
 0x175   :  { %439 = vst [vmem:[#allocation2 + $0x30] sm:$0xff] %v407_v57  ;;  %3423 = vmatmul.msk.f32.gmra.mxu1 %vm142_vm4, %v278_v58 }
 0x17a   :  { %v229_v59 = vpop.f32.mrf.mxu0 }
 0x17b   :  { %v408_v60 = vmin.f32 %v229_v59, 0.0 }
 0x17c   :  { %v279_v61 = vpop.trf.xlu0 }
 0x17d   :  { %440 = vst [vmem:[#allocation2 + $0x48] sm:$0xff] %v408_v60  ;;  %3424 = vmatmul.msk.f32.gmra.mxu1 %vm142_vm4, %v279_v61 }
 0x184   :  { %v280_v62 = vpop.trf.xlu0 }
 0x185   :  { %3425 = vmatmul.msk.f32.vlgmr.msra.gmra.mxu3 %vm142_vm4, %v280_v62 }
 0x188   :  { %v232_v63 = vpop.f32.mrf.mxu2 }
 0x189   :  { %v409_v0 = vmin.f32 %v232_v63, 0.0 }
 0x18b   :  { %441 = vst [vmem:[#allocation2 + $0x80] sm:$0xff] %v409_v0 }
 0x18c   :  { %v281_v1 = vpop.trf.xlu0 }
 0x18d   :  { %3426 = vmatmul.msk.f32.gmra.mxu3 %vm142_vm4, %v281_v1 }
 0x190   :  { %v235_v12 = vpop.f32.mrf.mxu2 }
 0x191   :  { %v410_v17 = vmin.f32 %v235_v12, 0.0 }
 0x193   :  { %442 = vst [vmem:[#allocation2 + $0x88] sm:$0xff] %v410_v17 }
 0x194   :  { %v282_v21 = vpop.trf.xlu0 }
 0x195   :  { %3427 = vmatmul.msk.f32.gmra.mxu3 %vm142_vm4, %v282_v21 }
 0x198   :  { %v238_v22 = vpop.f32.mrf.mxu2 }
 0x199   :  { %v411_v23 = vmin.f32 %v238_v22, 0.0 }
 0x19b   :  { %443 = vst [vmem:[#allocation2 + $0xe8] sm:$0xff] %v411_v23 }
 0x19c   :  { %v283_v24 = vpop.trf.xlu0 }
 0x19d   :  { %3428 = vmatmul.msk.f32.gmra.mxu3 %vm142_vm4, %v283_v24 }
 0x1a0   :  { %v241_v25 = vpop.f32.mrf.mxu2 }
 0x1a1   :  { %v412_v26 = vmin.f32 %v241_v25, 0.0 }
 0x1a3   :  { %444 = vst [vmem:[#allocation2 + $0xb8] sm:$0xff] %v412_v26 }
 0x1a4   :  { %v284_v27 = vpop.trf.xlu0 }
 0x1a5   :  { %3429 = vmatmul.msk.f32.gmra.mxu3 %vm142_vm4, %v284_v27 }
 0x1a8   :  { %v244_v28 = vpop.f32.mrf.mxu2 }
 0x1a9   :  { %v413_v29 = vmin.f32 %v244_v28, 0.0 }
 0x1ab   :  { %445 = vst [vmem:[#allocation2 + $0x60] sm:$0xff] %v413_v29 }
 0x1ac   :  { %v285_v30 = vpop.trf.xlu0 }
 0x1ad   :  { %3430 = vmatmul.msk.f32.gmra.mxu3 %vm142_vm4, %v285_v30 }
 0x1b0   :  { %v247_v31 = vpop.f32.mrf.mxu2 }
 0x1b1   :  { %v414_v32 = vmin.f32 %v247_v31, 0.0 }
 0x1b3   :  { %446 = vst [vmem:[#allocation2 + $0xf0] sm:$0xff] %v414_v32 }
 0x1b4   :  { %v286_v33 = vpop.trf.xlu0 }
 0x1b5   :  { %3431 = vmatmul.msk.f32.gmra.mxu3 %vm142_vm4, %v286_v33 }
 0x1b8   :  { %v250_v34 = vpop.f32.mrf.mxu2 }
 0x1b9   :  { %v415_v35 = vmin.f32 %v250_v34, 0.0 }
 0x1bb   :  { %447 = vst [vmem:[#allocation2 + $0x8] sm:$0xff] %v415_v35 }
 0x1bc   :  { %v287_v36 = vpop.trf.xlu0 }
 0x1bd   :  { %3432 = vmatmul.msk.f32.gmra.mxu3 %vm142_vm4, %v287_v36 }
 0x1c0   :  { %v253_v37 = vpop.f32.mrf.mxu2 }
 0x1c1   :  { %v416_v38 = vmin.f32 %v253_v37, 0.0 }
 0x1c2   :  { %v353_v39 = vpop.f32.mrf.mxu1 }
 0x1c3   :  { %448 = vst [vmem:[#allocation2 + $0x78] sm:$0xff] %v416_v38  ;;  %v417_v40 = vmin.f32 %v353_v39, 0.0 }
 0x1c5   :  { %449 = vst [vmem:[#allocation2 + $0x38] sm:$0xff] %v417_v40 }
 0x1ca   :  { %v356_v41 = vpop.f32.mrf.mxu1 }
 0x1cb   :  { %v418_v42 = vmin.f32 %v356_v41, 0.0 }
 0x1cd   :  { %450 = vst [vmem:[#allocation2 + $0x58] sm:$0xff] %v418_v42 }
 0x1d2   :  { %v359_v43 = vpop.f32.mrf.mxu1 }
 0x1d3   :  { %v419_v44 = vmin.f32 %v359_v43, 0.0 }
 0x1d5   :  { %451 = vst [vmem:[#allocation2 + $0x40] sm:$0xff] %v419_v44 }
 0x1da   :  { %v362_v45 = vpop.f32.mrf.mxu1 }
 0x1db   :  { %v420_v46 = vmin.f32 %v362_v45, 0.0 }
 0x1dd   :  { %452 = vst [vmem:[#allocation2 + $0xc8] sm:$0xff] %v420_v46 }
 0x1e2   :  { %v365_v47 = vpop.f32.mrf.mxu1 }
 0x1e3   :  { %v421_v48 = vmin.f32 %v365_v47, 0.0 }
 0x1e5   :  { %453 = vst [vmem:[#allocation2 + $0xe0] sm:$0xff] %v421_v48 }
 0x1ea   :  { %v368_v49 = vpop.f32.mrf.mxu1 }
 0x1eb   :  { %v422_v50 = vmin.f32 %v368_v49, 0.0 }
 0x1ed   :  { %454 = vst [vmem:[#allocation2 + $0x90] sm:$0xff] %v422_v50 }
 0x1f2   :  { %v371_v51 = vpop.f32.mrf.mxu1 }
 0x1f3   :  { %v423_v52 = vmin.f32 %v371_v51, 0.0 }
 0x1f5   :  { %455 = vst [vmem:[#allocation2 + $0x70] sm:$0xff] %v423_v52 }
 0x1fa   :  { %v374_v53 = vpop.f32.mrf.mxu1 }
 0x1fb   :  { %v424_v54 = vmin.f32 %v374_v53, 0.0 }
 0x1fd   :  { %456 = vst [vmem:[#allocation2 + $0xc0] sm:$0xff] %v424_v54 }
 0x208   :  { %v377_v55 = vpop.f32.mrf.mxu3 }
 0x209   :  { %v425_v56 = vmin.f32 %v377_v55, 0.0 }
 0x20b   :  { %457 = vst [vmem:[#allocation2 + $0xa8] sm:$0xff] %v425_v56 }
 0x210   :  { %v380_v57 = vpop.f32.mrf.mxu3 }
 0x211   :  { %v426_v58 = vmin.f32 %v380_v57, 0.0 }
 0x213   :  { %458 = vst [vmem:[#allocation2 + $0xd0] sm:$0xff] %v426_v58 }
 0x218   :  { %v383_v59 = vpop.f32.mrf.mxu3 }
 0x219   :  { %v427_v60 = vmin.f32 %v383_v59, 0.0 }
 0x21b   :  { %459 = vst [vmem:[#allocation2 + $0x10] sm:$0xff] %v427_v60 }
 0x220   :  { %v386_v61 = vpop.f32.mrf.mxu3 }
 0x221   :  { %v428_v62 = vmin.f32 %v386_v61, 0.0 }
 0x223   :  { %460 = vst [vmem:[#allocation2 + $0x28] sm:$0xff] %v428_v62 }
 0x228   :  { %v389_v63 = vpop.f32.mrf.mxu3 }
 0x229   :  { %v429_v0 = vmin.f32 %v389_v63, 0.0 }
 0x22b   :  { %461 = vst [vmem:[#allocation2 + $0xa0] sm:$0xff] %v429_v0 }
 0x230   :  { %v392_v1 = vpop.f32.mrf.mxu3 }
 0x231   :  { %v430_v12 = vmin.f32 %v392_v1, 0.0 }
 0x233   :  { %462 = vst [vmem:[#allocation2 + $0xf8] sm:$0xff] %v430_v12 }
 0x238   :  { %v395_v17 = vpop.f32.mrf.mxu3 }
 0x239   :  { %v431_v21 = vmin.f32 %v395_v17, 0.0 }
 0x23b   :  { %463 = vst [vmem:[#allocation2 + $0x20] sm:$0xff] %v431_v21 }
 0x240   :  { %v398_v22 = vpop.f32.mrf.mxu3 }
 0x241   :  { %v432_v23 = vmin.f32 %v398_v22, 0.0 }
 0x243   :  { %464 = vst [vmem:[#allocation2 + $0x98] sm:$0xff] %v432_v23 }
 0x244 LB: > { %v7365_v3 = vld [vmem:[#allocation13_spill] sm:$0xff]  ;;  %s525_s9 = sld [smem:[#allocation4]]  ;;  %s3607_s8 = sphi %s3915_s8, %s524_s8  }
 0x24a   : > { %p3433_p0 = scmp.ne.s32.totalorder %s525_s9, 0 }
 0x24c   : > { %529 = sbr.rel (%p3433_p0) target bundleno = 2104 (0x838), region = 32 }
 0x251   : > { %v3920_v24 = vld [vmem:[#allocation2 + $0x50] sm:$0xff]  ;;  %v3922_v25 = vld [vmem:[#allocation2 + $0xd8] sm:$0xff]  ;;  %v3929_v27 = vld [vmem:[#allocation2 + $0x68] sm:$0xff] }
 0x252   : > { %7366 = vst [vmem:[#allocation29_spill] sm:$0xff] %v3920_v24  ;;  %v3924_v26 = vld [vmem:[#allocation2 + $0xb0] sm:$0xff]  ;;  %570 = vmax.xlane.f32.xlu2 %v3920_v24  ;;  %566 = vmax.xlane.f32.xlu1 %v3922_v25  ;;  %v3931_v28 = vld [vmem:[#allocation2 + $0x18] sm:$0xff]  ;;  %v3933_v29 = vld [vmem:[#allocation2] sm:$0xff] }
 0x253   : > { %7367 = vst [vmem:[#allocation30_spill] sm:$0xff] %v3924_v26  ;;  %562 = vmax.xlane.f32.xlu0 %v3924_v26  ;;  %v3938_v30 = vld [vmem:[#allocation2 + $0x80] sm:$0xff]  ;;  %v3940_v31 = vld [vmem:[#allocation2 + $0x48] sm:$0xff]  ;;  %v3942_v32 = vld [vmem:[#allocation2 + $0x30] sm:$0xff] }
 0x254   : > { %7368 = vst [vmem:[#allocation31_spill] sm:$0xff] %v3931_v28  ;;  %v3947_v33 = vld [vmem:[#allocation2 + $0xb8] sm:$0xff]  ;;  %v3949_v34 = vld [vmem:[#allocation2 + $0xe8] sm:$0xff]  ;;  %v3958_v37 = vld [vmem:[#allocation2 + $0xf0] sm:$0xff] }
 0x255   : > { %7369 = vst [vmem:[#allocation32_spill] sm:$0xff] %v3933_v29  ;;  %v3951_v35 = vld [vmem:[#allocation2 + $0x88] sm:$0xff]  ;;  %v3960_v38 = vld [vmem:[#allocation2 + $0x60] sm:$0xff]  ;;  %v3965_v39 = vld [vmem:[#allocation2 + $0x58] sm:$0xff] }
 0x256   : > { %7370 = vst [vmem:[#allocation33_spill] sm:$0xff] %v3942_v32  ;;  %v3956_v36 = vld [vmem:[#allocation2 + $0x8] sm:$0xff]  ;;  %v3967_v40 = vld [vmem:[#allocation2 + $0x38] sm:$0xff]  ;;  %v3974_v42 = vld [vmem:[#allocation2 + $0xe0] sm:$0xff] }
 0x257   : > { %v3969_v41 = vld [vmem:[#allocation2 + $0x78] sm:$0xff]  ;;  %v3976_v43 = vld [vmem:[#allocation2 + $0xc8] sm:$0xff]  ;;  %v3978_v44 = vld [vmem:[#allocation2 + $0x40] sm:$0xff] }
 0x258   : > { %v3983_v45 = vld [vmem:[#allocation2 + $0xc0] sm:$0xff]  ;;  %v3985_v46 = vld [vmem:[#allocation2 + $0x70] sm:$0xff]  ;;  %v3996_v50 = vld [vmem:[#allocation2 + $0xa8] sm:$0xff] }
 0x259   : > { %v3987_v47 = vld [vmem:[#allocation2 + $0x90] sm:$0xff]  ;;  %v4001_v51 = vld [vmem:[#allocation2 + $0xf8] sm:$0xff]  ;;  %v4003_v52 = vld [vmem:[#allocation2 + $0xa0] sm:$0xff] }
 0x25a   : > { %572 = vmax.xlane.f32.xlu2 %v3929_v27  ;;  %568 = vmax.xlane.f32.xlu1 %v3931_v28  ;;  %v3992_v48 = vld [vmem:[#allocation2 + $0x10] sm:$0xff]  ;;  %v4005_v53 = vld [vmem:[#allocation2 + $0x28] sm:$0xff]  ;;  %v4010_v54 = vld [vmem:[#allocation2 + $0x20] sm:$0xff] }
 0x25b   : > { %564 = vmax.xlane.f32.xlu0 %v3933_v29  ;;  %v3994_v49 = vld [vmem:[#allocation2 + $0xd0] sm:$0xff]  ;;  %v4013_v55 = vld [vmem:[#allocation2 + $0x98] sm:$0xff] }
 0x25c   : > { %7371 = vst [vmem:[#allocation34_spill] sm:$0xff] %v4013_v55 }
 0x262   : > { %578 = vmax.xlane.f32.xlu2 %v3938_v30  ;;  %576 = vmax.xlane.f32.xlu1 %v3940_v31 }
 0x263   : > { %574 = vmax.xlane.f32.xlu0 %v3942_v32 }
 0x26a   : > { %584 = vmax.xlane.f32.xlu2 %v3947_v33  ;;  %582 = vmax.xlane.f32.xlu1 %v3949_v34 }
 0x26b   : > { %580 = vmax.xlane.f32.xlu0 %v3951_v35 }
 0x272   : > { %590 = vmax.xlane.f32.xlu2 %v3956_v36  ;;  %588 = vmax.xlane.f32.xlu1 %v3958_v37 }
 0x273   : > { %586 = vmax.xlane.f32.xlu0 %v3960_v38 }
 0x27a   : > { %596 = vmax.xlane.f32.xlu2 %v3965_v39  ;;  %594 = vmax.xlane.f32.xlu1 %v3967_v40 }
 0x27b   : > { %592 = vmax.xlane.f32.xlu0 %v3969_v41 }
 0x282   : > { %602 = vmax.xlane.f32.xlu2 %v3974_v42  ;;  %600 = vmax.xlane.f32.xlu1 %v3976_v43 }
 0x283   : > { %598 = vmax.xlane.f32.xlu0 %v3978_v44 }
 0x28a   : > { %608 = vmax.xlane.f32.xlu2 %v3983_v45  ;;  %606 = vmax.xlane.f32.xlu1 %v3985_v46 }
 0x28b   : > { %604 = vmax.xlane.f32.xlu0 %v3987_v47 }
 0x292   : > { %614 = vmax.xlane.f32.xlu2 %v3992_v48  ;;  %612 = vmax.xlane.f32.xlu1 %v3994_v49 }
 0x293   : > { %610 = vmax.xlane.f32.xlu0 %v3996_v50 }
 0x29a   : > { %620 = vmax.xlane.f32.xlu2 %v4001_v51  ;;  %618 = vmax.xlane.f32.xlu1 %v4003_v52 }
 0x29b   : > { %616 = vmax.xlane.f32.xlu0 %v4005_v53 }
 0x2a2   : > { %624 = vmax.xlane.f32.xlu1 %v4013_v55 }
 0x2a3   : > { %622 = vmax.xlane.f32.xlu0 %v4010_v54 }
 0x2c5   : > { %v4016_v56 = vpop.xlane.xlu2 %570  ;;  %v4018_v57 = vpop.xlane.xlu1 %566 }
 0x2c6   : > { %7372 = vst [vmem:[#allocation35_spill] sm:$0xff] %v4016_v56  ;;  %v4020_v58 = vpop.xlane.xlu0 %562  ;;  %vm628_vm5 = vcmp.ge.f32.partialorder %v3922_v25, %v4018_v57  ;;  %vm630_vm10 = vcmp.ge.f32.partialorder %v3920_v24, %v4016_v56 }
 0x2c7   : > { %7373 = vst [vmem:[#allocation36_spill] sm:$0xff] %v4018_v57  ;;  %v4025_v59 = vsel %vm628_vm5, %v7365_v3, 128  ;;  %vm626_vm6 = vcmp.ge.f32.partialorder %v3924_v26, %v4020_v58  ;;  %v4074_v18 = vsel %vm630_vm10, %v7365_v3, 128 }
 0x2c8   : > { %7374 = vst [vmem:[#allocation37_spill] sm:$0xff] %v4020_v58  ;;  %v719_v60 = vshra.s32 %v4025_v59, 16  ;;  %v4031_v61 = vsel %vm626_vm6, %v7365_v3, 128 }
 0x2c9   : > { %v691_v62 = vshra.s32 %v4031_v61, 16 }
 0x2ca   : > { %v4034_v63 = vcvt.s32.f32 %v719_v60 }
 0x2cb   : > { %v4036_v0 = vcvt.s32.f32 %v691_v62 }
 0x2cc   : > { %722 = vmin.xlane.f32.xlu0 %v4034_v63 }
 0x2cd   : > { %694 = vmin.xlane.f32.xlu2 %v4036_v0  ;;  %v4040_v1 = vpop.xlane.xlu2 %572  ;;  %v4042_v12 = vpop.xlane.xlu1 %568 }
 0x2ce   : > { %7375 = vst [vmem:[#allocation38_spill] sm:$0xff] %v4040_v1  ;;  %v4044_v17 = vpop.xlane.xlu0 %564  ;;  %vm631_vm7 = vcmp.ge.f32.partialorder %v3929_v27, %v4040_v1  ;;  %vm629_vm8 = vcmp.ge.f32.partialorder %v3931_v28, %v4042_v12 }
 0x2cf   : > { %7376 = vst [vmem:[#allocation39_spill] sm:$0xff] %v4042_v12  ;;  %v4051_v21 = vsel %vm631_vm7, %v7365_v3, 128  ;;  %v4054_v22 = vsel %vm629_vm8, %v7365_v3, 128  ;;  %vm627_vm9 = vcmp.ge.f32.partialorder %v3933_v29, %v4044_v17 }
 0x2d0   : > { %7377 = vst [vmem:[#allocation40_spill] sm:$0xff] %v4044_v17  ;;  %v761_v23 = vshra.s32 %v4051_v21, 16  ;;  %v733_v25 = vshra.s32 %v4054_v22, 16  ;;  %v4061_v60 = vsel %vm627_vm9, %v7365_v3, 128 }
 0x2d1   : > { %v705_v27 = vshra.s32 %v4061_v60, 16 }
 0x2d2   : > { %v4066_v62 = vcvt.s32.f32 %v761_v23  ;;  %v4068_v20 = vcvt.s32.f32 %v733_v25  ;;  %v747_v25 = vshra.s32 %v4074_v18, 16 }
 0x2d3   : > { %v4070_v19 = vcvt.s32.f32 %v705_v27 }
 0x2d4   : > { %764 = vmin.xlane.f32.xlu0 %v4066_v62  ;;  %v4104_v9 = vcvt.s32.f32 %v747_v25 }
 0x2d5   : > { %736 = vmin.xlane.f32.xlu2 %v4068_v20  ;;  %708 = vmin.xlane.f32.xlu1 %v4070_v19  ;;  %v4078_v16 = vpop.xlane.xlu2 %578  ;;  %v4080_v15 = vpop.xlane.xlu1 %576 }
 0x2d6   : > { %7378 = vst [vmem:[#allocation41_spill] sm:$0xff] %v4078_v16  ;;  %v4082_v14 = vpop.xlane.xlu0 %574  ;;  %vm634_vm11 = vcmp.ge.f32.partialorder %v3938_v30, %v4078_v16  ;;  %vm633_vm13 = vcmp.ge.f32.partialorder %v3940_v31, %v4080_v15 }
 0x2d7   : > { %7379 = vst [vmem:[#allocation42_spill] sm:$0xff] %v4080_v15  ;;  %v4087_v23 = vsel %vm634_vm11, %v7365_v3, 128  ;;  %vm632_vm12 = vcmp.ge.f32.partialorder %v3942_v32, %v4082_v14  ;;  %v4102_v30 = vsel %vm633_vm13, %v7365_v3, 128 }
 0x2d8   : > { %7380 = vst [vmem:[#allocation43_spill] sm:$0xff] %v4082_v14  ;;  %v803_v27 = vshra.s32 %v4087_v23, 16  ;;  %v4096_v13 = vsel %vm632_vm12, %v7365_v3, 128  ;;  %v789_v7 = vshra.s32 %v4102_v30, 16 }
 0x2d9   : > { %v775_v11 = vshra.s32 %v4096_v13, 16 }
 0x2da   : > { %v4099_v10 = vcvt.s32.f32 %v803_v27  ;;  %v4131_v4 = vcvt.s32.f32 %v789_v7 }
 0x2db   : > { %v4106_v8 = vcvt.s32.f32 %v775_v11 }
 0x2dc   : > { %806 = vmin.xlane.f32.xlu0 %v4099_v10 }
 0x2dd   : > { %750 = vmin.xlane.f32.xlu1 %v4104_v9  ;;  %778 = vmin.xlane.f32.xlu2 %v4106_v8  ;;  %v4111_v31 = vpop.xlane.xlu2 %584  ;;  %v4114_v6 = vpop.xlane.xlu1 %582 }
 0x2de   : > { %7381 = vst [vmem:[#allocation44_spill] sm:$0xff] %v4111_v31  ;;  %v4116_v27 = vpop.xlane.xlu0 %580  ;;  %vm637_vm14 = vcmp.ge.f32.partialorder %v3947_v33, %v4111_v31  ;;  %vm636_vm1 = vcmp.ge.f32.partialorder %v3949_v34, %v4114_v6 }
 0x2df   : > { %7382 = vst [vmem:[#allocation45_spill] sm:$0xff] %v4114_v6  ;;  %v4121_v11 = vsel %vm637_vm14, %v7365_v3, 128  ;;  %vm635_vm15 = vcmp.ge.f32.partialorder %v3951_v35, %v4116_v27  ;;  %v4137_v33 = vsel %vm636_vm1, %v7365_v3, 128 }
 0x2e0   : > { %7383 = vst [vmem:[#allocation46_spill] sm:$0xff] %v4116_v27  ;;  %v845_v25 = vshra.s32 %v4121_v11, 16  ;;  %v4129_v5 = vsel %vm635_vm15, %v7365_v3, 128  ;;  %v831_v7 = vshra.s32 %v4137_v33, 16 }
 0x2e1   : > { %v817_v2 = vshra.s32 %v4129_v5, 16 }
 0x2e2   : > { %v4134_v16 = vcvt.s32.f32 %v845_v25  ;;  %v4164_v15 = vcvt.s32.f32 %v831_v7 }
 0x2e3   : > { %v4139_v31 = vcvt.s32.f32 %v817_v2 }
 0x2e4   : > { %848 = vmin.xlane.f32.xlu0 %v4134_v16 }
 0x2e5   : > { %792 = vmin.xlane.f32.xlu1 %v4131_v4  ;;  %820 = vmin.xlane.f32.xlu2 %v4139_v31  ;;  %v4144_v34 = vpop.xlane.xlu2 %590  ;;  %v4147_v35 = vpop.xlane.xlu1 %588 }
 0x2e6   : > { %7384 = vst [vmem:[#allocation47_spill] sm:$0xff] %v4144_v34  ;;  %v4149_v6 = vpop.xlane.xlu0 %586  ;;  %vm640_vm2 = vcmp.ge.f32.partialorder %v3956_v36, %v4144_v34  ;;  %vm639_vm4 = vcmp.ge.f32.partialorder %v3958_v37, %v4147_v35 }
 0x2e7   : > { %7385 = vst [vmem:[#allocation48_spill] sm:$0xff] %v4147_v35  ;;  %v4154_v2 = vsel %vm640_vm2, %v7365_v3, 128  ;;  %vm638_vm3 = vcmp.ge.f32.partialorder %v3960_v38, %v4149_v6  ;;  %v4170_v36 = vsel %vm639_vm4, %v7365_v3, 128 }
 0x2e8   : > { %7386 = vst [vmem:[#allocation49_spill] sm:$0xff] %v4149_v6  ;;  %v887_v25 = vshra.s32 %v4154_v2, 16  ;;  %v4162_v27 = vsel %vm638_vm3, %v7365_v3, 128  ;;  %v873_v38 = vshra.s32 %v4170_v36, 16 }
 0x2e9   : > { %v859_v14 = vshra.s32 %v4162_v27, 16 }
 0x2ea   : > { %v4167_v1 = vcvt.s32.f32 %v887_v25  ;;  %v4197_v56 = vcvt.s32.f32 %v873_v38 }
 0x2eb   : > { %v4172_v34 = vcvt.s32.f32 %v859_v14 }
 0x2ec   : > { %890 = vmin.xlane.f32.xlu0 %v4167_v1 }
 0x2ed   : > { %834 = vmin.xlane.f32.xlu1 %v4164_v15  ;;  %862 = vmin.xlane.f32.xlu2 %v4172_v34  ;;  %v4177_v37 = vpop.xlane.xlu2 %596  ;;  %v4180_v7 = vpop.xlane.xlu1 %594 }
 0x2ee   : > { %7387 = vst [vmem:[#allocation50_spill] sm:$0xff] %v4177_v37  ;;  %v4182_v35 = vpop.xlane.xlu0 %592  ;;  %vm643_vm5 = vcmp.ge.f32.partialorder %v3965_v39, %v4177_v37  ;;  %vm642_vm7 = vcmp.ge.f32.partialorder %v3967_v40, %v4180_v7 }
 0x2ef   : > { %7388 = vst [vmem:[#allocation51_spill] sm:$0xff] %v4180_v7  ;;  %v4187_v14 = vsel %vm643_vm5, %v7365_v3, 128  ;;  %vm641_vm6 = vcmp.ge.f32.partialorder %v3969_v41, %v4182_v35  ;;  %v4203_v39 = vsel %vm642_vm7, %v7365_v3, 128 }
 0x2f0   : > { %7389 = vst [vmem:[#allocation52_spill] sm:$0xff] %v4182_v35  ;;  %v929_v25 = vshra.s32 %v4187_v14, 16  ;;  %v4195_v6 = vsel %vm641_vm6, %v7365_v3, 128  ;;  %v915_v41 = vshra.s32 %v4203_v39, 16 }
 0x2f1   : > { %v901_v57 = vshra.s32 %v4195_v6, 16 }
 0x2f2   : > { %v4200_v12 = vcvt.s32.f32 %v929_v25  ;;  %v4230_v58 = vcvt.s32.f32 %v915_v41 }
 0x2f3   : > { %v4205_v37 = vcvt.s32.f32 %v901_v57 }
 0x2f4   : > { %932 = vmin.xlane.f32.xlu0 %v4200_v12 }
 0x2f5   : > { %876 = vmin.xlane.f32.xlu1 %v4197_v56  ;;  %904 = vmin.xlane.f32.xlu2 %v4205_v37  ;;  %v4210_v40 = vpop.xlane.xlu2 %602  ;;  %v4213_v38 = vpop.xlane.xlu1 %600 }
 0x2f6   : > { %7390 = vst [vmem:[#allocation53_spill] sm:$0xff] %v4210_v40  ;;  %v4215_v7 = vpop.xlane.xlu0 %598  ;;  %vm646_vm8 = vcmp.ge.f32.partialorder %v3974_v42, %v4210_v40  ;;  %vm645_vm10 = vcmp.ge.f32.partialorder %v3976_v43, %v4213_v38 }
 0x2f7   : > { %7391 = vst [vmem:[#allocation54_spill] sm:$0xff] %v4213_v38  ;;  %v4220_v57 = vsel %vm646_vm8, %v7365_v3, 128  ;;  %vm644_vm9 = vcmp.ge.f32.partialorder %v3978_v44, %v4215_v7  ;;  %v4236_v42 = vsel %vm645_vm10, %v7365_v3, 128 }
 0x2f8   : > { %7392 = vst [vmem:[#allocation55_spill] sm:$0xff] %v4215_v7  ;;  %v971_v25 = vshra.s32 %v4220_v57, 16  ;;  %v4228_v35 = vsel %vm644_vm9, %v7365_v3, 128  ;;  %v957_v44 = vshra.s32 %v4236_v42, 16 }
 0x2f9   : > { %v943_v17 = vshra.s32 %v4228_v35, 16 }
 0x2fa   : > { %v4233_v32 = vcvt.s32.f32 %v971_v25  ;;  %v4263_v24 = vcvt.s32.f32 %v957_v44 }
 0x2fb   : > { %v4238_v40 = vcvt.s32.f32 %v943_v17 }
 0x2fc   : > { %974 = vmin.xlane.f32.xlu0 %v4233_v32 }
 0x2fd   : > { %918 = vmin.xlane.f32.xlu1 %v4230_v58  ;;  %946 = vmin.xlane.f32.xlu2 %v4238_v40  ;;  %v4243_v43 = vpop.xlane.xlu2 %608  ;;  %v4246_v41 = vpop.xlane.xlu1 %606 }
 0x2fe   : > { %7393 = vst [vmem:[#allocation56_spill] sm:$0xff] %v4243_v43  ;;  %v4248_v38 = vpop.xlane.xlu0 %604  ;;  %vm649_vm11 = vcmp.ge.f32.partialorder %v3983_v45, %v4243_v43  ;;  %vm648_vm13 = vcmp.ge.f32.partialorder %v3985_v46, %v4246_v41 }
 0x2ff   : > { %7394 = vst [vmem:[#allocation57_spill] sm:$0xff] %v4246_v41  ;;  %v4253_v17 = vsel %vm649_vm11, %v7365_v3, 128  ;;  %vm647_vm12 = vcmp.ge.f32.partialorder %v3987_v47, %v4248_v38  ;;  %v4269_v45 = vsel %vm648_vm13, %v7365_v3, 128 }
 0x300   : > { %7395 = vst [vmem:[#allocation58_spill] sm:$0xff] %v4248_v38  ;;  %v1013_v25 = vshra.s32 %v4253_v17, 16  ;;  %v4261_v7 = vsel %vm647_vm12, %v7365_v3, 128  ;;  %v999_v47 = vshra.s32 %v4269_v45, 16 }
 0x301   : > { %v985_v28 = vshra.s32 %v4261_v7, 16  ;;  %7396 = vst [vmem:[#allocation59_spill] sm:$0xff] %v4269_v45 }
 0x302   : > { %v4266_v29 = vcvt.s32.f32 %v1013_v25  ;;  %v4296_v26 = vcvt.s32.f32 %v999_v47 }
 0x303   : > { %v4271_v43 = vcvt.s32.f32 %v985_v28 }
 0x304   : > { %1016 = vmin.xlane.f32.xlu0 %v4266_v29  ;;  %7400 = vst [vmem:[#allocation63_spill] sm:$0xff] %v4296_v26 }
 0x305   : > { %960 = vmin.xlane.f32.xlu1 %v4263_v24  ;;  %988 = vmin.xlane.f32.xlu2 %v4271_v43  ;;  %v4276_v46 = vpop.xlane.xlu2 %614  ;;  %v4279_v44 = vpop.xlane.xlu1 %612 }
 0x306   : > { %7397 = vst [vmem:[#allocation60_spill] sm:$0xff] %v4276_v46  ;;  %v4281_v41 = vpop.xlane.xlu0 %610  ;;  %vm652_vm14 = vcmp.ge.f32.partialorder %v3992_v48, %v4276_v46  ;;  %vm651_vm1 = vcmp.ge.f32.partialorder %v3994_v49, %v4279_v44 }
 0x307   : > { %7398 = vst [vmem:[#allocation61_spill] sm:$0xff] %v4279_v44  ;;  %v4286_v28 = vsel %vm652_vm14, %v7365_v3, 128  ;;  %vm650_vm15 = vcmp.ge.f32.partialorder %v3996_v50, %v4281_v41  ;;  %v4302_v48 = vsel %vm651_vm1, %v7365_v3, 128 }
 0x308   : > { %7399 = vst [vmem:[#allocation62_spill] sm:$0xff] %v4281_v41  ;;  %v1055_v25 = vshra.s32 %v4286_v28, 16  ;;  %v4294_v38 = vsel %vm650_vm15, %v7365_v3, 128  ;;  %v1041_v50 = vshra.s32 %v4302_v48, 16 }
 0x309   : > { %v1027_v55 = vshra.s32 %v4294_v38, 16  ;;  %7401 = vst [vmem:[#allocation64_spill] sm:$0xff] %v4302_v48 }
 0x30a   : > { %v4299_v45 = vcvt.s32.f32 %v1055_v25  ;;  %v4329_v48 = vcvt.s32.f32 %v1041_v50 }
 0x30b   : > { %v4304_v46 = vcvt.s32.f32 %v1027_v55 }
 0x30c   : > { %1058 = vmin.xlane.f32.xlu0 %v4299_v45  ;;  %7406 = vst [vmem:[#allocation69_spill] sm:$0xff] %v4329_v48 }
 0x30d   : > { %7402 = vst [vmem:[#allocation65_spill] sm:$0xff] %v4304_v46  ;;  %1002 = vmin.xlane.f32.xlu1 %v4296_v26  ;;  %1030 = vmin.xlane.f32.xlu2 %v4304_v46  ;;  %v4309_v49 = vpop.xlane.xlu2 %620  ;;  %v4312_v47 = vpop.xlane.xlu1 %618 }
 0x30e   : > { %7403 = vst [vmem:[#allocation66_spill] sm:$0xff] %v4309_v49  ;;  %v4314_v44 = vpop.xlane.xlu0 %616  ;;  %vm655_vm2 = vcmp.ge.f32.partialorder %v4001_v51, %v4309_v49  ;;  %vm654_vm4 = vcmp.ge.f32.partialorder %v4003_v52, %v4312_v47 }
 0x30f   : > { %7404 = vst [vmem:[#allocation67_spill] sm:$0xff] %v4312_v47  ;;  %v4319_v55 = vsel %vm655_vm2, %v7365_v3, 128  ;;  %vm653_vm3 = vcmp.ge.f32.partialorder %v4005_v53, %v4314_v44  ;;  %v4335_v51 = vsel %vm654_vm4, %v7365_v3, 128 }
 0x310   : > { %7405 = vst [vmem:[#allocation68_spill] sm:$0xff] %v4314_v44  ;;  %v1097_v25 = vshra.s32 %v4319_v55, 16  ;;  %v4327_v41 = vsel %vm653_vm3, %v7365_v3, 128  ;;  %v1083_v52 = vshra.s32 %v4335_v51, 16  ;;  %v718_v44 = vand.u32 65535, %v4025_v59 }
 0x311   : > { %v1069_v26 = vshra.s32 %v4327_v41, 16  ;;  %7407 = vst [vmem:[#allocation70_spill] sm:$0xff] %v4335_v51  ;;  %v690_v51 = vand.u32 65535, %v4031_v61  ;;  %v732_v59 = vand.u32 65535, %v4054_v22  ;;  %v704_v61 = vand.u32 65535, %v4061_v60 }
 0x312   : > { %v4332_v46 = vcvt.s32.f32 %v1097_v25  ;;  %v4350_v25 = vcvt.s32.f32 %v1083_v52  ;;  %v774_v60 = vand.u32 65535, %v4096_v13 }
 0x313   : > { %v4337_v49 = vcvt.s32.f32 %v1069_v26  ;;  %v692_v52 = vcvt.s32.f32 %v690_v51 }
 0x314   : > { %1100 = vmin.xlane.f32.xlu0 %v4332_v46  ;;  %7411 = vst [vmem:[#allocation74_spill] sm:$0xff] %v4350_v25 }
 0x315   : > { %7408 = vst [vmem:[#allocation71_spill] sm:$0xff] %v4337_v49  ;;  %1044 = vmin.xlane.f32.xlu1 %v4329_v48  ;;  %1072 = vmin.xlane.f32.xlu2 %v4337_v49  ;;  %v4359_v48 = vpop.xlane.xlu1 %624 }
 0x316   : > { %v4343_v53 = vpop.xlane.xlu0 %622 }
 0x317   : > { %7409 = vst [vmem:[#allocation72_spill] sm:$0xff] %v4343_v53  ;;  %vm656_vm5 = vcmp.ge.f32.partialorder %v4010_v54, %v4343_v53  ;;  %v720_v53 = vcvt.s32.f32 %v718_v44 }
 0x318   : > { %v4348_v50 = vsel %vm656_vm5, %v7365_v3, 128 }
 0x319   : > { %7410 = vst [vmem:[#allocation73_spill] sm:$0xff] %v4348_v50  ;;  %v1111_v26 = vshra.s32 %v4348_v50, 16 }
 0x31b   : > { %v4353_v47 = vcvt.s32.f32 %v1111_v26 }
 0x31d   : > { %7412 = vst [vmem:[#allocation75_spill] sm:$0xff] %v4353_v47  ;;  %1086 = vmin.xlane.f32.xlu1 %v4350_v25  ;;  %1114 = vmin.xlane.f32.xlu2 %v4353_v47  ;;  %v760_v25 = vand.u32 65535, %v4051_v21 }
 0x31f   : > { %v762_v49 = vcvt.s32.f32 %v760_v25 }
 0x33f   : > { %v4361_v54 = vpop.xlane.xlu0 %722 }
 0x340   : > { %7413 = vst [vmem:[#allocation76_spill] sm:$0xff] %v4361_v54  ;;  %v4363_v3 = vpop.xlane.xlu2 %694  ;;  %vm724_vm6 = vcmp.eq.f32.partialorder %v4034_v63, %v4361_v54  ;;  %v734_v63 = vcvt.s32.f32 %v732_v59  ;;  %v706_v54 = vcvt.s32.f32 %v704_v61  ;;  %v844_v59 = vand.u32 65535, %v4121_v11 }
 0x341   : > { %vm696_vm7 = vcmp.eq.f32.partialorder %v4036_v0, %v4363_v3  ;;  %v725_v26 = vsel %vm724_vm6, %v720_v53, inf  ;;  %v802_v53 = vand.u32 65535, %v4087_v23 }
 0x342   : > { %v697_v47 = vsel %vm696_vm7, %v692_v52, inf  ;;  %726 = vmin.xlane.f32.xlu1 %v725_v26  ;;  %v776_v52 = vcvt.s32.f32 %v774_v60  ;;  %v886_v60 = vand.u32 65535, %v4154_v2 }
 0x343   : > { %698 = vmin.xlane.f32.xlu0 %v697_v47  ;;  %v746_v47 = vand.u32 65535, %v4074_v18  ;;  %v804_v26 = vcvt.s32.f32 %v802_v53 }
 0x347   : > { %v4372_v44 = vpop.xlane.xlu0 %764 }
 0x348   : > { %v4374_v50 = vpop.xlane.xlu2 %736  ;;  %v4376_v51 = vpop.xlane.xlu1 %708  ;;  %vm766_vm8 = vcmp.eq.f32.partialorder %v4066_v62, %v4372_v44 }
 0x349   : > { %vm738_vm9 = vcmp.eq.f32.partialorder %v4068_v20, %v4374_v50  ;;  %vm710_vm10 = vcmp.eq.f32.partialorder %v4070_v19, %v4376_v51  ;;  %v767_v22 = vsel %vm766_vm8, %v762_v49, inf  ;;  %v748_v19 = vcvt.s32.f32 %v746_v47 }
 0x34a   : > { %v739_v0 = vsel %vm738_vm9, %v734_v63, inf  ;;  %v711_v21 = vsel %vm710_vm10, %v706_v54, inf  ;;  %768 = vmin.xlane.f32.xlu1 %v767_v22  ;;  %v816_v49 = vand.u32 65535, %v4129_v5  ;;  %v788_v54 = vand.u32 65535, %v4102_v30 }
 0x34b   : > { %740 = vmin.xlane.f32.xlu0 %v739_v0  ;;  %712 = vmin.xlane.f32.xlu2 %v711_v21  ;;  %v846_v0 = vcvt.s32.f32 %v844_v59  ;;  %v858_v21 = vand.u32 65535, %v4162_v27  ;;  %v830_v22 = vand.u32 65535, %v4137_v33  ;;  %v914_v59 = vand.u32 65535, %v4203_v39 }
 0x34c   : > { %v818_v63 = vcvt.s32.f32 %v816_v49 }
 0x34d   : > { %v860_v53 = vcvt.s32.f32 %v858_v21  ;;  %v1012_v21 = vand.u32 65535, %v4253_v17 }
 0x34f   : > { %v4387_v25 = vpop.xlane.xlu0 %806 }
 0x350   : > { %v4389_v62 = vpop.xlane.xlu1 %750  ;;  %v4391_v20 = vpop.xlane.xlu2 %778  ;;  %vm808_vm11 = vcmp.eq.f32.partialorder %v4099_v10, %v4387_v25 }
 0x351   : > { %vm780_vm12 = vcmp.eq.f32.partialorder %v4106_v8, %v4391_v20  ;;  %vm752_vm13 = vcmp.eq.f32.partialorder %v4104_v9, %v4389_v62  ;;  %v809_v23 = vsel %vm808_vm11, %v804_v26, inf  ;;  %v790_v9 = vcvt.s32.f32 %v788_v54 }
 0x352   : > { %v781_v13 = vsel %vm780_vm12, %v776_v52, inf  ;;  %v753_v18 = vsel %vm752_vm13, %v748_v19, inf  ;;  %810 = vmin.xlane.f32.xlu1 %v809_v23  ;;  %v888_v52 = vcvt.s32.f32 %v886_v60  ;;  %v900_v19 = vand.u32 65535, %v4195_v6 }
 0x353   : > { %782 = vmin.xlane.f32.xlu0 %v781_v13  ;;  %754 = vmin.xlane.f32.xlu2 %v753_v18  ;;  %v872_v26 = vand.u32 65535, %v4170_v36  ;;  %v928_v13 = vand.u32 65535, %v4187_v14  ;;  %v942_v54 = vand.u32 65535, %v4228_v35 }
 0x354   : > { %v902_v23 = vcvt.s32.f32 %v900_v19 }
 0x355   : > { %v930_v49 = vcvt.s32.f32 %v928_v13 }
 0x357   : > { %v4402_v61 = vpop.xlane.xlu0 %848 }
 0x358   : > { %v4404_v10 = vpop.xlane.xlu1 %792  ;;  %v4406_v8 = vpop.xlane.xlu2 %820  ;;  %vm850_vm14 = vcmp.eq.f32.partialorder %v4134_v16, %v4402_v61 }
 0x359   : > { %vm822_vm15 = vcmp.eq.f32.partialorder %v4139_v31, %v4406_v8  ;;  %vm794_vm1 = vcmp.eq.f32.partialorder %v4131_v4, %v4404_v10  ;;  %v851_v11 = vsel %vm850_vm14, %v846_v0, inf  ;;  %v832_v4 = vcvt.s32.f32 %v830_v22 }
 0x35a   : > { %v823_v5 = vsel %vm822_vm15, %v818_v63, inf  ;;  %v795_v30 = vsel %vm794_vm1, %v790_v9, inf  ;;  %852 = vmin.xlane.f32.xlu1 %v851_v11  ;;  %v970_v63 = vand.u32 65535, %v4220_v57  ;;  %v944_v0 = vcvt.s32.f32 %v942_v54 }
 0x35b   : > { %824 = vmin.xlane.f32.xlu0 %v823_v5  ;;  %796 = vmin.xlane.f32.xlu2 %v795_v30  ;;  %v984_v30 = vand.u32 65535, %v4261_v7  ;;  %v956_v11 = vand.u32 65535, %v4236_v42  ;;  %v7238_v22 = vmov 0   ;;  %v1014_v7 = vcvt.s32.f32 %v1012_v21 }
 0x35c   : > { %v972_v5 = vcvt.s32.f32 %v970_v63  ;;  %3455 = vset.pattern.permute.xlu0 %v7238_v22  ;;  %3457 = vset.pattern.permute.xlu1 %v7238_v22  ;;  %v1096_v54 = vand.u32 65535, %v4319_v55 }
 0x35d   : > { %3456 = vset.pattern.permute.xlu2 %v7238_v22  ;;  %v986_v60 = vcvt.s32.f32 %v984_v30 }
 0x35f   : > { %v4417_v47 = vpop.xlane.xlu0 %890 }
 0x360   : > { %v4419_v16 = vpop.xlane.xlu1 %834  ;;  %v4421_v31 = vpop.xlane.xlu2 %862  ;;  %vm892_vm2 = vcmp.eq.f32.partialorder %v4167_v1, %v4417_v47 }
 0x361   : > { %vm864_vm3 = vcmp.eq.f32.partialorder %v4172_v34, %v4421_v31  ;;  %vm836_vm4 = vcmp.eq.f32.partialorder %v4164_v15, %v4419_v16  ;;  %v893_v2 = vsel %vm892_vm2, %v888_v52, inf  ;;  %v874_v15 = vcvt.s32.f32 %v872_v26 }
 0x362   : > { %v865_v27 = vsel %vm864_vm3, %v860_v53, inf  ;;  %v837_v33 = vsel %vm836_vm4, %v832_v4, inf  ;;  %894 = vmin.xlane.f32.xlu1 %v893_v2  ;;  %v958_v53 = vcvt.s32.f32 %v956_v11  ;;  %v1026_v52 = vand.u32 65535, %v4294_v38  ;;  %v7416_v38 = vld [vmem:[#allocation63_spill] sm:$0xff]  ;;  %v7421_v11 = vld [vmem:[#allocation13_spill] sm:$0xff] }
 0x363   : > { %866 = vmin.xlane.f32.xlu0 %v865_v27  ;;  %838 = vmin.xlane.f32.xlu2 %v837_v33  ;;  %v7414_v27 = vld [vmem:[#allocation59_spill] sm:$0xff]  ;;  %v1054_v2 = vand.u32 65535, %v4286_v28 }
 0x364   : > { %v998_v33 = vand.u32 65535, %v7414_v27  ;;  %v1028_v26 = vcvt.s32.f32 %v1026_v52 }
 0x365   : > { %v1056_v13 = vcvt.s32.f32 %v1054_v2  ;;  %v7425_v2 = vld [vmem:[#allocation75_spill] sm:$0xff] }
 0x367   : > { %v4432_v18 = vpop.xlane.xlu0 %932 }
 0x368   : > { %v4434_v1 = vpop.xlane.xlu1 %876  ;;  %v4436_v34 = vpop.xlane.xlu2 %904  ;;  %vm934_vm5 = vcmp.eq.f32.partialorder %v4200_v12, %v4432_v18 }
 0x369   : > { %vm906_vm6 = vcmp.eq.f32.partialorder %v4205_v37, %v4436_v34  ;;  %vm878_vm7 = vcmp.eq.f32.partialorder %v4197_v56, %v4434_v1  ;;  %v935_v14 = vsel %vm934_vm5, %v930_v49, inf  ;;  %v916_v56 = vcvt.s32.f32 %v914_v59 }
 0x36a   : > { %v907_v6 = vsel %vm906_vm6, %v902_v23, inf  ;;  %v879_v36 = vsel %vm878_vm7, %v874_v15, inf  ;;  %936 = vmin.xlane.f32.xlu1 %v935_v14  ;;  %v7415_v23 = vld [vmem:[#allocation65_spill] sm:$0xff]  ;;  %v1068_v14 = vand.u32 65535, %v4327_v41 }
 0x36b   : > { %908 = vmin.xlane.f32.xlu0 %v907_v6  ;;  %880 = vmin.xlane.f32.xlu2 %v879_v36  ;;  %v7417_v6 = vld [vmem:[#allocation64_spill] sm:$0xff]  ;;  %v7420_v41 = vld [vmem:[#allocation69_spill] sm:$0xff] }
 0x36c   : > { %v1040_v36 = vand.u32 65535, %v7417_v6 }
 0x36f   : > { %v4447_v9 = vpop.xlane.xlu0 %974 }
 0x370   : > { %v4449_v12 = vpop.xlane.xlu1 %918  ;;  %v4451_v37 = vpop.xlane.xlu2 %946  ;;  %vm976_vm8 = vcmp.eq.f32.partialorder %v4233_v32, %v4447_v9 }
 0x371   : > { %vm948_vm9 = vcmp.eq.f32.partialorder %v4238_v40, %v4451_v37  ;;  %vm920_vm10 = vcmp.eq.f32.partialorder %v4230_v58, %v4449_v12  ;;  %v977_v57 = vsel %vm976_vm8, %v972_v5, inf  ;;  %v1098_v5 = vcvt.s32.f32 %v1096_v54 }
 0x372   : > { %v949_v35 = vsel %vm948_vm9, %v944_v0, inf  ;;  %v921_v39 = vsel %vm920_vm10, %v916_v56, inf  ;;  %978 = vmin.xlane.f32.xlu1 %v977_v57  ;;  %v1070_v56 = vcvt.s32.f32 %v1068_v14  ;;  %v953_v22 = vcvt.f32.s32 %v4451_v37 }
 0x373   : > { %950 = vmin.xlane.f32.xlu0 %v949_v35  ;;  %922 = vmin.xlane.f32.xlu2 %v921_v39  ;;  %v7418_v35 = vld [vmem:[#allocation34_spill] sm:$0xff]  ;;  %v7419_v39 = vld [vmem:[#allocation71_spill] sm:$0xff] }
 0x374   : > { %vm657_vm3 = vcmp.ge.f32.partialorder %v7418_v35, %v4359_v48 }
 0x375   : > { %v4510_v21 = vsel %vm657_vm3, %v7421_v11, 128 }
 0x377   : > { %v4465_v32 = vpop.xlane.xlu0 %1016 }
 0x378   : > { %v4467_v58 = vpop.xlane.xlu1 %960  ;;  %v4469_v40 = vpop.xlane.xlu2 %988  ;;  %vm1018_vm11 = vcmp.eq.f32.partialorder %v4266_v29, %v4465_v32 }
 0x379   : > { %vm990_vm12 = vcmp.eq.f32.partialorder %v4271_v43, %v4469_v40  ;;  %vm962_vm13 = vcmp.eq.f32.partialorder %v4263_v24, %v4467_v58  ;;  %v1019_v4 = vsel %vm1018_vm11, %v1014_v7, inf  ;;  %v1000_v24 = vcvt.s32.f32 %v998_v33  ;;  %v7424_v33 = vld [vmem:[#allocation74_spill] sm:$0xff] }
 0x37a   : > { %v991_v42 = vsel %vm990_vm12, %v986_v60, inf  ;;  %v963_v17 = vsel %vm962_vm13, %v958_v53, inf  ;;  %1020 = vmin.xlane.f32.xlu1 %v1019_v4  ;;  %v7422_v60 = vld [vmem:[#allocation70_spill] sm:$0xff]  ;;  %v7423_v53 = vld [vmem:[#allocation73_spill] sm:$0xff] }
 0x37b   : > { %992 = vmin.xlane.f32.xlu0 %v991_v42  ;;  %964 = vmin.xlane.f32.xlu2 %v963_v17  ;;  %v1110_v7 = vand.u32 65535, %v7423_v53  ;;  %v1125_v42 = vshra.s32 %v4510_v21, 16 }
 0x37d   : > { %v1112_v27 = vcvt.s32.f32 %v1110_v7 }
 0x37f   : > { %v4480_v19 = vpop.xlane.xlu0 %1058 }
 0x380   : > { %v4482_v29 = vpop.xlane.xlu1 %1002  ;;  %v4484_v43 = vpop.xlane.xlu2 %1030  ;;  %vm1060_vm14 = vcmp.eq.f32.partialorder %v4299_v45, %v4480_v19  ;;  %v1042_v45 = vcvt.s32.f32 %v1040_v36  ;;  %v4561_v36 = vld [vmem:[%s7169_s4 + $0x40] sm:$0xff] }
 0x381   : > { %vm1032_vm15 = vcmp.eq.f32.partialorder %v7415_v23, %v4484_v43  ;;  %vm1004_vm1 = vcmp.eq.f32.partialorder %v7416_v38, %v4482_v29  ;;  %v1061_v49 = vsel %vm1060_vm14, %v1056_v13, inf  ;;  %v4523_v13 = vcvt.s32.f32 %v1125_v42  ;;  %v4529_v23 = vld [vmem:[%s7169_s4] sm:$0xff]  ;;  %v4535_v38 = vld [vmem:[%s7169_s4 + $0x10] sm:$0xff] }
 0x382   : > { %v1033_v15 = vsel %vm1032_vm15, %v1028_v26, inf  ;;  %v1005_v28 = vsel %vm1004_vm1, %v1000_v24, inf  ;;  %1062 = vmin.xlane.f32.xlu1 %v1061_v49  ;;  %v4552_v49 = vld [vmem:[%s7169_s4 + $0x30] sm:$0xff]  ;;  %v743_v42 = vcvt.f32.s32 %v4374_v50 }
 0x383   : > { %1034 = vmin.xlane.f32.xlu0 %v1033_v15  ;;  %1006 = vmin.xlane.f32.xlu2 %v1005_v28  ;;  %v4540_v15 = vld [vmem:[%s7169_s4 + $0x18] sm:$0xff]  ;;  %v4547_v28 = vld [vmem:[%s7169_s4 + $0x28] sm:$0xff] }
 0x387   : > { %v4495_v59 = vpop.xlane.xlu0 %1100 }
 0x388   : > { %v4497_v63 = vpop.xlane.xlu1 %1044  ;;  %v4499_v0 = vpop.xlane.xlu2 %1072  ;;  %vm1102_vm2 = vcmp.eq.f32.partialorder %v4332_v46, %v4495_v59  ;;  %v1082_v46 = vand.u32 65535, %v7422_v60 }
 0x389   : > { %vm1074_vm4 = vcmp.eq.f32.partialorder %v7419_v39, %v4499_v0  ;;  %vm1046_vm5 = vcmp.eq.f32.partialorder %v7420_v41, %v4497_v63  ;;  %v1103_v30 = vsel %vm1102_vm2, %v1098_v5, inf }
 0x38a   : > { %v1075_v55 = vsel %vm1074_vm4, %v1070_v56, inf  ;;  %v1047_v57 = vsel %vm1046_vm5, %v1042_v45, inf  ;;  %1104 = vmin.xlane.f32.xlu1 %v1103_v30  ;;  %v1084_v52 = vcvt.s32.f32 %v1082_v46  ;;  %v715_v46 = vcvt.f32.s32 %v4376_v51 }
 0x38b   : > { %1076 = vmin.xlane.f32.xlu0 %v1075_v55  ;;  %1048 = vmin.xlane.f32.xlu2 %v1047_v57  ;;  %v701_v55 = vcvt.f32.s32 %v4363_v3 }
 0x38d   : > { %v702_v30 = vshll.u32 %v701_v55, 16  ;;  %v757_v55 = vcvt.f32.s32 %v4389_v62 }
 0x390   : > { %v4515_v17 = vpop.xlane.xlu1 %1086  ;;  %v4517_v4 = vpop.xlane.xlu2 %1114 }
 0x391   : > { %vm1088_vm6 = vcmp.eq.f32.partialorder %v7424_v33, %v4515_v17  ;;  %vm1116_vm7 = vcmp.eq.f32.partialorder %v7425_v2, %v4517_v4  ;;  %v716_v33 = vshll.u32 %v715_v46, 16 }
 0x392   : > { %v1089_v26 = vsel %vm1088_vm6, %v1084_v52, inf  ;;  %v1117_v24 = vsel %vm1116_vm7, %v1112_v27, inf  ;;  %1128 = vmin.xlane.f32.xlu1 %v4523_v13 }
 0x393   : > { %1090 = vmin.xlane.f32.xlu2 %v1089_v26  ;;  %1118 = vmin.xlane.f32.xlu0 %v1117_v24  ;;  %v744_v26 = vshll.u32 %v743_v42, 16 }
 0x3a7   : > { %1874 = vperm.xlu0 %3455, %v4529_v23  }
 0x3ab   : > { %1880 = vperm.xlu1 %3457, %v4535_v38  }
 0x3af   : > { %1883 = vperm.xlu0 %3455, %v4540_v15  }
 0x3b3   : > { %1889 = vperm.xlu1 %3457, %v4547_v28  }
 0x3b5   : > { %v4555_v6 = vpop.xlane.xlu1 %726 }
 0x3b6   : > { %v699_v14 = vpop.xlane.xlu0 %698 }
 0x3b7   : > { %1892 = vperm.xlu0 %3455, %v4552_v49   ;;  %v700_v57 = vcvt.f32.s32 %v699_v14  ;;  %v7428_v14 = vld [vmem:[#allocation30_spill] sm:$0xff] }
 0x3b9   : > { %v4574_v53 = vadd.s32 %v702_v30, %v700_v57  ;;  %v758_v30 = vshll.u32 %v757_v55, 16 }
 0x3bb   : > { %1898 = vperm.xlu1 %3457, %v4561_v36   ;;  %7426 = vst [vmem:[#allocation59_spill] sm:$0xff] %v4574_v53  ;;  %vm1138_vm8 = vcmp.eq.s32.totalorder %v7421_v11, %v4574_v53  ;;  %v7535_v53 = vld [vmem:[#allocation25_spill] sm:$0xff] }
 0x3bc   : > { %v1170_v51 = vsel %vm1138_vm8, -1e+30, %v7428_v14 }
 0x3bd   : > { %v4564_v54 = vpop.xlane.xlu1 %768 }
 0x3be   : > { %v713_v45 = vpop.xlane.xlu2 %712  ;;  %v741_v5 = vpop.xlane.xlu0 %740 }
 0x3bf   : > { %v714_v52 = vcvt.f32.s32 %v713_v45  ;;  %v742_v2 = vcvt.f32.s32 %v741_v5  ;;  %v785_v45 = vcvt.f32.s32 %v4391_v20 }
 0x3c1   : > { %v4581_v24 = vadd.s32 %v716_v33, %v714_v52  ;;  %v4588_v50 = vadd.s32 %v744_v26, %v742_v2  ;;  %v7430_v52 = vld [vmem:[#allocation32_spill] sm:$0xff]  ;;  %v786_v33 = vshll.u32 %v785_v45, 16  ;;  %v799_v26 = vcvt.f32.s32 %v4404_v10 }
 0x3c3   : > { %7427 = vst [vmem:[#allocation65_spill] sm:$0xff] %v4581_v24  ;;  %vm1139_vm9 = vcmp.eq.s32.totalorder %v7421_v11, %v4581_v24  ;;  %vm1141_vm10 = vcmp.eq.s32.totalorder %v7421_v11, %v4588_v50  ;;  %v800_v45 = vshll.u32 %v799_v26, 16  ;;  %v869_v26 = vcvt.f32.s32 %v4421_v31  ;;  %v3485_v24 = vld [vmem:[#allocation2 + $0xb0] sm:$0xff] }
 0x3c4   : > { %7429 = vst [vmem:[#allocation63_spill] sm:$0xff] %v4588_v50  ;;  %v1171_v62 = vsel %vm1139_vm9, -1e+30, %v7430_v52  ;;  %v7532_v50 = vld [vmem:[#allocation22_spill] sm:$0xff] }
 0x3c5   : > { %v4566_v56 = vpop.xlane.xlu1 %810 }
 0x3c6   : > { %v755_v39 = vpop.xlane.xlu2 %754  ;;  %v783_v41 = vpop.xlane.xlu0 %782 }
 0x3c7   : > { %v756_v5 = vcvt.f32.s32 %v755_v39  ;;  %v784_v46 = vcvt.f32.s32 %v783_v41  ;;  %v7432_v39 = vld [vmem:[#allocation31_spill] sm:$0xff] }
 0x3c8   : > { %v1173_v41 = vsel %vm1141_vm10, -1e+30, %v7432_v39  ;;  %v841_v39 = vcvt.f32.s32 %v4419_v16  ;;  %v870_v16 = vshll.u32 %v869_v26, 16 }
 0x3c9   : > { %v4601_v20 = vadd.s32 %v758_v30, %v756_v5  ;;  %v4608_v14 = vadd.s32 %v786_v33, %v784_v46  ;;  %v7434_v30 = vld [vmem:[#allocation29_spill] sm:$0xff] }
 0x3ca   : > { %v7436_v33 = vld [vmem:[#allocation33_spill] sm:$0xff] }
 0x3cb   : > { %7431 = vst [vmem:[#allocation64_spill] sm:$0xff] %v4601_v20  ;;  %vm1142_vm11 = vcmp.eq.s32.totalorder %v7421_v11, %v4601_v20  ;;  %vm1144_vm12 = vcmp.eq.s32.totalorder %v7421_v11, %v4608_v14  ;;  %v7534_v20 = vld [vmem:[#allocation24_spill] sm:$0xff] }
 0x3cc   : > { %7433 = vst [vmem:[#allocation34_spill] sm:$0xff] %v4608_v14  ;;  %v1174_v10 = vsel %vm1142_vm11, -1e+30, %v7434_v30  ;;  %v7529_v14 = vld [vmem:[#allocation19_spill] sm:$0xff] }
 0x3cd   : > { %v4568_v35 = vpop.xlane.xlu1 %852 }
 0x3ce   : > { %v797_v7 = vpop.xlane.xlu2 %796  ;;  %v825_v27 = vpop.xlane.xlu0 %824 }
 0x3cf   : > { %v798_v55 = vcvt.f32.s32 %v797_v7  ;;  %v826_v52 = vcvt.f32.s32 %v825_v27  ;;  %v1176_v27 = vsel %vm1144_vm12, -1e+30, %v7436_v33 }
 0x3d5   : > { %v4571_v60 = vpop.xlane.xlu1 %894 }
 0x3d6   : > { %v839_v57 = vpop.xlane.xlu2 %838  ;;  %v867_v42 = vpop.xlane.xlu0 %866 }
 0x3d7   : > { %v840_v30 = vcvt.f32.s32 %v839_v57  ;;  %v3459_v57 = vld [vmem:[#allocation2 + $0x88] sm:$0xff] }
 0x3dd   : > { %v4579_v3 = vpop.xlane.xlu1 %936 }
 0x3de   : > { %v881_v5 = vpop.xlane.xlu2 %880  ;;  %v909_v7 = vpop.xlane.xlu0 %908 }
 0x3df   : > { %v882_v26 = vcvt.f32.s32 %v881_v5 }
 0x3e1   : > { %1202 = vmax.xlane.f32.xlu0 %v1170_v51  ;;  %v827_v51 = vcvt.f32.s32 %v4406_v8  ;;  %v4621_v8 = vadd.s32 %v800_v45, %v798_v55  ;;  %v868_v55 = vcvt.f32.s32 %v867_v42  ;;  %v3458_v45 = vld [vmem:[#allocation2 + $0x48] sm:$0xff] }
 0x3e3   : > { %7435 = vst [vmem:[#allocation71_spill] sm:$0xff] %v4621_v8  ;;  %vm1145_vm13 = vcmp.eq.s32.totalorder %v7421_v11, %v4621_v8  ;;  %v7531_v8 = vld [vmem:[#allocation21_spill] sm:$0xff] }
 0x3e5   : > { %v4599_v2 = vpop.xlane.xlu1 %978  ;;  %1204 = vmax.xlane.f32.xlu1 %v1171_v62  ;;  %v828_v62 = vshll.u32 %v827_v51, 16  ;;  %v842_v51 = vshll.u32 %v841_v39, 16 }
 0x3e6   : > { %v923_v31 = vpop.xlane.xlu2 %922  ;;  %v951_v39 = vpop.xlane.xlu0 %950 }
 0x3e9   : > { %1208 = vmax.xlane.f32.xlu0 %v1173_v41  ;;  %v4628_v41 = vadd.s32 %v828_v62, %v826_v52  ;;  %v4640_v52 = vadd.s32 %v842_v51, %v840_v30  ;;  %v883_v62 = vcvt.f32.s32 %v4434_v1  ;;  %v910_v51 = vcvt.f32.s32 %v909_v7 }
 0x3ea   : > { %v925_v7 = vcvt.f32.s32 %v4449_v12 }
 0x3eb   : > { %7437 = vst [vmem:[#allocation69_spill] sm:$0xff] %v4628_v41  ;;  %vm1147_vm14 = vcmp.eq.s32.totalorder %v7421_v11, %v4628_v41  ;;  %vm1148_vm15 = vcmp.eq.s32.totalorder %v7421_v11, %v4640_v52  ;;  %v884_v30 = vshll.u32 %v883_v62, 16 }
 0x3ec   : > { %7438 = vst [vmem:[#allocation70_spill] sm:$0xff] %v4640_v52  ;;  %v1179_v42 = vsel %vm1147_vm14, -1e+30, %v3459_v57  ;;  %v7528_v52 = vld [vmem:[#allocation18_spill] sm:$0xff] }
 0x3ed   : > { %v4619_v46 = vpop.xlane.xlu1 %1020  ;;  %1210 = vmax.xlane.f32.xlu1 %v1174_v10  ;;  %v1177_v10 = vsel %vm1145_vm13, -1e+30, %v3458_v45  ;;  %v911_v45 = vcvt.f32.s32 %v4436_v34  ;;  %v3461_v34 = vld [vmem:[#allocation2 + $0x60] sm:$0xff] }
 0x3ee   : > { %v965_v62 = vpop.xlane.xlu2 %964 }
 0x3ef   : > { %v912_v57 = vshll.u32 %v911_v45, 16  ;;  %v1124_v45 = vand.u32 65535, %v4510_v21  ;;  %v3463_v21 = vld [vmem:[#allocation2 + $0x78] sm:$0xff] }
 0x3f1   : > { %1214 = vmax.xlane.f32.xlu0 %v1176_v27  ;;  %v4646_v27 = vadd.s32 %v870_v16, %v868_v55  ;;  %v4658_v16 = vadd.s32 %v884_v30, %v882_v26  ;;  %v993_v26 = vpop.xlane.xlu0 %992  ;;  %v926_v30 = vshll.u32 %v925_v7, 16 }
 0x3f3   : > { %7439 = vst [vmem:[#allocation73_spill] sm:$0xff] %v4646_v27  ;;  %vm7275_vm1 = vcmp.eq.s32.totalorder %v7421_v11, %v4646_v27  ;;  %vm7256_vm2 = vcmp.eq.s32.totalorder %v7421_v11, %v4658_v16 }
 0x3f4   : > { %7440 = vst [vmem:[#allocation74_spill] sm:$0xff] %v4658_v16  ;;  %v1182_v5 = vsel %vm7275_vm1, -1e+30, %v3461_v34  ;;  %v3462_v34 = vld [vmem:[#allocation2 + $0xf0] sm:$0xff]  ;;  %vm1303_vm1 = vcmp.lt.s32.totalorder %v4547_v28, 0 }
 0x3f5   : > { %v4638_v33 = vpop.xlane.xlu1 %1062  ;;  %1216 = vmax.xlane.f32.xlu1 %v1177_v10  ;;  %v3460_v10 = vld [vmem:[#allocation2 + $0xe8] sm:$0xff]  ;;  %v1183_v12 = vsel %vm7256_vm2, -1e+30, %v3462_v34 }
 0x3f6   : > { %v1180_v1 = vsel %vm1148_vm15, -1e+30, %v3460_v10  ;;  %v924_v10 = vcvt.f32.s32 %v923_v31  ;;  %v1126_v31 = vcvt.s32.f32 %v1124_v45  ;;  %v966_v45 = vcvt.f32.s32 %v965_v62 }
 0x3f9   : > { %1220 = vmax.xlane.f32.xlu0 %v1179_v42  ;;  %v4664_v42 = vadd.s32 %v912_v57, %v910_v51  ;;  %v954_v51 = vshll.u32 %v953_v22, 16  ;;  %v4677_v57 = vadd.s32 %v926_v30, %v924_v10  ;;  %v995_v22 = vcvt.f32.s32 %v4469_v40  ;;  %v1007_v10 = vpop.xlane.xlu2 %1006  ;;  %v3465_v40 = vld [vmem:[#allocation2 + $0x40] sm:$0xff] }
 0x3fa   : > { %v994_v30 = vcvt.f32.s32 %v993_v26  ;;  %v1009_v26 = vcvt.f32.s32 %v4482_v29 }
 0x3fb   : > { %7441 = vst [vmem:[#allocation75_spill] sm:$0xff] %v4664_v42  ;;  %vm7254_vm3 = vcmp.eq.s32.totalorder %v7421_v11, %v4664_v42  ;;  %vm7253_vm5 = vcmp.eq.s32.totalorder %v7421_v11, %v4677_v57 }
 0x3fc   : > { %7442 = vst [vmem:[#allocation30_spill] sm:$0xff] %v4677_v57 }
 0x3fd   : > { %1222 = vmax.xlane.f32.xlu1 %v1180_v1  ;;  %v4656_v55 = vpop.xlane.xlu1 %1104  ;;  %v952_v1 = vcvt.f32.s32 %v951_v39  ;;  %v1185_v39 = vsel %vm7254_vm3, -1e+30, %v3463_v21  ;;  %v3464_v21 = vld [vmem:[#allocation2 + $0x38] sm:$0xff] }
 0x3ff   : > { %v4685_v34 = vadd.s32 %v954_v51, %v952_v1  ;;  %v996_v1 = vshll.u32 %v995_v22, 16 }
 0x401   : > { %1226 = vmax.xlane.f32.xlu0 %v1182_v5  ;;  %v967_v5 = vcvt.f32.s32 %v4467_v58  ;;  %7443 = vst [vmem:[#allocation32_spill] sm:$0xff] %v4685_v34  ;;  %vm7241_vm6 = vcmp.eq.s32.totalorder %v7421_v11, %v4685_v34  ;;  %v1186_v58 = vsel %vm7253_vm5, -1e+30, %v3464_v21 }
 0x402   : > { %v1188_v62 = vsel %vm7241_vm6, -1e+30, %v3465_v40  ;;  %v1079_v40 = vcvt.f32.s32 %v4499_v0  ;;  %v4730_v0 = vld [vmem:[%s7169_s4 + $0x8] sm:$0xff] }
 0x405   : > { %1228 = vmax.xlane.f32.xlu1 %v1183_v12  ;;  %v4675_v37 = vpop.xlane.xlu1 %1128  ;;  %v1035_v12 = vpop.xlane.xlu0 %1034 }
 0x406   : > { %vm1130_vm4 = vcmp.eq.f32.partialorder %v4523_v13, %v4675_v37  ;;  %v968_v13 = vshll.u32 %v967_v5, 16  ;;  %v1008_v5 = vcvt.f32.s32 %v1007_v10  ;;  %v1036_v22 = vcvt.f32.s32 %v1035_v12  ;;  %v3467_v10 = vld [vmem:[#allocation2 + $0x90] sm:$0xff] }
 0x407   : > { %v1131_v7 = vsel %vm1130_vm4, %v1126_v31, inf  ;;  %v4701_v31 = vadd.s32 %v996_v1, %v994_v30  ;;  %v1051_v12 = vcvt.f32.s32 %v4497_v63  ;;  %v1080_v63 = vshll.u32 %v1079_v40, 16 }
 0x408   : > { %1132 = vmin.xlane.f32.xlu2 %v1131_v7  ;;  %v4695_v51 = vadd.s32 %v968_v13, %v966_v45  ;;  %v1010_v7 = vshll.u32 %v1009_v26, 16  ;;  %v1049_v45 = vpop.xlane.xlu2 %1048  ;;  %v3466_v13 = vld [vmem:[#allocation2 + $0xc8] sm:$0xff] }
 0x409   : > { %1232 = vmax.xlane.f32.xlu0 %v1185_v39  ;;  %7445 = vst [vmem:[#allocation29_spill] sm:$0xff] %v4701_v31  ;;  %v1037_v39 = vcvt.f32.s32 %v4484_v43  ;;  %vm7243_vm4 = vcmp.eq.s32.totalorder %v7421_v11, %v4701_v31  ;;  %v1052_v26 = vshll.u32 %v1051_v12, 16 }
 0x40a   : > { %7444 = vst [vmem:[#allocation31_spill] sm:$0xff] %v4695_v51  ;;  %vm7252_vm7 = vcmp.eq.s32.totalorder %v7421_v11, %v4695_v51  ;;  %v4711_v30 = vadd.s32 %v1010_v7, %v1008_v5  ;;  %v3468_v5 = vld [vmem:[#allocation2 + $0x70] sm:$0xff] }
 0x40b   : > { %v1189_v29 = vsel %vm7252_vm7, -1e+30, %v3466_v13  ;;  %v1038_v21 = vshll.u32 %v1037_v39, 16  ;;  %v3469_v13 = vld [vmem:[#allocation2 + $0xa8] sm:$0xff] }
 0x40c   : > { %7446 = vst [vmem:[#allocation33_spill] sm:$0xff] %v4711_v30  ;;  %vm7242_vm0 = vcmp.eq.s32.totalorder %v7421_v11, %v4711_v30 }
 0x40d   : > { %1234 = vmax.xlane.f32.xlu1 %v1186_v58  ;;  %v1077_v43 = vpop.xlane.xlu0 %1076  ;;  %v1191_v58 = vsel %vm7243_vm4, -1e+30, %v3467_v10  ;;  %v4717_v1 = vadd.s32 %v1038_v21, %v1036_v22  ;;  %v1192_v7 = vsel %vm7242_vm0, -1e+30, %v3468_v5  ;;  %v1093_v21 = vcvt.f32.s32 %v4515_v17 }
 0x40e   : > { %v1078_v39 = vcvt.f32.s32 %v1077_v43 }
 0x40f   : > { %7447 = vst [vmem:[#allocation77_spill] sm:$0xff] %v4717_v1  ;;  %vm7245_vm6 = vcmp.eq.s32.totalorder %v7421_v11, %v4717_v1  ;;  %v1094_v40 = vshll.u32 %v1093_v21, 16  ;;  %v4772_v21 = vld [vmem:[%s7169_s4 + $0x38] sm:$0xff] }
 0x410   : > { %v4738_v43 = vadd.s32 %v1080_v63, %v1078_v39 }
 0x411   : > { %1238 = vmax.xlane.f32.xlu0 %v1188_v62  ;;  %v1050_v62 = vcvt.f32.s32 %v1049_v45  ;;  %v1091_v45 = vpop.xlane.xlu2 %1090 }
 0x412   : > { %7449 = vst [vmem:[#allocation79_spill] sm:$0xff] %v4738_v43  ;;  %v1092_v12 = vcvt.f32.s32 %v1091_v45  ;;  %vm7249_vm4 = vcmp.eq.s32.totalorder %v7421_v11, %v4738_v43 }
 0x413   : > { %v4732_v22 = vadd.s32 %v1052_v26, %v1050_v62  ;;  %v3470_v26 = vld [vmem:[#allocation2 + $0xd0] sm:$0xff] }
 0x414   : > { %v4754_v5 = vadd.s32 %v1094_v40, %v1092_v12  ;;  %v4783_v40 = vld [vmem:[%s7169_s4 + $0x48] sm:$0xff] }
 0x415   : > { %1240 = vmax.xlane.f32.xlu1 %v1189_v29  ;;  %7448 = vst [vmem:[#allocation78_spill] sm:$0xff] %v4732_v22  ;;  %v1194_v29 = vsel %vm7245_vm6, -1e+30, %v3469_v13  ;;  %v1119_v10 = vpop.xlane.xlu0 %1118  ;;  %vm7244_vm0 = vcmp.eq.s32.totalorder %v7421_v11, %v4732_v22  ;;  %v3472_v13 = vld [vmem:[#allocation2 + $0xa0] sm:$0xff] }
 0x416   : > { %v1120_v62 = vcvt.f32.s32 %v1119_v10  ;;  %v1195_v17 = vsel %vm7244_vm0, -1e+30, %v3470_v26  ;;  %7450 = vst [vmem:[#allocation80_spill] sm:$0xff] %v4754_v5  ;;  %vm7251_vm0 = vcmp.eq.s32.totalorder %v7421_v11, %v4754_v5  ;;  %v3473_v10 = vld [vmem:[#allocation2 + $0x20] sm:$0xff] }
 0x417   : > { %v4791_v26 = vld [vmem:[%s7169_s4 + $0x60] sm:$0xff] }
 0x418   : > { %v7478_v5 = vld [vmem:[#allocation35_spill] sm:$0xff] }
 0x419   : > { %1244 = vmax.xlane.f32.xlu0 %v1191_v58  ;;  %v1121_v58 = vcvt.f32.s32 %v4517_v4  ;;  %v4752_v4 = vld [vmem:[%s7169_s4 + $0x20] sm:$0xff] }
 0x41b   : > { %v1122_v39 = vshll.u32 %v1121_v58, 16 }
 0x41d   : > { %1246 = vmax.xlane.f32.xlu1 %v1192_v7  ;;  %v3471_v7 = vld [vmem:[#allocation2 + $0x28] sm:$0xff]  ;;  %v4759_v45 = vadd.s32 %v1122_v39, %v1120_v62  ;;  %v4778_v12 = vpop.permute.xlu1 %1880 }
 0x41e   : > { %v1197_v63 = vsel %vm7249_vm4, -1e+30, %v3471_v7  ;;  %7452 = vst [vmem:[#allocation82_spill] sm:$0xff] %v4778_v12  ;;  %v728_v7 = vcvt.f32.s32 %v4555_v6  ;;  %vm1299_vm4 = vcmp.lt.s32.totalorder %v4730_v0, 0 }
 0x41f   : > { %7451 = vst [vmem:[#allocation81_spill] sm:$0xff] %v4759_v45  ;;  %vm7246_vm6 = vcmp.eq.s32.totalorder %v7421_v11, %v4759_v45  ;;  %v4804_v45 = vld [vmem:[#allocation2 + $0xd8] sm:$0xff] }
 0x420   : > { %1877 = vperm.xlu2 %3456, %v4730_v0   ;;  %v1200_v58 = vsel %vm7246_vm6, -1e+30, %v3473_v10  ;;  %v771_v10 = vcvt.f32.s32 %v4372_v44  ;;  %v4816_v44 = vstv %s7165_s0 }
 0x421   : > { %1250 = vmax.xlane.f32.xlu0 %v1194_v29  ;;  %v1198_v29 = vsel %vm7251_vm0, -1e+30, %v3472_v13 }
 0x425   : > { %1252 = vmax.xlane.f32.xlu1 %v1195_v17  ;;  %v4786_v62 = vpop.permute.xlu1 %1889  ;;  %v7454_v17 = vld [vmem:[#allocation76_spill] sm:$0xff] }
 0x426   : > { %7453 = vst [vmem:[#allocation83_spill] sm:$0xff] %v4786_v62  ;;  %v729_v39 = vcvt.f32.s32 %v7454_v17  ;;  %v772_v62 = vshll.u32 %v771_v10, 16  ;;  %v7457_v17 = vld [vmem:[#allocation40_spill] sm:$0xff]  ;;  %v812_v10 = vcvt.f32.s32 %v4566_v56  ;;  %v854_v56 = vcvt.f32.s32 %v4568_v35 }
 0x428   : > { %1886 = vperm.xlu2 %3456, %v4752_v4   ;;  %v730_v13 = vshll.u32 %v729_v39, 16 }
 0x429   : > { %1256 = vmax.xlane.f32.xlu0 %v1197_v63 }
 0x42d   : > { %1258 = vmax.xlane.f32.xlu1 %v1198_v29  ;;  %v4796_v63 = vpop.permute.xlu1 %1898  ;;  %v4798_v29 = vadd.s32 %v730_v13, %v728_v7 }
 0x42e   : > { %7455 = vst [vmem:[#allocation76_spill] sm:$0xff] %v4796_v63 }
 0x42f   : > { %7456 = vst [vmem:[#allocation84_spill] sm:$0xff] %v4798_v29  ;;  %vm1140_vm6 = vcmp.eq.s32.totalorder %v7421_v11, %v4798_v29 }
 0x430   : > { %1895 = vperm.xlu2 %3456, %v4772_v21   ;;  %v1172_v6 = vsel %vm1140_vm6, -1e+30, %v4804_v45 }
 0x431   : > { %1262 = vmax.xlane.f32.xlu0 %v1200_v58  ;;  %v770_v58 = vcvt.f32.s32 %v4564_v54  ;;  %v813_v54 = vcvt.f32.s32 %v4387_v25  ;;  %v855_v25 = vcvt.f32.s32 %v4402_v61  ;;  %v896_v61 = vcvt.f32.s32 %v4571_v60 }
 0x433   : > { %v4811_v7 = vadd.s32 %v772_v62, %v770_v58  ;;  %v4824_v62 = vld [vmem:[#allocation2 + $0x68] sm:$0xff] }
 0x435   : > { %7458 = vst [vmem:[#allocation40_spill] sm:$0xff] %v4811_v7  ;;  %vm1143_vm0 = vcmp.eq.s32.totalorder %v7421_v11, %v4811_v7  ;;  %v7533_v7 = vld [vmem:[#allocation23_spill] sm:$0xff] }
 0x436   : > { %v1175_v58 = vsel %vm1143_vm0, -1e+30, %v4824_v62 }
 0x445   : > { %1901 = vperm.xlu0 %3455, %v4783_v40  }
 0x44d   : > { %1910 = vperm.xlu0 %3455, %v4791_v26  }
 0x458   : > { %v1205_v12 = vpop.xlane.xlu1 %1204 }
 0x459   : > { %v1331_v39 = vsub.f32 %v7457_v17, %v1205_v12  ;;  %1206 = vmax.xlane.f32.xlu2 %v1172_v6  ;;  %v814_v12 = vshll.u32 %v813_v54, 16  ;;  %v856_v6 = vshll.u32 %v855_v25, 16  ;;  %v897_v54 = vcvt.f32.s32 %v4417_v47 }
 0x45a   : > { %v938_v47 = vcvt.f32.s32 %v4579_v3  ;;  %v1135_v25 = vcvt.f32.s32 %v4675_v37 }
 0x45b   : > { %v1364_v13 = vadd.f32 %v4816_v44, %v1331_v39  ;;  %v4830_v0 = vadd.s32 %v814_v12, %v812_v10  ;;  %v4842_v39 = vadd.s32 %v856_v6, %v854_v56  ;;  %v898_v35 = vshll.u32 %v897_v54, 16  ;;  %v4861_v56 = vld [vmem:[#allocation2 + $0x8] sm:$0xff] }
 0x45c   : > { %7462 = vst [vmem:[#allocation88_spill] sm:$0xff] %v4861_v56  ;;  %v1136_v3 = vshll.u32 %v1135_v25, 16  ;;  %v1022_v25 = vcvt.f32.s32 %v4619_v46  ;;  %v3482_v46 = vld [vmem:[#allocation2 + $0xc0] sm:$0xff] }
 0x45d   : > { %v1396_v63 = vsel %vm1299_vm4, %v1364_v13, -1.0  ;;  %7459 = vst [vmem:[#allocation85_spill] sm:$0xff] %v4830_v0  ;;  %vm1146_vm4 = vcmp.eq.s32.totalorder %v7421_v11, %v4830_v0  ;;  %vm7276_vm7 = vcmp.eq.s32.totalorder %v7421_v11, %v4842_v39  ;;  %v4848_v13 = vld [vmem:[#allocation2 + $0xb8] sm:$0xff]  ;;  %v4854_v12 = vadd.s32 %v898_v35, %v896_v61  ;;  %v7530_v0 = vld [vmem:[#allocation20_spill] sm:$0xff] }
 0x45e   : > { %1434 = vperm.xlu0 %3455, %v1396_v63   ;;  %v4836_v63 = vld [vmem:[#allocation2 + $0x80] sm:$0xff]  ;;  %7460 = vst [vmem:[#allocation86_spill] sm:$0xff] %v4842_v39  ;;  %v1181_v10 = vsel %vm7276_vm7, -1e+30, %v4848_v13  ;;  %v980_v35 = vcvt.f32.s32 %v4599_v2 }
 0x45f   : > { %v1178_v17 = vsel %vm1146_vm4, -1e+30, %v4836_v63  ;;  %7461 = vst [vmem:[#allocation87_spill] sm:$0xff] %v4854_v12  ;;  %vm7255_vm5 = vcmp.eq.s32.totalorder %v7421_v11, %v4854_v12 }
 0x460   : > { %v1184_v6 = vsel %vm7255_vm5, -1e+30, %v4861_v56 }
 0x461   : > { %1212 = vmax.xlane.f32.xlu2 %v1175_v58  ;;  %v939_v58 = vcvt.f32.s32 %v4432_v18  ;;  %v981_v18 = vcvt.f32.s32 %v4447_v9  ;;  %v3480_v9 = vld [vmem:[#allocation2 + $0x98] sm:$0xff] }
 0x463   : > { %v940_v60 = vshll.u32 %v939_v58, 16  ;;  %v3479_v58 = vld [vmem:[#allocation2 + $0x58] sm:$0xff] }
 0x469   : > { %1218 = vmax.xlane.f32.xlu2 %v1178_v17  ;;  %v4867_v17 = vadd.s32 %v940_v60, %v938_v47  ;;  %v1023_v60 = vcvt.f32.s32 %v4465_v32 }
 0x46b   : > { %7463 = vst [vmem:[#allocation89_spill] sm:$0xff] %v4867_v17  ;;  %vm7268_vm3 = vcmp.eq.s32.totalorder %v7421_v11, %v4867_v17 }
 0x471   : > { %1224 = vmax.xlane.f32.xlu2 %v1181_v10  ;;  %v982_v10 = vshll.u32 %v981_v18, 16  ;;  %v1024_v18 = vshll.u32 %v1023_v60, 16  ;;  %v3483_v60 = vld [vmem:[#allocation2 + $0x10] sm:$0xff] }
 0x473   : > { %v4883_v47 = vadd.s32 %v982_v10, %v980_v35  ;;  %v1065_v35 = vcvt.f32.s32 %v4480_v19  ;;  %v1064_v10 = vcvt.f32.s32 %v4638_v33  ;;  %v1106_v19 = vcvt.f32.s32 %v4656_v55 }
 0x475   : > { %7465 = vst [vmem:[#allocation91_spill] sm:$0xff] %v4883_v47  ;;  %vm7258_vm2 = vcmp.eq.s32.totalorder %v7421_v11, %v4883_v47  ;;  %v1066_v32 = vshll.u32 %v1065_v35, 16  ;;  %v4930_v35 = vld [vmem:[%s7169_s4 + $0x70] sm:$0xff] }
 0x479   : > { %1230 = vmax.xlane.f32.xlu2 %v1184_v6  ;;  %v1187_v6 = vsel %vm7268_vm3, -1e+30, %v3479_v58  ;;  %vm1300_vm3 = vcmp.lt.s32.totalorder %v4535_v38, 0 }
 0x47b   : > { %v1133_v54 = vpop.xlane.xlu2 %1132 }
 0x47c   : > { %v1134_v61 = vcvt.f32.s32 %v1133_v54  ;;  %v3481_v54 = vld [vmem:[#allocation2 + $0xe0] sm:$0xff] }
 0x47e   : > { %v4873_v37 = vadd.s32 %v1136_v3, %v1134_v61  ;;  %v1190_v3 = vsel %vm7258_vm2, -1e+30, %v3481_v54  ;;  %v4892_v61 = vadd.s32 %v1024_v18, %v1022_v25  ;;  %v4915_v18 = vld [vmem:[%s7169_s4 + $0x58] sm:$0xff] }
 0x47f   : > { %v3484_v54 = vld [vmem:[#allocation2 + $0xf8] sm:$0xff]  ;;  %vm1309_vm7 = vcmp.lt.s32.totalorder %v4915_v18, 0 }
 0x480   : > { %7464 = vst [vmem:[#allocation90_spill] sm:$0xff] %v4873_v37  ;;  %vm7257_vm5 = vcmp.eq.s32.totalorder %v7421_v11, %v4873_v37 }
 0x481   : > { %1236 = vmax.xlane.f32.xlu2 %v1187_v6  ;;  %v1201_v2 = vsel %vm7257_vm5, -1e+30, %v3480_v9  ;;  %7466 = vst [vmem:[#allocation92_spill] sm:$0xff] %v4892_v61  ;;  %vm7259_vm5 = vcmp.eq.s32.totalorder %v7421_v11, %v4892_v61  ;;  %v4901_v6 = vadd.s32 %v1066_v32, %v1064_v10  ;;  %v1107_v9 = vcvt.f32.s32 %v4495_v59 }
 0x482   : > { %1264 = vmax.xlane.f32.xlu1 %v1201_v2  ;;  %v1193_v58 = vsel %vm7259_vm5, -1e+30, %v3482_v46  ;;  %v4904_v2 = vpop.permute.xlu0 %1874 }
 0x483   : > { %7467 = vst [vmem:[#allocation93_spill] sm:$0xff] %v4901_v6  ;;  %vm7267_vm2 = vcmp.eq.s32.totalorder %v7421_v11, %v4901_v6  ;;  %v1108_v33 = vshll.u32 %v1107_v9, 16  ;;  %v4935_v32 = vpop.permute.xlu2 %1877 }
 0x484   : > { %7468 = vst [vmem:[#allocation94_spill] sm:$0xff] %v4904_v2  ;;  %v1196_v25 = vsel %vm7267_vm2, -1e+30, %v3483_v60  ;;  %v7474_v60 = vld [vmem:[#allocation37_spill] sm:$0xff]  ;;  %v7476_v2 = vld [vmem:[#allocation39_spill] sm:$0xff]  ;;  %vm1301_vm2 = vcmp.lt.s32.totalorder %v4540_v15, 0 }
 0x485   : > { %v4917_v59 = vadd.s32 %v1108_v33, %v1106_v19  ;;  %7472 = vst [vmem:[#allocation98_spill] sm:$0xff] %v4935_v32  ;;  %v1211_v33 = vpop.xlane.xlu1 %1210  ;;  %v7480_v15 = vld [vmem:[#allocation43_spill] sm:$0xff] }
 0x486   : > { %v1334_v6 = vsub.f32 %v7478_v5, %v1211_v33  ;;  %v7481_v5 = vld [vmem:[#allocation42_spill] sm:$0xff] }
 0x487   : > { %7469 = vst [vmem:[#allocation95_spill] sm:$0xff] %v4917_v59  ;;  %vm7260_vm5 = vcmp.eq.s32.totalorder %v7421_v11, %v4917_v59  ;;  %v7477_v59 = vld [vmem:[#allocation36_spill] sm:$0xff] }
 0x489   : > { %1242 = vmax.xlane.f32.xlu2 %v1190_v3  ;;  %v1199_v3 = vsel %vm7260_vm5, -1e+30, %v3484_v54  ;;  %v4949_v54 = vld [vmem:[%s7169_s4 + $0x68] sm:$0xff]  ;;  %vm1298_vm5 = vcmp.lt.s32.totalorder %v4529_v23, 0 }
 0x48a   : > { %v4920_v55 = vpop.permute.xlu0 %1883 }
 0x48b   : > { %7470 = vst [vmem:[#allocation96_spill] sm:$0xff] %v4920_v55  ;;  %v4943_v9 = vpop.permute.xlu2 %1886 }
 0x48c   : > { %7473 = vst [vmem:[#allocation99_spill] sm:$0xff] %v4943_v9 }
 0x48d   : > { %v1217_v32 = vpop.xlane.xlu1 %1216 }
 0x48e   : > { %v1337_v33 = vsub.f32 %v7481_v5, %v1217_v32  ;;  %v7485_v5 = vld [vmem:[#allocation44_spill] sm:$0xff] }
 0x491   : > { %1248 = vmax.xlane.f32.xlu2 %v1193_v58  ;;  %v4940_v58 = vld [vmem:[%s7169_s4 + $0x50] sm:$0xff] }
 0x492   : > { %v4933_v10 = vpop.permute.xlu0 %1892 }
 0x493   : > { %7471 = vst [vmem:[#allocation97_spill] sm:$0xff] %v4933_v10 }
 0x499   : > { %1254 = vmax.xlane.f32.xlu2 %v1196_v25 }
 0x49a   : > { %v1203_v46 = vpop.xlane.xlu0 %1202 }
 0x49b   : > { %1907 = vperm.xlu1 %3457, %v4915_v18   ;;  %v1330_v25 = vsub.f32 %v7474_v60, %v1203_v46 }
 0x49d   : > { %v1363_v10 = vadd.f32 %v4816_v44, %v1330_v25 }
 0x49f   : > { %v1395_v37 = vsel %vm1298_vm5, %v1363_v10, -1.0  ;;  %vm1302_vm5 = vcmp.lt.s32.totalorder %v4752_v4, 0  ;;  %v7482_v4 = vld [vmem:[#allocation41_spill] sm:$0xff] }
 0x4a1   : > { %1260 = vmax.xlane.f32.xlu2 %v1199_v3  ;;  %v4952_v3 = vpop.permute.xlu2 %1895 }
 0x4a2   : > { %v1209_v19 = vpop.xlane.xlu0 %1208  ;;  %7475 = vst [vmem:[#allocation37_spill] sm:$0xff] %v4952_v3 }
 0x4a3   : > { %1916 = vperm.xlu1 %3457, %v4930_v35   ;;  %v1333_v9 = vsub.f32 %v7476_v2, %v1209_v19  ;;  %v1223_v19 = vpop.xlane.xlu1 %1222 }
 0x4a5   : > { %v1366_v46 = vadd.f32 %v4816_v44, %v1333_v9  ;;  %v7479_v9 = vld [vmem:[#allocation38_spill] sm:$0xff] }
 0x4a7   : > { %v1398_v23 = vsel %vm1301_vm2, %v1366_v46, -1.0  ;;  %vm1304_vm2 = vcmp.lt.s32.totalorder %v4552_v49, 0 }
 0x4aa   : > { %v1215_v55 = vpop.xlane.xlu0 %1214 }
 0x4b2   : > { %v1221_v3 = vpop.xlane.xlu0 %1220 }
 0x4b9   : > { %1904 = vperm.xlu2 %3456, %v4940_v58  }
 0x4ba   : > { %v1227_v46 = vpop.xlane.xlu0 %1226 }
 0x4c1   : > { %1913 = vperm.xlu2 %3456, %v4949_v54  }
 0x4c9   : > { %1429 = vperm.xlu2 %3456, %v1395_v37   ;;  %v1367_v37 = vadd.f32 %v4816_v44, %v1334_v6 }
 0x4cc   : > { %v1207_v60 = vpop.xlane.xlu2 %1206 }
 0x4cd   : > { %v1332_v43 = vsub.f32 %v7477_v59, %v1207_v60  ;;  %v1399_v59 = vsel %vm1302_vm5, %v1367_v37, -1.0  ;;  %vm1306_vm5 = vcmp.lt.s32.totalorder %v4561_v36, 0  ;;  %v7484_v37 = vld [vmem:[#allocation45_spill] sm:$0xff] }
 0x4cf   : > { %v1365_v25 = vadd.f32 %v4816_v44, %v1332_v43  ;;  %v1336_v43 = vsub.f32 %v7480_v15, %v1215_v55 }
 0x4d1   : > { %1444 = vperm.xlu2 %3456, %v1398_v23   ;;  %v1397_v2 = vsel %vm1300_vm3, %v1365_v25, -1.0  ;;  %v1369_v6 = vadd.f32 %v4816_v44, %v1336_v43  ;;  %v1229_v25 = vpop.xlane.xlu1 %1228  ;;  %vm1305_vm3 = vcmp.lt.s32.totalorder %v4772_v21, 0  ;;  %v1233_v43 = vpop.xlane.xlu0 %1232 }
 0x4d2   : > { %1439 = vperm.xlu1 %3457, %v1397_v2   ;;  %v1370_v2 = vadd.f32 %v4816_v44, %v1337_v33 }
 0x4d3   : > { %v1401_v32 = vsel %vm1304_vm2, %v1369_v6, -1.0  ;;  %vm1308_vm2 = vcmp.lt.s32.totalorder %v4940_v58, 0 }
 0x4d4   : > { %v1213_v10 = vpop.xlane.xlu2 %1212 }
 0x4d5   : > { %v1335_v56 = vsub.f32 %v7479_v9, %v1213_v10  ;;  %v1340_v9 = vsub.f32 %v7484_v37, %v1223_v19  ;;  %v7486_v19 = vld [vmem:[#allocation49_spill] sm:$0xff] }
 0x4d7   : > { %v1368_v38 = vadd.f32 %v4816_v44, %v1335_v56  ;;  %v7483_v56 = vld [vmem:[#allocation46_spill] sm:$0xff]  ;;  %v1373_v21 = vadd.f32 %v4816_v44, %v1340_v9 }
 0x4d8   : > { %v1339_v55 = vsub.f32 %v7483_v56, %v1221_v3 }
 0x4d9   : > { %1449 = vperm.xlu2 %3456, %v1399_v59   ;;  %v1400_v60 = vsel %vm1303_vm1, %v1368_v38, -1.0  ;;  %v1402_v38 = vsel %vm1305_vm3, %v1370_v2, -1.0  ;;  %vm1307_vm1 = vcmp.lt.s32.totalorder %v4783_v40, 0  ;;  %v1235_v33 = vpop.xlane.xlu1 %1234  ;;  %v1239_v58 = vpop.xlane.xlu0 %1238  ;;  %vm1310_vm3 = vcmp.lt.s32.totalorder %v4791_v26, 0  ;;  %v5000_v26 = vld [vmem:[%s7169_s4 + $0x78] sm:$0xff] }
 0x4da   : > { %1454 = vperm.xlu1 %3457, %v1400_v60   ;;  %v1372_v59 = vadd.f32 %v4816_v44, %v1339_v55  ;;  %v1342_v60 = vsub.f32 %v7486_v19, %v1227_v46  ;;  %v7488_v55 = vld [vmem:[#allocation47_spill] sm:$0xff] }
 0x4dc   : > { %v1219_v23 = vpop.xlane.xlu2 %1218  ;;  %v1404_v6 = vsel %vm1307_vm1, %v1372_v59, -1.0  ;;  %vm1312_vm1 = vcmp.lt.s32.totalorder %v4930_v35, 0  ;;  %v5005_v35 = vld [vmem:[%s7169_s4 + $0x80] sm:$0xff] }
 0x4dd   : > { %v1338_v10 = vsub.f32 %v7482_v4, %v1219_v23  ;;  %v7487_v23 = vld [vmem:[#allocation48_spill] sm:$0xff]  ;;  %v1405_v4 = vsel %vm1308_vm2, %v1373_v21, -1.0  ;;  %vm1314_vm2 = vcmp.lt.s32.totalorder %v5005_v35, 0 }
 0x4de   : > { %v1343_v2 = vsub.f32 %v7487_v23, %v1229_v25  ;;  %v7489_v25 = vld [vmem:[#allocation52_spill] sm:$0xff] }
 0x4df   : > { %v1371_v28 = vadd.f32 %v4816_v44, %v1338_v10 }
 0x4e0   : > { %v1376_v56 = vadd.f32 %v4816_v44, %v1343_v2  ;;  %v7493_v2 = vld [vmem:[#allocation54_spill] sm:$0xff] }
 0x4e1   : > { %1459 = vperm.xlu2 %3456, %v1401_v32   ;;  %v1403_v15 = vsel %vm1306_vm5, %v1371_v28, -1.0  ;;  %v1375_v28 = vadd.f32 %v4816_v44, %v1342_v60  ;;  %vm1311_vm5 = vcmp.lt.s32.totalorder %v4949_v54, 0  ;;  %v1345_v32 = vsub.f32 %v7489_v25, %v1233_v43  ;;  %v1241_v37 = vpop.xlane.xlu1 %1240  ;;  %v5010_v54 = vld [vmem:[%s7169_s4 + $0x88] sm:$0xff]  ;;  %v7492_v60 = vld [vmem:[#allocation55_spill] sm:$0xff] }
 0x4e2   : > { %1464 = vperm.xlu1 %3457, %v1402_v38   ;;  %1469 = vperm.xlu0 %3455, %v1403_v15   ;;  %v7490_v38 = vld [vmem:[#allocation51_spill] sm:$0xff]  ;;  %v1408_v59 = vsel %vm1311_vm5, %v1376_v56, -1.0  ;;  %v5024_v56 = vld [vmem:[%s7169_s4 + $0x90] sm:$0xff] }
 0x4e3   : > { %v1407_v9 = vsel %vm1310_vm3, %v1375_v28, -1.0  ;;  %v1346_v15 = vsub.f32 %v7490_v38, %v1235_v33  ;;  %v1378_v43 = vadd.f32 %v4816_v44, %v1345_v32  ;;  %vm1315_vm3 = vcmp.lt.s32.totalorder %v5010_v54, 0  ;;  %v7494_v32 = vld [vmem:[#allocation53_spill] sm:$0xff]  ;;  %v7495_v38 = vld [vmem:[#allocation58_spill] sm:$0xff] }
 0x4e4   : > { %v1225_v49 = vpop.xlane.xlu2 %1224  ;;  %vm1316_vm5 = vcmp.lt.s32.totalorder %v5024_v56, 0 }
 0x4e5   : > { %v1341_v36 = vsub.f32 %v7485_v5, %v1225_v49  ;;  %v1379_v5 = vadd.f32 %v4816_v44, %v1346_v15 }
 0x4e7   : > { %v1374_v3 = vadd.f32 %v4816_v44, %v1341_v36  ;;  %v7491_v36 = vld [vmem:[#allocation50_spill] sm:$0xff] }
 0x4e9   : > { %1474 = vperm.xlu2 %3456, %v1404_v6   ;;  %v1406_v10 = vsel %vm1309_vm7, %v1374_v3, -1.0  ;;  %vm1313_vm7 = vcmp.lt.s32.totalorder %v5000_v26, 0  ;;  %v1245_v3 = vpop.xlane.xlu0 %1244  ;;  %v1348_v6 = vsub.f32 %v7492_v60, %v1239_v58  ;;  %v5034_v58 = vld [vmem:[%s7169_s4 + $0xa0] sm:$0xff] }
 0x4ea   : > { %1479 = vperm.xlu1 %3457, %v1405_v4   ;;  %1484 = vperm.xlu0 %3455, %v1406_v10   ;;  %v1410_v23 = vsel %vm1313_vm7, %v1378_v43, -1.0  ;;  %v1349_v4 = vsub.f32 %v7493_v2, %v1241_v37  ;;  %v1411_v10 = vsel %vm1314_vm2, %v1379_v5, -1.0  ;;  %vm1318_vm7 = vcmp.lt.s32.totalorder %v5034_v58, 0 }
 0x4eb   : > { %v1351_v15 = vsub.f32 %v7495_v38, %v1245_v3  ;;  %v5058_v3 = vld [vmem:[%s7169_s4 + $0xb8] sm:$0xff]  ;;  %v5072_v38 = vld [vmem:[%s7169_s4 + $0xc0] sm:$0xff] }
 0x4ec   : > { %v1231_v40 = vpop.xlane.xlu2 %1230  ;;  %v1382_v25 = vadd.f32 %v4816_v44, %v1349_v4  ;;  %v7497_v4 = vld [vmem:[#allocation56_spill] sm:$0xff] }
 0x4ed   : > { %v1344_v18 = vsub.f32 %v7488_v55, %v1231_v40  ;;  %v1247_v40 = vpop.xlane.xlu1 %1246  ;;  %v5029_v55 = vld [vmem:[%s7169_s4 + $0x98] sm:$0xff]  ;;  %v1384_v60 = vadd.f32 %v4816_v44, %v1351_v15 }
 0x4ef   : > { %v1377_v46 = vadd.f32 %v4816_v44, %v1344_v18  ;;  %v1381_v18 = vadd.f32 %v4816_v44, %v1348_v6 }
 0x4f1   : > { %1489 = vperm.xlu2 %3456, %v1407_v9   ;;  %v1409_v49 = vsel %vm1312_vm1, %v1377_v46, -1.0  ;;  %vm1317_vm1 = vcmp.lt.s32.totalorder %v5029_v55, 0 }
 0x4f2   : > { %1494 = vperm.xlu1 %3457, %v1408_v59   ;;  %1499 = vperm.xlu0 %3455, %v1409_v49   ;;  %v1413_v59 = vsel %vm1316_vm5, %v1381_v18, -1.0  ;;  %v7496_v49 = vld [vmem:[#allocation57_spill] sm:$0xff]  ;;  %v1414_v5 = vsel %vm1317_vm1, %v1382_v25, -1.0  ;;  %vm1321_vm5 = vcmp.lt.s32.totalorder %v5058_v3, 0  ;;  %vm1322_vm1 = vcmp.lt.s32.totalorder %v5072_v38, 0 }
 0x4f3   : > { %v1352_v43 = vsub.f32 %v7496_v49, %v1247_v40  ;;  %v7498_v40 = vld [vmem:[#allocation62_spill] sm:$0xff]  ;;  %v7499_v25 = vld [vmem:[#allocation61_spill] sm:$0xff] }
 0x4f4   : > { %v1237_v21 = vpop.xlane.xlu2 %1236  ;;  %v5082_v49 = vld [vmem:[%s7169_s4 + $0xd0] sm:$0xff] }
 0x4f5   : > { %v1347_v33 = vsub.f32 %v7491_v36, %v1237_v21  ;;  %v1251_v21 = vpop.xlane.xlu0 %1250  ;;  %v1253_v6 = vpop.xlane.xlu1 %1252  ;;  %v1385_v2 = vadd.f32 %v4816_v44, %v1352_v43 }
 0x4f6   : > { %v1354_v18 = vsub.f32 %v7498_v40, %v1251_v21 }
 0x4f7   : > { %v1380_v19 = vadd.f32 %v4816_v44, %v1347_v33  ;;  %v5048_v33 = vld [vmem:[%s7169_s4 + $0xa8] sm:$0xff] }
 0x4f8   : > { %vm1319_vm2 = vcmp.lt.s32.totalorder %v5048_v33, 0  ;;  %v1387_v43 = vadd.f32 %v4816_v44, %v1354_v18 }
 0x4f9   : > { %1504 = vperm.xlu2 %3456, %v1410_v23   ;;  %v1412_v28 = vsel %vm1315_vm3, %v1380_v19, -1.0  ;;  %v5053_v19 = vld [vmem:[%s7169_s4 + $0xb0] sm:$0xff] }
 0x4fa   : > { %1509 = vperm.xlu1 %3457, %v1411_v10   ;;  %1514 = vperm.xlu0 %3455, %v1412_v28   ;;  %vm1320_vm3 = vcmp.lt.s32.totalorder %v5053_v19, 0 }
 0x4fc   : > { %v1243_v46 = vpop.xlane.xlu2 %1242 }
 0x4fd   : > { %v1350_v37 = vsub.f32 %v7494_v32, %v1243_v46  ;;  %v1416_v46 = vsel %vm1319_vm2, %v1384_v60, -1.0  ;;  %v1355_v32 = vsub.f32 %v7499_v25, %v1253_v6  ;;  %v1257_v15 = vpop.xlane.xlu0 %1256  ;;  %v1259_v6 = vpop.xlane.xlu1 %1258  ;;  %vm1324_vm2 = vcmp.lt.s32.totalorder %v5082_v49, 0  ;;  %v1293_v25 = vld [vmem:[%s7169_s4 + $0xd8] sm:$0xff] }
 0x4ff   : > { %v1383_v9 = vadd.f32 %v4816_v44, %v1350_v37  ;;  %v1417_v37 = vsel %vm1320_vm3, %v1385_v2, -1.0  ;;  %v7501_v2 = vld [vmem:[#allocation68_spill] sm:$0xff]  ;;  %vm1325_vm3 = vcmp.lt.s32.totalorder %v1293_v25, 0 }
 0x501   : > { %1519 = vperm.xlu2 %3456, %v1413_v59   ;;  %v1415_v36 = vsel %vm1318_vm7, %v1383_v9, -1.0  ;;  %v5077_v59 = vld [vmem:[%s7169_s4 + $0xc8] sm:$0xff] }
 0x502   : > { %1524 = vperm.xlu1 %3457, %v1414_v5   ;;  %1529 = vperm.xlu0 %3455, %v1415_v36   ;;  %v1388_v5 = vadd.f32 %v4816_v44, %v1355_v32  ;;  %v7500_v36 = vld [vmem:[#allocation60_spill] sm:$0xff]  ;;  %vm1323_vm7 = vcmp.lt.s32.totalorder %v5077_v59, 0 }
 0x503   : > { %v1294_v32 = vld [vmem:[%s7169_s4 + $0xe0] sm:$0xff] }
 0x504   : > { %v1249_v23 = vpop.xlane.xlu2 %1248  ;;  %v1420_v18 = vsel %vm1323_vm7, %v1388_v5, -1.0  ;;  %v7503_v5 = vld [vmem:[#allocation66_spill] sm:$0xff] }
 0x505   : > { %v1353_v10 = vsub.f32 %v7497_v4, %v1249_v23  ;;  %v1357_v4 = vsub.f32 %v7501_v2, %v1257_v15 }
 0x507   : > { %v1386_v28 = vadd.f32 %v4816_v44, %v1353_v10  ;;  %v1419_v10 = vsel %vm1322_vm1, %v1387_v43, -1.0 }
 0x509   : > { %1534 = vperm.xlu2 %3456, %v1416_v46   ;;  %v1418_v9 = vsel %vm1321_vm5, %v1386_v28, -1.0  ;;  %v7502_v28 = vld [vmem:[#allocation67_spill] sm:$0xff]  ;;  %vm1326_vm5 = vcmp.lt.s32.totalorder %v1294_v32, 0 }
 0x50a   : > { %1539 = vperm.xlu1 %3457, %v1417_v37   ;;  %1544 = vperm.xlu0 %3455, %v1418_v9   ;;  %v1358_v40 = vsub.f32 %v7502_v28, %v1259_v6  ;;  %v1295_v37 = vld [vmem:[%s7169_s4 + $0xe8] sm:$0xff]  ;;  %v1390_v9 = vadd.f32 %v4816_v44, %v1357_v4 }
 0x50b   : > { %vm1327_vm1 = vcmp.lt.s32.totalorder %v1295_v37, 0 }
 0x50c   : > { %v1255_v21 = vpop.xlane.xlu2 %1254  ;;  %v1391_v43 = vadd.f32 %v4816_v44, %v1358_v40  ;;  %v1296_v40 = vld [vmem:[%s7169_s4 + $0xf0] sm:$0xff] }
 0x50d   : > { %v1356_v60 = vsub.f32 %v7500_v36, %v1255_v21  ;;  %v1263_v21 = vpop.xlane.xlu0 %1262  ;;  %vm1328_vm7 = vcmp.lt.s32.totalorder %v1296_v40, 0 }
 0x50f   : > { %v1389_v23 = vadd.f32 %v4816_v44, %v1356_v60  ;;  %v1265_v60 = vpop.xlane.xlu1 %1264 }
 0x510   : > { %v1361_v28 = vsub.f32 %v4359_v48, %v1265_v60 }
 0x511   : > { %1549 = vperm.xlu2 %3456, %v1419_v10   ;;  %v1421_v46 = vsel %vm1324_vm2, %v1389_v23, -1.0  ;;  %v7504_v23 = vld [vmem:[#allocation72_spill] sm:$0xff]  ;;  %v1422_v10 = vsel %vm1325_vm3, %v1390_v9, -1.0  ;;  %vm7521_vm3 = vcmp.eq.s32.totalorder %v7421_v11, %v4701_v31 }
 0x512   : > { %1554 = vperm.xlu1 %3457, %v1420_v18   ;;  %1559 = vperm.xlu0 %3455, %v1421_v46   ;;  %v1360_v2 = vsub.f32 %v7504_v23, %v1263_v21  ;;  %v1423_v18 = vsel %vm1326_vm5, %v1391_v43, -1.0  ;;  %v1297_v46 = vld [vmem:[%s7169_s4 + $0xf8] sm:$0xff]  ;;  %v1394_v9 = vadd.f32 %v4816_v44, %v1361_v28  ;;  %vm7522_vm5 = vcmp.eq.s32.totalorder %v7421_v11, %v4717_v1 }
 0x513   : > { %vm1329_vm2 = vcmp.lt.s32.totalorder %v1297_v46, 0  ;;  %v7524_v1 = vld [vmem:[#allocation14_spill] sm:$0xff] }
 0x514   : > { %v1261_v15 = vpop.xlane.xlu2 %1260  ;;  %v1426_v43 = vsel %vm1329_vm2, %v1394_v9, -1.0 }
 0x515   : > { %v1359_v36 = vsub.f32 %v7503_v5, %v1261_v15  ;;  %v1393_v15 = vadd.f32 %v4816_v44, %v1360_v2 }
 0x517   : > { %v1392_v6 = vadd.f32 %v4816_v44, %v1359_v36  ;;  %v1425_v48 = vsel %vm1328_vm7, %v1393_v15, -1.0  ;;  %v5125_v44 = vpop.permute.xlu1 %1907 }
 0x518   : > { %7507 = vst [vmem:[#allocation35_spill] sm:$0xff] %v5125_v44 }
 0x519   : > { %1564 = vperm.xlu2 %3456, %v1422_v10   ;;  %v1424_v4 = vsel %vm1327_vm1, %v1392_v6, -1.0 }
 0x51a   : > { %1569 = vperm.xlu1 %3457, %v1423_v18   ;;  %1574 = vperm.xlu0 %3455, %v1424_v4  }
 0x51c   : > { %v5115_v5 = vpop.permute.xlu2 %1904 }
 0x51d   : > { %7505 = vst [vmem:[#allocation39_spill] sm:$0xff] %v5115_v5  ;;  %v7538_v5 = vld [vmem:[#allocation28_spill] sm:$0xff] }
 0x521   : > { %1579 = vperm.xlu2 %3456, %v1425_v48  }
 0x522   : > { %1584 = vperm.xlu1 %3457, %v1426_v43   ;;  %1919 = vperm.xlu0 %3455, %v5000_v26   ;;  %v5132_v26 = vpop.permute.xlu0 %1901 }
 0x523   : > { %7508 = vst [vmem:[#allocation38_spill] sm:$0xff] %v5132_v26  ;;  %v7536_v26 = vld [vmem:[#allocation26_spill] sm:$0xff] }
 0x524   : > { %v5119_v21 = vpop.permute.xlu2 %1913 }
 0x525   : > { %7506 = vst [vmem:[#allocation36_spill] sm:$0xff] %v5119_v21 }
 0x529   : > { %1922 = vperm.xlu2 %3456, %v5005_v35   ;;  %v5134_v35 = vpop.permute.xlu1 %1916 }
 0x52a   : > { %1925 = vperm.xlu1 %3457, %v5010_v54   ;;  %1928 = vperm.xlu0 %3455, %v5024_v56   ;;  %7509 = vst [vmem:[#allocation43_spill] sm:$0xff] %v5134_v35  ;;  %v3486_v35 = vld [vmem:[#allocation2] sm:$0xff] }
 0x52c   : > { %v1430_v36 = vpop.permute.xlu2 %1429 }
 0x531   : > { %1931 = vperm.xlu2 %3456, %v5029_v55  }
 0x532   : > { %1934 = vperm.xlu1 %3457, %v5034_v58   ;;  %1937 = vperm.xlu0 %3455, %v5048_v33   ;;  %v5138_v58 = vpop.permute.xlu0 %1910 }
 0x533   : > { %7510 = vst [vmem:[#allocation42_spill] sm:$0xff] %v5138_v58 }
 0x534   : > { %v1445_v60 = vpop.permute.xlu2 %1444 }
 0x539   : > { %1940 = vperm.xlu2 %3456, %v5053_v19  }
 0x53a   : > { %1943 = vperm.xlu1 %3457, %v5058_v3   ;;  %1946 = vperm.xlu0 %3455, %v5072_v38   ;;  %v1435_v3 = vpop.permute.xlu0 %1434 }
 0x53b   : > { %v5160_v23 = vsel %vm1139_vm9, %v1435_v3, -1.0  ;;  %vm7513_vm9 = vcmp.eq.s32.totalorder %v7421_v11, %v4658_v16 }
 0x53c   : > { %v1450_v54 = vpop.permute.xlu2 %1449 }
 0x53d   : > { %v5165_v2 = vsel %vm1142_vm11, %v1450_v54, -1.0  ;;  %vm7515_vm11 = vcmp.eq.s32.totalorder %v7421_v11, %v4664_v42 }
 0x541   : > { %1949 = vperm.xlu2 %3456, %v5077_v59  }
 0x542   : > { %1952 = vperm.xlu1 %3457, %v5082_v49   ;;  %1955 = vperm.xlu0 %3455, %v1293_v25   ;;  %v5148_v49 = vsel %vm1138_vm8, %v1430_v36, -1.0  ;;  %vm7512_vm8 = vcmp.eq.s32.totalorder %v7421_v11, %v4646_v27 }
 0x544   : > { %v1440_v56 = vpop.permute.xlu1 %1439  ;;  %v1460_v55 = vpop.permute.xlu2 %1459 }
 0x545   : > { %v5143_v38 = vsel %vm1140_vm6, %v1440_v56, -1.0  ;;  %v5184_v9 = vsel %vm1144_vm12, %v1460_v55, -1.0  ;;  %vm7516_vm12 = vcmp.eq.s32.totalorder %v7421_v11, %v4677_v57  ;;  %vm7520_vm6 = vcmp.eq.s32.totalorder %v7421_v11, %v4883_v47  ;;  %v7525_v47 = vld [vmem:[#allocation15_spill] sm:$0xff]  ;;  %v7527_v57 = vld [vmem:[#allocation17_spill] sm:$0xff] }
 0x549   : > { %1958 = vperm.xlu2 %3456, %v1294_v32   ;;  %v1619_v32 = vmax.f32 %v5148_v49, %v5143_v38 }
 0x54a   : > { %1961 = vperm.xlu1 %3457, %v1295_v37   ;;  %1964 = vperm.xlu0 %3455, %v1296_v40   ;;  %v5155_v37 = vsel %vm1141_vm10, %v1445_v60, -1.0  ;;  %vm7514_vm10 = vcmp.eq.s32.totalorder %v7421_v11, %v4854_v12 }
 0x54b   : > { %v1620_v28 = vmax.f32 %v5160_v23, %v5155_v37  ;;  %v1621_v18 = vmax.f32 %v1619_v32, %v5165_v2 }
 0x54c   : > { %v1455_v33 = vpop.permute.xlu1 %1454  ;;  %v1475_v19 = vpop.permute.xlu2 %1474 }
 0x54d   : > { %v5170_v10 = vsel %vm1143_vm0, %v1455_v33, -1.0  ;;  %v1623_v36 = vmax.f32 %v1621_v18, %v5184_v9  ;;  %v5202_v55 = vsel %vm1147_vm14, %v1475_v19, -1.0  ;;  %vm7511_vm0 = vcmp.eq.s32.totalorder %v7421_v11, %v4842_v39 }
 0x54e   : > { %v1622_v40 = vmax.f32 %v1620_v28, %v5170_v10  ;;  %vm7518_vm14 = vcmp.eq.s32.totalorder %v7421_v11, %v4695_v51 }
 0x551   : > { %1967 = vperm.xlu2 %3456, %v1297_v46  }
 0x554   : > { %v1465_v59 = vpop.permute.xlu1 %1464  ;;  %v1490_v6 = vpop.permute.xlu2 %1489 }
 0x555   : > { %v1470_v25 = vpop.permute.xlu0 %1469  ;;  %v5178_v4 = vsel %vm1145_vm13, %v1465_v59, -1.0  ;;  %v5215_v18 = vsel %vm7512_vm8, %v1490_v6, -1.0  ;;  %vm7517_vm13 = vcmp.eq.s32.totalorder %v7421_v11, %v4867_v17 }
 0x556   : > { %v5189_v48 = vsel %vm1146_vm4, %v1470_v25, -1.0  ;;  %v1624_v60 = vmax.f32 %v1622_v40, %v5178_v4 }
 0x557   : > { %v1625_v56 = vmax.f32 %v1623_v36, %v5189_v48 }
 0x558   : > { %v1626_v59 = vmax.f32 %v1624_v60, %v5202_v55 }
 0x55c   : > { %v1480_v46 = vpop.permute.xlu1 %1479  ;;  %v1505_v15 = vpop.permute.xlu2 %1504 }
 0x55d   : > { %v1485_v43 = vpop.permute.xlu0 %1484  ;;  %v5196_v54 = vsel %vm1148_vm15, %v1480_v46, -1.0  ;;  %v5232_v6 = vsel %vm7515_vm11, %v1505_v15, -1.0  ;;  %vm7519_vm15 = vcmp.eq.s32.totalorder %v7421_v11, %v4685_v34  ;;  %v7526_v34 = vld [vmem:[#allocation16_spill] sm:$0xff] }
 0x55e   : > { %v5207_v33 = vsel %vm7511_vm0, %v1485_v43, -1.0  ;;  %v1627_v3 = vmax.f32 %v1625_v56, %v5196_v54 }
 0x55f   : > { %v1628_v25 = vmax.f32 %v1626_v59, %v5207_v33 }
 0x560   : > { %v1629_v43 = vmax.f32 %v1627_v3, %v5215_v18 }
 0x564   : > { %v1495_v32 = vpop.permute.xlu1 %1494  ;;  %v1520_v28 = vpop.permute.xlu2 %1519 }
 0x565   : > { %v5220_v19 = vsel %vm7513_vm9, %v1495_v32, -1.0  ;;  %v1500_v40 = vpop.permute.xlu0 %1499 }
 0x566   : > { %v1630_v46 = vmax.f32 %v1628_v25, %v5220_v19  ;;  %v5227_v36 = vsel %vm7514_vm10, %v1500_v40, -1.0 }
 0x567   : > { %v1631_v56 = vmax.f32 %v1629_v43, %v5227_v36 }
 0x568   : > { %v1632_v60 = vmax.f32 %v1630_v46, %v5232_v6 }
 0x56a   : > { %v1633_v59 = vmax.f32 %v1631_v56, %v1632_v60 }
 0x56c   : > { %v1634_v32 = vrot.slane %v1633_v59, 4  ;;  %v1510_v27 = vpop.permute.xlu1 %1509  ;;  %v1535_v25 = vpop.permute.xlu2 %1534 }
 0x56d   : > { %v1515_v16 = vpop.permute.xlu0 %1514  ;;  %v5239_v42 = vsel %vm7516_vm12, %v1510_v27, -1.0  ;;  %v5258_v27 = vsel %vm7519_vm15, %v1520_v28, -1.0  ;;  %v5276_v28 = vsel %vm7521_vm3, %v1535_v25, -1.0 }
 0x56e   : > { %v1635_v3 = vmax.f32 %v1633_v59, %v1634_v32  ;;  %v5244_v15 = vsel %vm7517_vm13, %v1515_v16, -1.0 }
 0x570   : > { %v1636_v41 = vrot.slane %v1635_v3, 2 }
 0x572   : > { %v1637_v39 = vmax.f32 %v1635_v3, %v1636_v41 }
 0x574   : > { %v1638_v12 = vrot.slane %v1637_v39, 1  ;;  %v1525_v40 = vpop.permute.xlu1 %1524  ;;  %v1550_v56 = vpop.permute.xlu2 %1549 }
 0x575   : > { %v5249_v46 = vsel %vm7518_vm14, %v1525_v40, -1.0  ;;  %v1530_v43 = vpop.permute.xlu0 %1529  ;;  %v5281_v59 = vsel %vm7522_vm5, %v1550_v56, -1.0 }
 0x576   : > { %v5251_v60 = vmax.f32 %v1637_v39, %v1638_v12  ;;  %v1641_v41 = vmax.f32 %v5244_v15, %v5249_v46  ;;  %v5263_v16 = vsel %vm7520_vm6, %v1530_v43, -1.0  ;;  %v1640_v39 = vmax.f32 %v5239_v42, %v5258_v27 }
 0x578   : > { %vm7283_vm4 = vcmp.ge.f32.partialorder %v5251_v60, 0.0  ;;  %v5291_v3 = vmax.f32 %v1640_v39, %v5263_v16  ;;  %v5294_v40 = vmax.f32 %v1641_v41, %v5276_v28  ;;  %v7523_v41 = vld [vmem:[#allocation12_spill] sm:$0xff]  ;;  %v2675_v39 = vld [vmem:[#allocation3] sm:$0x1] }
 0x579   : > { %v5271_v12 = vsel %vm7283_vm4, %v5251_v60, 1e+30  ;;  %v5288_v32 = vsel %vm7283_vm4, %v5251_v60, 0.0 }
 0x57a   : > { %vm1665_vm1 = vcmp.ge.f32.partialorder %v5148_v49, %v5271_v12  ;;  %vm1666_vm7 = vcmp.ge.f32.partialorder %v5160_v23, %v5271_v12  ;;  %vm1667_vm2 = vcmp.ge.f32.partialorder %v5143_v38, %v5271_v12  ;;  %vm1668_vm0 = vcmp.ge.f32.partialorder %v5155_v37, %v5271_v12 }
 0x57b   : > { %vm1669_vm8 = vcmp.ge.f32.partialorder %v5165_v2, %v5271_v12  ;;  %vm1670_vm9 = vcmp.ge.f32.partialorder %v5170_v10, %v5271_v12  ;;  %vm1671_vm10 = vcmp.ge.f32.partialorder %v5184_v9, %v5271_v12  ;;  %vm1672_vm11 = vcmp.ge.f32.partialorder %v5178_v4, %v5271_v12 }
 0x57c   : > { %vm1673_vm12 = vcmp.ge.f32.partialorder %v5189_v48, %v5271_v12  ;;  %v5312_v25 = vpop.permute.xlu1 %1539  ;;  %vm1674_vm13 = vcmp.ge.f32.partialorder %v5202_v55, %v5271_v12  ;;  %vm1675_vm14 = vcmp.ge.f32.partialorder %v5196_v54, %v5271_v12  ;;  %vm1676_vm15 = vcmp.ge.f32.partialorder %v5207_v33, %v5271_v12 }
 0x57d   : > { %vm1677_vm6 = vcmp.ge.f32.partialorder %v5215_v18, %v5271_v12  ;;  %v5322_v43 = vpop.permute.xlu0 %1544  ;;  %vm1678_vm3 = vcmp.ge.f32.partialorder %v5220_v19, %v5271_v12  ;;  %vm1679_vm5 = vcmp.ge.f32.partialorder %v5227_v36, %v5271_v12  ;;  %vm1680_vm4 = vcmp.ge.f32.partialorder %v5232_v6, %v5271_v12  ;;  %v3491_v12 = vld [vmem:[#allocation2 + $0x88] sm:$0xff] }
 0x57e   : > { %v1697_v56 = vsel %vm1665_vm1, %v7523_v41, 128  ;;  %v1698_v31 = vsel %vm1666_vm7, %v7524_v1, 128  ;;  %v1699_v51 = vsel %vm1667_vm2, %v7525_v47, 128  ;;  %v1700_v17 = vsel %vm1668_vm0, %v7526_v34, 128 }
 0x57f   : > { %v1701_v49 = vsel %vm1669_vm8, %v7527_v57, 128  ;;  %v1702_v23 = vsel %vm1670_vm9, %v7528_v52, 128  ;;  %v1703_v38 = vsel %vm1671_vm10, %v7529_v14, 128  ;;  %v1704_v37 = vsel %vm1672_vm11, %v7530_v0, 128 }
 0x580   : > { %v1705_v2 = vsel %vm1673_vm12, %v7531_v8, 128  ;;  %v1706_v10 = vsel %vm1674_vm13, %v7532_v50, 128  ;;  %v1707_v9 = vsel %vm1675_vm14, %v7533_v7, 128  ;;  %v1708_v4 = vsel %vm1676_vm15, %v7534_v20, 128 }
 0x581   : > { %v5382_v48 = vsel %vm1677_vm6, %v7535_v53, 128  ;;  %vm1729_vm1 = vcmp.lt.s32.totalorder %v1697_v56, %v1699_v51  ;;  %vm1731_vm7 = vcmp.lt.s32.totalorder %v1698_v31, %v1700_v17  ;;  %v2677_v55 = vadd.f32 %v2675_v39, %v5288_v32  ;;  %v3487_v39 = vld [vmem:[#allocation2 + $0x18] sm:$0xff] }
 0x582   : > { %v2681_v29 = vsub.f32 %v3485_v24, %v5288_v32  ;;  %v1730_v54 = vsel %vm1729_vm1, %v1697_v56, %v1699_v51  ;;  %v1732_v58 = vsel %vm1731_vm7, %v1698_v31, %v1700_v17  ;;  %v2682_v21 = vsub.f32 %v3486_v35, %v5288_v32  ;;  %v7537_v51 = vld [vmem:[#allocation27_spill] sm:$0xff] }
 0x583   : > { %v2683_v33 = vsub.f32 %v4804_v45, %v5288_v32  ;;  %v1710_v18 = vsel %vm1678_vm3, %v7536_v26, 128  ;;  %vm1733_vm2 = vcmp.lt.s32.totalorder %v1730_v54, %v1701_v49  ;;  %vm1735_vm0 = vcmp.lt.s32.totalorder %v1732_v58, %v1702_v23  ;;  %2679 = vst [vmem:[#allocation3] sm:$0x1] %v2677_v55  ;;  %v3488_v45 = vld [vmem:[#allocation2 + $0x50] sm:$0xff] }
 0x584   : > { %v2684_v44 = vsub.f32 %v3487_v39, %v5288_v32  ;;  %v1555_v24 = vpop.permute.xlu1 %1554  ;;  %v1711_v31 = vsel %vm1679_vm5, %v7537_v51, 128  ;;  %v1734_v17 = vsel %vm1733_vm2, %v1730_v54, %v1701_v49  ;;  %v1736_v35 = vsel %vm1735_vm0, %v1732_v58, %v1702_v23  ;;  %2713 = vst [vmem:[#allocation2 + $0xb0] sm:$0xff] %v2681_v29  ;;  %v3489_v49 = vld [vmem:[#allocation2 + $0x30] sm:$0xff]  ;;  %v3490_v23 = vld [vmem:[#allocation2 + $0x48] sm:$0xff] }
 0x585   : > { %v2685_v56 = vsub.f32 %v3488_v45, %v5288_v32  ;;  %v1560_v19 = vpop.permute.xlu0 %1559  ;;  %v1712_v55 = vsel %vm1680_vm4, %v7538_v5, 128  ;;  %vm1737_vm8 = vcmp.lt.s32.totalorder %v1734_v17, %v1703_v38  ;;  %vm1739_vm9 = vcmp.lt.s32.totalorder %v1736_v35, %v1704_v37  ;;  %2714 = vst [vmem:[#allocation2] sm:$0xff] %v2682_v21 }
 0x586   : > { %v2686_v39 = vsub.f32 %v4824_v62, %v5288_v32  ;;  %v1738_v36 = vsel %vm1737_vm8, %v1734_v17, %v1703_v38  ;;  %v1740_v51 = vsel %vm1739_vm9, %v1736_v35, %v1704_v37  ;;  %v2687_v58 = vsub.f32 %v3489_v49, %v5288_v32  ;;  %2715 = vst [vmem:[#allocation2 + $0xd8] sm:$0xff] %v2683_v33  ;;  %v1565_v62 = vpop.permute.xlu2 %1564  ;;  %v3492_v37 = vld [vmem:[#allocation2 + $0xe8] sm:$0xff]  ;;  %v3493_v33 = vld [vmem:[#allocation2 + $0x60] sm:$0xff] }
 0x587   : > { %v2688_v29 = vsub.f32 %v3490_v23, %v5288_v32  ;;  %vm1741_vm10 = vcmp.lt.s32.totalorder %v1738_v36, %v1705_v2  ;;  %vm1743_vm11 = vcmp.lt.s32.totalorder %v1740_v51, %v1706_v10  ;;  %v2689_v6 = vsub.f32 %v4836_v63, %v5288_v32  ;;  %2716 = vst [vmem:[#allocation2 + $0x18] sm:$0xff] %v2684_v44 }
 0x588   : > { %v2690_v54 = vsub.f32 %v3491_v12, %v5288_v32  ;;  %v1742_v21 = vsel %vm1741_vm10, %v1738_v36, %v1705_v2  ;;  %v1744_v38 = vsel %vm1743_vm11, %v1740_v51, %v1706_v10  ;;  %v2691_v17 = vsub.f32 %v3492_v37, %v5288_v32  ;;  %2717 = vst [vmem:[#allocation2 + $0x50] sm:$0xff] %v2685_v56  ;;  %v3494_v10 = vld [vmem:[#allocation2 + $0xf0] sm:$0xff]  ;;  %v3495_v12 = vld [vmem:[#allocation2 + $0x78] sm:$0xff] }
 0x589   : > { %v2692_v35 = vsub.f32 %v4848_v13, %v5288_v32  ;;  %vm1745_vm4 = vcmp.lt.s32.totalorder %v1742_v21, %v1707_v9  ;;  %vm1747_vm12 = vcmp.lt.s32.totalorder %v1744_v38, %v1708_v4  ;;  %v2693_v45 = vsub.f32 %v3493_v33, %v5288_v32  ;;  %2718 = vst [vmem:[#allocation2 + $0x68] sm:$0xff] %v2686_v39 }
 0x58a   : > { %vm7539_vm13 = vcmp.eq.s32.totalorder %v7421_v11, %v4711_v30  ;;  %v1746_v44 = vsel %vm1745_vm4, %v1742_v21, %v1707_v9  ;;  %v1748_v2 = vsel %vm1747_vm12, %v1744_v38, %v1708_v4  ;;  %v2694_v51 = vsub.f32 %v3494_v10, %v5288_v32  ;;  %2719 = vst [vmem:[#allocation2 + $0x30] sm:$0xff] %v2687_v58 }
 0x58b   : > { %v5418_v63 = vsel %vm7539_vm13, %v5312_v25, -1.0  ;;  %vm1749_vm14 = vcmp.lt.s32.totalorder %v1746_v44, %v5382_v48  ;;  %vm1751_vm15 = vcmp.lt.s32.totalorder %v1748_v2, %v1710_v18  ;;  %2720 = vst [vmem:[#allocation2 + $0x48] sm:$0xff] %v2688_v29  ;;  %vm7540_vm6 = vcmp.eq.s32.totalorder %v7421_v11, %v4892_v61 }
 0x58c   : > { %v1644_v13 = vmax.f32 %v5291_v3, %v5418_v63  ;;  %v5428_v56 = vsel %vm7540_vm6, %v5322_v43, -1.0  ;;  %vm7541_vm3 = vcmp.eq.s32.totalorder %v7421_v11, %v4732_v22  ;;  %v1570_v9 = vpop.permute.xlu1 %1569  ;;  %v1750_v4 = vsel %vm1749_vm14, %v1746_v44, %v5382_v48  ;;  %v7542_v3 = vld [vmem:[#allocation88_spill] sm:$0xff]  ;;  %2721 = vst [vmem:[#allocation2 + $0x80] sm:$0xff] %v2689_v6 }
 0x58d   : > { %v5433_v25 = vsel %vm7541_vm3, %v1555_v24, -1.0  ;;  %v1752_v39 = vsel %vm1751_vm15, %v1748_v2, %v1710_v18  ;;  %v2695_v36 = vsub.f32 %v7542_v3, %v5288_v32  ;;  %v1645_v49 = vmax.f32 %v5294_v40, %v5428_v56  ;;  %v1575_v58 = vpop.permute.xlu0 %1574  ;;  %2722 = vst [vmem:[#allocation2 + $0x88] sm:$0xff] %v2690_v54  ;;  %v7543_v24 = vld [vmem:[#allocation93_spill] sm:$0xff]  ;;  %v7545_v6 = vld [vmem:[#allocation80_spill] sm:$0xff] }
 0x58e   : > { %vm1753_vm5 = vcmp.lt.s32.totalorder %v1750_v4, %v1711_v31  ;;  %vm1755_vm1 = vcmp.lt.s32.totalorder %v1752_v39, %v1712_v55  ;;  %v1646_v43 = vmax.f32 %v1644_v13, %v5281_v59  ;;  %vm7544_vm7 = vcmp.eq.s32.totalorder %v7421_v11, %v7543_v24  ;;  %2723 = vst [vmem:[#allocation2 + $0xe8] sm:$0xff] %v2691_v17  ;;  %v1580_v33 = vpop.permute.xlu2 %1579  ;;  %v7551_v2 = vld [vmem:[#allocation81_spill] sm:$0xff]  ;;  %v7553_v13 = vld [vmem:[#allocation90_spill] sm:$0xff] }
 0x58f   : > { %v5444_v23 = vsel %vm7544_vm7, %v1560_v19, -1.0  ;;  %v1754_v48 = vsel %vm1753_vm5, %v1750_v4, %v1711_v31  ;;  %v1756_v18 = vsel %vm1755_vm1, %v1752_v39, %v1712_v55  ;;  %v1647_v29 = vmax.f32 %v1645_v49, %v5433_v25  ;;  %2724 = vst [vmem:[#allocation2 + $0xb8] sm:$0xff] %v2692_v35  ;;  %v7547_v31 = vld [vmem:[#allocation79_spill] sm:$0xff] }
 0x590   : > { %vm7546_vm2 = vcmp.eq.s32.totalorder %v7421_v11, %v7545_v6  ;;  %vm1757_vm0 = vcmp.lt.s32.totalorder %v1754_v48, %v1756_v18  ;;  %v2696_v54 = vsub.f32 %v3495_v12, %v5288_v32  ;;  %v1648_v21 = vmax.f32 %v1646_v43, %v5444_v23  ;;  %2725 = vst [vmem:[#allocation2 + $0x60] sm:$0xff] %v2693_v45  ;;  %v7549_v55 = vld [vmem:[#allocation95_spill] sm:$0xff]  ;;  %v7556_v43 = vld [vmem:[#allocation82_spill] sm:$0xff] }
 0x591   : > { %v5450_v40 = vsel %vm7546_vm2, %v1570_v9, -1.0  ;;  %v1758_v38 = vsel %vm1757_vm0, %v1754_v48, %v1756_v18  ;;  %vm7548_vm8 = vcmp.eq.s32.totalorder %v7421_v11, %v7547_v31  ;;  %vm7550_vm9 = vcmp.eq.s32.totalorder %v7421_v11, %v7549_v55  ;;  %2726 = vst [vmem:[#allocation2 + $0xf0] sm:$0xff] %v2694_v51  ;;  %v3497_v55 = vld [vmem:[#allocation2 + $0x58] sm:$0xff]  ;;  %v3498_v6 = vld [vmem:[#allocation2 + $0x40] sm:$0xff] }
 0x592   : > { %v5457_v19 = vsel %vm7548_vm8, %v1565_v62, -1.0  ;;  %v5462_v37 = vsel %vm7550_vm9, %v1575_v58, -1.0  ;;  %v1759_v17 = vrot.slane %v1758_v38, 4  ;;  %v1650_v32 = vmax.f32 %v1648_v21, %v5450_v40  ;;  %2727 = vst [vmem:[#allocation2 + $0x8] sm:$0xff] %v2695_v36 }
 0x593   : > { %v1649_v35 = vmax.f32 %v1647_v29, %v5457_v19  ;;  %2728 = vst [vmem:[#allocation2 + $0x78] sm:$0xff] %v2696_v54  ;;  %vm7552_vm11 = vcmp.eq.s32.totalorder %v7421_v11, %v7551_v2  ;;  %vm7554_vm4 = vcmp.eq.s32.totalorder %v7421_v11, %v7553_v13  ;;  %vm7555_vm12 = vcmp.ge.f32.partialorder %v5251_v60, 0.0  ;;  %v7557_v29 = vld [vmem:[#allocation98_spill] sm:$0xff] }
 0x594   : > { %vm1760_vm10 = vcmp.lt.s32.totalorder %v1758_v38, %v1759_v17  ;;  %v1585_v44 = vpop.permute.xlu1 %1584  ;;  %v5470_v10 = vsel %vm7552_vm11, %v1580_v33, -1.0  ;;  %v5480_v4 = vsel %vm7555_vm12, %v7421_v11, 4294967294  ;;  %v7558_v12 = vmov 0   ;;  %v7559_v33 = vld [vmem:[#allocation94_spill] sm:$0xff] }
 0x595   : > { %v1651_v45 = vmax.f32 %v1649_v35, %v5462_v37  ;;  %v1761_v62 = vsel %vm1760_vm10, %v1758_v38, %v1759_v17  ;;  %v5475_v51 = vsel %vm7554_vm4, %v1585_v44, -1.0  ;;  %v1652_v39 = vmax.f32 %v1650_v32, %v5470_v10  ;;  %v1920_v36 = vpop.permute.xlu0 %1919 }
 0x596   : > { %v1762_v9 = vrot.slane %v1761_v62, 2  ;;  %vm1971_vm14 = vcmp.eq.s32.totalorder %v7556_v43, %v5480_v4  ;;  %vm1984_vm15 = vcmp.eq.s32.totalorder %v1920_v36, %v5480_v4  ;;  %vm1970_vm6 = vcmp.eq.s32.totalorder %v7557_v29, %v5480_v4 }
 0x597   : > { %v1653_v3 = vmax.f32 %v1651_v45, %v5475_v51  ;;  %v2003_v54 = vsel %vm1971_vm14, 2, %v7558_v12  ;;  %v2016_v38 = vsel %vm1984_vm15, 2, %v7558_v12  ;;  %v2002_v17 = vsel %vm1970_vm6, 2, %v7558_v12 }
 0x598   : > { %vm1763_vm13 = vcmp.lt.s32.totalorder %v1761_v62, %v1762_v9  ;;  %vm1969_vm5 = vcmp.eq.s32.totalorder %v7559_v33, %v5480_v4 }
 0x599   : > { %v1654_v49 = vmax.f32 %v1652_v39, %v1653_v3  ;;  %v1764_v58 = vsel %vm1763_vm13, %v1761_v62, %v1762_v9 }
 0x59a   : > { %v1765_v48 = vrot.slane %v1764_v58, 1 }
 0x59b   : > { %v1655_v18 = vrot.slane %v1654_v49, 4 }
 0x59c   : > { %vm1766_vm3 = vcmp.lt.s32.totalorder %v1764_v58, %v1765_v48 }
 0x59d   : > { %v1656_v60 = vmax.f32 %v1654_v49, %v1655_v18  ;;  %v5490_v21 = vsel %vm1766_vm3, %v1764_v58, %v1765_v48  ;;  %v2001_v49 = vsel %vm1969_vm5, 2, %v7558_v12  ;;  %v7560_v58 = vld [vmem:[#allocation99_spill] sm:$0xff] }
 0x59e   : > { %vm1824_vm1 = vcmp.eq.s32.totalorder %v7538_v5, %v5490_v21  ;;  %vm1811_vm7 = vcmp.eq.s32.totalorder %v7525_v47, %v5490_v21  ;;  %vm1810_vm2 = vcmp.eq.s32.totalorder %v7524_v1, %v5490_v21  ;;  %vm1809_vm0 = vcmp.eq.s32.totalorder %v7523_v41, %v5490_v21 }
 0x59f   : > { %v1657_v32 = vrot.slane %v1656_v60, 2  ;;  %v1856_v35 = vsel %vm1824_vm1, 1, %v7558_v12  ;;  %v1843_v45 = vsel %vm1811_vm7, 1, %v7558_v12  ;;  %v1842_v44 = vsel %vm1810_vm2, 1, %v7558_v12 }
 0x5a0   : > { %v5507_v9 = vadd.s32 %v2016_v38, %v1856_v35  ;;  %v5509_v39 = vadd.s32 %v2003_v54, %v1843_v45  ;;  %v5511_v3 = vadd.s32 %v2002_v17, %v1842_v44  ;;  %v1841_v36 = vsel %vm1809_vm0, 1, %v7558_v12  ;;  %v7561_v35 = vld [vmem:[#allocation83_spill] sm:$0xff]  ;;  %v7562_v45 = vld [vmem:[#allocation96_spill] sm:$0xff] }
 0x5a1   : > { %v1658_v62 = vmax.f32 %v1656_v60, %v1657_v32  ;;  %vm1813_vm8 = vcmp.eq.s32.totalorder %v7527_v57, %v5490_v21  ;;  %vm1973_vm9 = vcmp.eq.s32.totalorder %v7560_v58, %v5480_v4  ;;  %v5521_v29 = vadd.s32 %v2001_v49, %v1841_v36 }
 0x5a2   : > { %v2094_v48 = vshra.s32 %v5509_v39, 16  ;;  %v2080_v18 = vshra.s32 %v5511_v3, 16  ;;  %v1845_v60 = vsel %vm1813_vm8, 1, %v7558_v12  ;;  %vm1814_vm10 = vcmp.eq.s32.totalorder %v7528_v52, %v5490_v21 }
 0x5a3   : > { %v1659_v43 = vrot.slane %v1658_v62, 1  ;;  %vm1812_vm11 = vcmp.eq.s32.totalorder %v7526_v34, %v5490_v21  ;;  %v2066_v33 = vshra.s32 %v5521_v29, 16  ;;  %v2005_v32 = vsel %vm1973_vm9, 2, %v7558_v12 }
 0x5a4   : > { %v5530_v38 = vcvt.s32.f32 %v2094_v48  ;;  %v5532_v17 = vcvt.s32.f32 %v2080_v18  ;;  %vm1974_vm4 = vcmp.eq.s32.totalorder %v7561_v35, %v5480_v4  ;;  %vm1972_vm12 = vcmp.eq.s32.totalorder %v7562_v45, %v5480_v4 }
 0x5a5   : > { %v5528_v54 = vmax.f32 %v1658_v62, %v1659_v43  ;;  %v5543_v44 = vcvt.s32.f32 %v2066_v33  ;;  %v1846_v62 = vsel %vm1814_vm10, 1, %v7558_v12  ;;  %v1844_v36 = vsel %vm1812_vm11, 1, %v7558_v12 }
 0x5a6   : > { %2097 = vmax.xlane.f32.xlu2 %v5530_v38  ;;  %2083 = vmax.xlane.f32.xlu0 %v5532_v17  ;;  %v5552_v58 = vadd.s32 %v2005_v32, %v1845_v60  ;;  %v2006_v43 = vsel %vm1974_vm4, 2, %v7558_v12  ;;  %v2004_v48 = vsel %vm1972_vm12, 2, %v7558_v12  ;;  %vm1816_vm14 = vcmp.eq.s32.totalorder %v7530_v0, %v5490_v21 }
 0x5a7   : > { %vm1662_vm13 = vcmp.ge.f32.partialorder %v5528_v54, 0.0  ;;  %2069 = vmax.xlane.f32.xlu1 %v5543_v44  ;;  %v5559_v18 = vadd.s32 %v2006_v43, %v1846_v62  ;;  %v5561_v33 = vadd.s32 %v2004_v48, %v1844_v36  ;;  %v3496_v48 = vld [vmem:[#allocation2 + $0x38] sm:$0xff] }
 0x5a8   : > { %v5550_v49 = vsel %vm1662_vm13, %v5528_v54, 1e+30  ;;  %v5576_v60 = vsel %vm1662_vm13, %v5528_v54, 0.0 }
 0x5a9   : > { %vm1681_vm15 = vcmp.ge.f32.partialorder %v5239_v42, %v5550_v49  ;;  %vm1682_vm6 = vcmp.ge.f32.partialorder %v5244_v15, %v5550_v49  ;;  %vm1683_vm3 = vcmp.ge.f32.partialorder %v5258_v27, %v5550_v49  ;;  %vm1684_vm5 = vcmp.ge.f32.partialorder %v5249_v46, %v5550_v49  ;;  %v2676_v15 = vld [vmem:[#allocation3 + $0x1] sm:$0x1] }
 0x5aa   : > { %vm1685_vm1 = vcmp.ge.f32.partialorder %v5263_v16, %v5550_v49  ;;  %v5580_v42 = vsel %vm1816_vm14, 1, %v7558_v12  ;;  %vm1686_vm7 = vcmp.ge.f32.partialorder %v5276_v28, %v5550_v49  ;;  %vm1687_vm2 = vcmp.ge.f32.partialorder %v5418_v63, %v5550_v49  ;;  %v7563_v28 = vld [vmem:[#allocation37_spill] sm:$0xff] }
 0x5ab   : > { %vm1688_vm0 = vcmp.ge.f32.partialorder %v5428_v56, %v5550_v49  ;;  %vm1689_vm8 = vcmp.ge.f32.partialorder %v5281_v59, %v5550_v49  ;;  %v1713_v46 = vsel %vm1681_vm15, %v7523_v41, 128  ;;  %v1714_v27 = vsel %vm1682_vm6, %v7524_v1, 128 }
 0x5ac   : > { %v1715_v35 = vsel %vm1683_vm3, %v7525_v47, 128  ;;  %v1716_v45 = vsel %vm1684_vm5, %v7526_v34, 128  ;;  %vm1690_vm9 = vcmp.ge.f32.partialorder %v5433_v25, %v5550_v49  ;;  %vm1691_vm10 = vcmp.ge.f32.partialorder %v5444_v23, %v5550_v49 }
 0x5ad   : > { %vm1692_vm11 = vcmp.ge.f32.partialorder %v5457_v19, %v5550_v49  ;;  %vm1693_vm4 = vcmp.ge.f32.partialorder %v5450_v40, %v5550_v49  ;;  %vm1694_vm12 = vcmp.ge.f32.partialorder %v5462_v37, %v5550_v49  ;;  %vm1695_vm14 = vcmp.ge.f32.partialorder %v5470_v10, %v5550_v49  ;;  %v3509_v10 = vld [vmem:[#allocation2 + $0xf8] sm:$0xff] }
 0x5ae   : > { %v1717_v62 = vsel %vm1685_vm1, %v7527_v57, 128  ;;  %v1718_v36 = vsel %vm1686_vm7, %v7528_v52, 128  ;;  %vm1696_vm15 = vcmp.ge.f32.partialorder %v5475_v51, %v5550_v49  ;;  %vm1768_vm6 = vcmp.lt.s32.totalorder %v1713_v46, %v1715_v35  ;;  %v3510_v49 = vld [vmem:[#allocation2 + $0x20] sm:$0xff] }
 0x5af   : > { %vm1770_vm3 = vcmp.lt.s32.totalorder %v1714_v27, %v1716_v45  ;;  %v2678_v43 = vadd.f32 %v2676_v15, %v5576_v60  ;;  %v2697_v32 = vsub.f32 %v3496_v48, %v5576_v60  ;;  %v1769_v13 = vsel %vm1768_vm6, %v1713_v46, %v1715_v35  ;;  %v3499_v15 = vld [vmem:[#allocation2 + $0xc8] sm:$0xff]  ;;  %v3500_v35 = vld [vmem:[#allocation2 + $0xe0] sm:$0xff] }
 0x5b0   : > { %v1771_v2 = vsel %vm1770_vm3, %v1714_v27, %v1716_v45  ;;  %v2698_v16 = vsub.f32 %v3497_v55, %v5576_v60  ;;  %v2699_v31 = vsub.f32 %v3498_v6, %v5576_v60  ;;  %vm1976_vm5 = vcmp.eq.s32.totalorder %v7563_v28, %v5480_v4 }
 0x5b1   : > { %v1719_v24 = vsel %vm1687_vm2, %v7529_v14, 128  ;;  %vm1772_vm1 = vcmp.lt.s32.totalorder %v1769_v13, %v1717_v62  ;;  %vm1774_vm7 = vcmp.lt.s32.totalorder %v1771_v2, %v1718_v36  ;;  %2680 = vst [vmem:[#allocation3 + $0x1] sm:$0x1] %v2678_v43  ;;  %v2700_v46 = vsub.f32 %v3499_v15, %v5576_v60  ;;  %v3501_v43 = vld [vmem:[#allocation2 + $0x90] sm:$0xff] }
 0x5b2   : > { %v1720_v55 = vsel %vm1688_vm0, %v7530_v0, 128  ;;  %v1773_v6 = vsel %vm1772_vm1, %v1769_v13, %v1717_v62  ;;  %v1775_v27 = vsel %vm1774_vm7, %v1771_v2, %v1718_v36  ;;  %v2701_v45 = vsub.f32 %v3500_v35, %v5576_v60  ;;  %2729 = vst [vmem:[#allocation2 + $0x38] sm:$0xff] %v2697_v32  ;;  %v3502_v62 = vld [vmem:[#allocation2 + $0x70] sm:$0xff]  ;;  %v3503_v36 = vld [vmem:[#allocation2 + $0xc0] sm:$0xff] }
 0x5b3   : > { %v1721_v63 = vsel %vm1689_vm8, %v7531_v8, 128  ;;  %vm1776_vm2 = vcmp.lt.s32.totalorder %v1773_v6, %v1719_v24  ;;  %vm1778_vm6 = vcmp.lt.s32.totalorder %v1775_v27, %v1720_v55  ;;  %v2702_v48 = vsub.f32 %v3501_v43, %v5576_v60  ;;  %2730 = vst [vmem:[#allocation2 + $0x58] sm:$0xff] %v2698_v16  ;;  %v7564_v43 = vld [vmem:[#allocation27_spill] sm:$0xff] }
 0x5b4   : > { %v1722_v56 = vsel %vm1690_vm9, %v7532_v50, 128  ;;  %v1777_v2 = vsel %vm1776_vm2, %v1773_v6, %v1719_v24  ;;  %v1779_v13 = vsel %vm1778_vm6, %v1775_v27, %v1720_v55  ;;  %v2703_v32 = vsub.f32 %v3502_v62, %v5576_v60  ;;  %2731 = vst [vmem:[#allocation2 + $0x40] sm:$0xff] %v2699_v31  ;;  %v3504_v55 = vld [vmem:[#allocation2 + $0xa8] sm:$0xff]  ;;  %v3505_v6 = vld [vmem:[#allocation2 + $0xd0] sm:$0xff]  ;;  %v3508_v62 = vld [vmem:[#allocation2 + $0xa0] sm:$0xff] }
 0x5b5   : > { %v1723_v59 = vsel %vm1691_vm10, %v7533_v7, 128  ;;  %vm1780_vm0 = vcmp.lt.s32.totalorder %v1777_v2, %v1721_v63  ;;  %vm1782_vm8 = vcmp.lt.s32.totalorder %v1779_v13, %v1722_v56  ;;  %v2704_v16 = vsub.f32 %v3503_v36, %v5576_v60  ;;  %2732 = vst [vmem:[#allocation2 + $0xc8] sm:$0xff] %v2700_v46 }
 0x5b6   : > { %v1724_v25 = vsel %vm1692_vm11, %v7534_v20, 128  ;;  %v1781_v24 = vsel %vm1780_vm0, %v1777_v2, %v1721_v63  ;;  %v1783_v15 = vsel %vm1782_vm8, %v1779_v13, %v1722_v56  ;;  %v2705_v31 = vsub.f32 %v3504_v55, %v5576_v60  ;;  %2733 = vst [vmem:[#allocation2 + $0xe0] sm:$0xff] %v2701_v45  ;;  %v3506_v63 = vld [vmem:[#allocation2 + $0x10] sm:$0xff]  ;;  %v3507_v56 = vld [vmem:[#allocation2 + $0x28] sm:$0xff] }
 0x5b7   : > { %v1725_v23 = vsel %vm1693_vm4, %v7535_v53, 128  ;;  %vm1784_vm9 = vcmp.lt.s32.totalorder %v1781_v24, %v1723_v59  ;;  %vm1786_vm10 = vcmp.lt.s32.totalorder %v1783_v15, %v1724_v25  ;;  %v2706_v46 = vsub.f32 %v3505_v6, %v5576_v60  ;;  %2734 = vst [vmem:[#allocation2 + $0x90] sm:$0xff] %v2702_v48 }
 0x5b8   : > { %v1726_v19 = vsel %vm1694_vm12, %v7536_v26, 128  ;;  %v1785_v27 = vsel %vm1784_vm9, %v1781_v24, %v1723_v59  ;;  %v1787_v35 = vsel %vm1786_vm10, %v1783_v15, %v1724_v25  ;;  %v2707_v45 = vsub.f32 %v3506_v63, %v5576_v60  ;;  %2735 = vst [vmem:[#allocation2 + $0x70] sm:$0xff] %v2703_v32  ;;  %v7565_v24 = vld [vmem:[#allocation76_spill] sm:$0xff]  ;;  %v3511_v15 = vld [vmem:[#allocation2 + $0x98] sm:$0xff] }
 0x5b9   : > { %v1727_v40 = vsel %vm1695_vm14, %v7564_v43, 128  ;;  %vm1788_vm11 = vcmp.lt.s32.totalorder %v1785_v27, %v1725_v23  ;;  %vm1790_vm4 = vcmp.lt.s32.totalorder %v1787_v35, %v1726_v19  ;;  %v2708_v48 = vsub.f32 %v3507_v56, %v5576_v60  ;;  %2736 = vst [vmem:[#allocation2 + $0xc0] sm:$0xff] %v2704_v16 }
 0x5ba   : > { %v1728_v37 = vsel %vm1696_vm15, %v7538_v5, 128  ;;  %v1789_v2 = vsel %vm1788_vm11, %v1785_v27, %v1725_v23  ;;  %v1791_v13 = vsel %vm1790_vm4, %v1787_v35, %v1726_v19  ;;  %v2709_v32 = vsub.f32 %v3508_v62, %v5576_v60  ;;  %2737 = vst [vmem:[#allocation2 + $0xa8] sm:$0xff] %v2705_v31 }
 0x5bb   : > { %vm1792_vm12 = vcmp.lt.s32.totalorder %v1789_v2, %v1727_v40  ;;  %vm1794_vm3 = vcmp.lt.s32.totalorder %v1791_v13, %v1728_v37  ;;  %v2710_v59 = vsub.f32 %v3509_v10, %v5576_v60  ;;  %2738 = vst [vmem:[#allocation2 + $0xd0] sm:$0xff] %v2706_v46  ;;  %v2008_v36 = vsel %vm1976_vm5, 2, %v7558_v12 }
 0x5bc   : > { %v1793_v16 = vsel %vm1792_vm12, %v1789_v2, %v1727_v40  ;;  %v1795_v51 = vsel %vm1794_vm3, %v1791_v13, %v1728_v37  ;;  %v2711_v25 = vsub.f32 %v3510_v49, %v5576_v60  ;;  %2739 = vst [vmem:[#allocation2 + $0x10] sm:$0xff] %v2707_v45  ;;  %vm1977_vm14 = vcmp.eq.s32.totalorder %v7565_v24, %v5480_v4 }
 0x5bd   : > { %vm1796_vm15 = vcmp.lt.s32.totalorder %v1793_v16, %v1795_v51  ;;  %v2712_v55 = vsub.f32 %v3511_v15, %v5576_v60  ;;  %2740 = vst [vmem:[#allocation2 + $0x28] sm:$0xff] %v2708_v48  ;;  %v7566_v31 = vshra.s32 %v5552_v58, 16  ;;  %v5686_v28 = vadd.s32 %v2008_v36, %v5580_v42  ;;  %v7567_v42 = vld [vmem:[#allocation97_spill] sm:$0xff]  ;;  %v1923_v15 = vpop.permute.xlu2 %1922 }
 0x5be   : > { %v1797_v6 = vsel %vm1796_vm15, %v1793_v16, %v1795_v51  ;;  %2741 = vst [vmem:[#allocation2 + $0xa0] sm:$0xff] %v2709_v32  ;;  %v2136_v46 = vshra.s32 %v5559_v18, 16  ;;  %v2108_v19 = vshra.s32 %v5561_v33, 16  ;;  %vm1817_vm5 = vcmp.eq.s32.totalorder %v7531_v8, %v5490_v21  ;;  %v7568_v51 = vld [vmem:[#allocation39_spill] sm:$0xff] }
 0x5bf   : > { %v5683_v23 = vcvt.s32.f32 %v7566_v31  ;;  %v1798_v27 = vrot.slane %v1797_v6, 4  ;;  %2742 = vst [vmem:[#allocation2 + $0xf8] sm:$0xff] %v2710_v59  ;;  %vm1975_vm1 = vcmp.eq.s32.totalorder %v7567_v42, %v5480_v4  ;;  %v2164_v63 = vshra.s32 %v5686_v28, 16  ;;  %v1926_v42 = vpop.permute.xlu1 %1925 }
 0x5c0   : > { %2743 = vst [vmem:[#allocation2 + $0x20] sm:$0xff] %v2711_v25  ;;  %v5693_v60 = vcvt.s32.f32 %v2136_v46  ;;  %v5695_v35 = vcvt.s32.f32 %v2108_v19  ;;  %v1849_v45 = vsel %vm1817_vm5, 1, %v7558_v12  ;;  %v2009_v40 = vsel %vm1977_vm14, 2, %v7558_v12  ;;  %v7570_v46 = vld [vmem:[#allocation38_spill] sm:$0xff] }
 0x5c1   : > { %2125 = vmax.xlane.f32.xlu2 %v5683_v23  ;;  %vm1799_vm7 = vcmp.lt.s32.totalorder %v1797_v6, %v1798_v27  ;;  %2744 = vst [vmem:[#allocation2 + $0x98] sm:$0xff] %v2712_v55  ;;  %v5707_v48 = vadd.s32 %v2009_v40, %v1849_v45  ;;  %vm1815_vm2 = vcmp.eq.s32.totalorder %v7529_v14, %v5490_v21  ;;  %v2007_v13 = vsel %vm1975_vm1, 2, %v7558_v12 }
 0x5c2   : > { %v1800_v56 = vsel %vm1799_vm7, %v1797_v6, %v1798_v27  ;;  %2139 = vmax.xlane.f32.xlu0 %v5693_v60  ;;  %2111 = vmax.xlane.f32.xlu1 %v5695_v35  ;;  %v1847_v2 = vsel %vm1815_vm2, 1, %v7558_v12  ;;  %v5716_v10 = vcvt.s32.f32 %v2164_v63  ;;  %vm1819_vm0 = vcmp.eq.s32.totalorder %v7533_v7, %v5490_v21  ;;  %v7569_v6 = vld [vmem:[#allocation35_spill] sm:$0xff] }
 0x5c3   : > { %v1801_v37 = vrot.slane %v1800_v56, 2  ;;  %v2178_v62 = vshra.s32 %v5707_v48, 16  ;;  %v5714_v32 = vadd.s32 %v2007_v13, %v1847_v2  ;;  %vm1979_vm8 = vcmp.eq.s32.totalorder %v7568_v51, %v5480_v4  ;;  %v7571_v13 = vld [vmem:[#allocation36_spill] sm:$0xff] }
 0x5c4   : > { %v1851_v25 = vsel %vm1819_vm0, 1, %v7558_v12  ;;  %vm1820_vm9 = vcmp.eq.s32.totalorder %v7534_v20, %v5490_v21  ;;  %vm1818_vm10 = vcmp.eq.s32.totalorder %v7532_v50, %v5490_v21  ;;  %v2011_v24 = vsel %vm1979_vm8, 2, %v7558_v12 }
 0x5c5   : > { %vm1802_vm6 = vcmp.lt.s32.totalorder %v1800_v56, %v1801_v37  ;;  %v2150_v59 = vshra.s32 %v5714_v32, 16  ;;  %v5722_v36 = vcvt.s32.f32 %v2178_v62  ;;  %v5736_v31 = vadd.s32 %v2011_v24, %v1851_v25  ;;  %v7572_v62 = vld [vmem:[#allocation43_spill] sm:$0xff] }
 0x5c6   : > { %v1803_v49 = vsel %vm1802_vm6, %v1800_v56, %v1801_v37  ;;  %vm1980_vm11 = vcmp.eq.s32.totalorder %v7569_v6, %v5480_v4  ;;  %vm1978_vm4 = vcmp.eq.s32.totalorder %v7570_v46, %v5480_v4  ;;  %v1852_v19 = vsel %vm1820_vm9, 1, %v7558_v12  ;;  %v1929_v46 = vpop.permute.xlu0 %1928 }
 0x5c7   : > { %v5724_v16 = vcvt.s32.f32 %v2150_v59  ;;  %v1804_v55 = vrot.slane %v1803_v49, 1  ;;  %v1850_v27 = vsel %vm1818_vm10, 1, %v7558_v12  ;;  %v2012_v63 = vsel %vm1980_vm11, 2, %v7558_v12 }
 0x5c8   : > { %v2010_v45 = vsel %vm1978_vm4, 2, %v7558_v12  ;;  %v2206_v40 = vshra.s32 %v5736_v31, 16  ;;  %v5747_v56 = vadd.s32 %v2012_v63, %v1852_v19  ;;  %vm1982_vm3 = vcmp.eq.s32.totalorder %v7571_v13, %v5480_v4  ;;  %v1935_v13 = vpop.permute.xlu1 %1934 }
 0x5c9   : > { %2167 = vmax.xlane.f32.xlu2 %v5716_v10  ;;  %vm1805_vm12 = vcmp.lt.s32.totalorder %v1803_v49, %v1804_v55  ;;  %v5749_v37 = vadd.s32 %v2010_v45, %v1850_v27  ;;  %vm1983_vm14 = vcmp.eq.s32.totalorder %v7572_v62, %v5480_v4  ;;  %v5760_v59 = vsel %vm1662_vm13, %v7421_v11, 4294967294 }
 0x5ca   : > { %2181 = vmax.xlane.f32.xlu0 %v5722_v36  ;;  %2153 = vmax.xlane.f32.xlu1 %v5724_v16  ;;  %v5751_v2 = vsel %vm1805_vm12, %v1803_v49, %v1804_v55  ;;  %v5762_v51 = vcvt.s32.f32 %v2206_v40  ;;  %v2220_v25 = vshra.s32 %v5747_v56, 16  ;;  %v7573_v49 = vld [vmem:[#allocation42_spill] sm:$0xff]  ;;  %v1932_v55 = vpop.permute.xlu2 %1931  ;;  %v2014_v11 = vsel %vm1982_vm3, 2, %v7558_v12 }
 0x5cb   : > { %v2192_v24 = vshra.s32 %v5749_v37, 16  ;;  %vm1981_vm15 = vcmp.eq.s32.totalorder %v7573_v49, %v5480_v4  ;;  %vm1826_vm5 = vcmp.eq.s32.totalorder %v7524_v1, %v5751_v2  ;;  %vm1986_vm13 = vcmp.eq.s32.totalorder %v1926_v42, %v5760_v59 }
 0x5cc   : > { %v5771_v6 = vcvt.s32.f32 %v2220_v25  ;;  %vm1822_vm1 = vcmp.eq.s32.totalorder %v7536_v26, %v5490_v21  ;;  %vm1823_vm7 = vcmp.eq.s32.totalorder %v7564_v43, %v5490_v21  ;;  %v2015_v19 = vsel %vm1983_vm14, 2, %v7558_v12 }
 0x5cd   : > { %v5773_v54 = vcvt.s32.f32 %v2192_v24  ;;  %v1854_v27 = vsel %vm1822_vm1, 1, %v7558_v12  ;;  %v1855_v63 = vsel %vm1823_vm7, 1, %v7558_v12  ;;  %vm1821_vm2 = vcmp.eq.s32.totalorder %v7535_v53, %v5490_v21 }
 0x5ce   : > { %v2013_v45 = vsel %vm1981_vm15, 2, %v7558_v12  ;;  %v1858_v40 = vsel %vm1826_vm5, 1, %v7558_v12  ;;  %v5799_v62 = vadd.s32 %v2014_v11, %v1854_v27  ;;  %v5801_v25 = vadd.s32 %v2015_v19, %v1855_v63 }
 0x5cf   : > { %v1853_v24 = vsel %vm1821_vm2, 1, %v7558_v12  ;;  %v2018_v21 = vsel %vm1986_vm13, 2, %v7558_v12  ;;  %vm1825_vm6 = vcmp.eq.s32.totalorder %v7523_v41, %v5751_v2  ;;  %vm1985_vm0 = vcmp.eq.s32.totalorder %v1923_v15, %v5760_v59 }
 0x5d0   : > { %v5807_v22 = vadd.s32 %v2013_v45, %v1853_v24  ;;  %v2248_v4 = vshra.s32 %v5799_v62, 16  ;;  %v2262_v49 = vshra.s32 %v5801_v25, 16  ;;  %v1857_v11 = vsel %vm1825_vm6, 1, %v7558_v12 }
 0x5d1   : > { %2209 = vmax.xlane.f32.xlu2 %v5762_v51  ;;  %v2017_v19 = vsel %vm1985_vm0, 2, %v7558_v12  ;;  %v5816_v27 = vadd.s32 %v2018_v21, %v1858_v40  ;;  %vm1828_vm8 = vcmp.eq.s32.totalorder %v7526_v34, %v5751_v2  ;;  %vm1827_vm9 = vcmp.eq.s32.totalorder %v7525_v47, %v5751_v2  ;;  %v1938_v21 = vpop.permute.xlu0 %1937 }
 0x5d2   : > { %2223 = vmax.xlane.f32.xlu0 %v5771_v6  ;;  %2195 = vmax.xlane.f32.xlu1 %v5773_v54  ;;  %v2234_v42 = vshra.s32 %v5807_v22, 16  ;;  %v5819_v63 = vadd.s32 %v2017_v19, %v1857_v11  ;;  %v5821_v45 = vcvt.s32.f32 %v2248_v4  ;;  %v5823_v24 = vcvt.s32.f32 %v2262_v49  ;;  %v1941_v41 = vpop.permute.xlu2 %1940 }
 0x5d3   : > { %7574 = vst [vmem:[#allocation41_spill] sm:$0xff] %v5816_v27  ;;  %vm1829_vm10 = vcmp.eq.s32.totalorder %v7527_v57, %v5751_v2  ;;  %v2304_v40 = vshra.s32 %v5816_v27, 16  ;;  %vm1988_vm11 = vcmp.eq.s32.totalorder %v1932_v55, %v5760_v59  ;;  %v1860_v4 = vsel %vm1828_vm8, 1, %v7558_v12 }
 0x5d4   : > { %v5825_v1 = vcvt.s32.f32 %v2234_v42  ;;  %v2290_v15 = vshra.s32 %v5819_v63, 16  ;;  %vm1987_vm4 = vcmp.eq.s32.totalorder %v1929_v46, %v5760_v59  ;;  %vm1989_vm12 = vcmp.eq.s32.totalorder %v1935_v13, %v5760_v59  ;;  %v1944_v42 = vpop.permute.xlu1 %1943 }
 0x5d5   : > { %v2276_v49 = vshra.s32 %v5507_v9, 16  ;;  %v1859_v11 = vsel %vm1827_vm9, 1, %v7558_v12  ;;  %v1861_v19 = vsel %vm1829_vm10, 1, %v7558_v12  ;;  %v2020_v47 = vsel %vm1988_vm11, 2, %v7558_v12 }
 0x5d6   : > { %v5845_v34 = vcvt.s32.f32 %v2290_v15  ;;  %v5848_v57 = vcvt.s32.f32 %v2304_v40  ;;  %v5850_v55 = vadd.s32 %v2020_v47, %v1860_v4  ;;  %v2019_v61 = vsel %vm1987_vm4, 2, %v7558_v12 }
 0x5d7   : > { %v2021_v46 = vsel %vm1989_vm12, 2, %v7558_v12  ;;  %v5854_v13 = vadd.s32 %v2019_v61, %v1859_v11  ;;  %v5858_v27 = vcvt.s32.f32 %v2276_v49  ;;  %vm1831_vm3 = vcmp.eq.s32.totalorder %v7529_v14, %v5751_v2 }
 0x5d8   : > { %7575 = vst [vmem:[#allocation46_spill] sm:$0xff] %v5850_v55  ;;  %v5856_v30 = vadd.s32 %v2021_v46, %v1861_v19  ;;  %vm1830_vm14 = vcmp.eq.s32.totalorder %v7528_v52, %v5751_v2  ;;  %vm1832_vm15 = vcmp.eq.s32.totalorder %v7530_v0, %v5751_v2  ;;  %vm1991_vm5 = vcmp.eq.s32.totalorder %v1941_v41, %v5760_v59 }
 0x5d9   : > { %2251 = vmax.xlane.f32.xlu2 %v5821_v45  ;;  %7576 = vst [vmem:[#allocation45_spill] sm:$0xff] %v5854_v13  ;;  %vm1990_vm13 = vcmp.eq.s32.totalorder %v1938_v21, %v5760_v59  ;;  %v2332_v47 = vshra.s32 %v5850_v55, 16  ;;  %v1863_v61 = vsel %vm1831_vm3, 1, %v7558_v12  ;;  %vm1992_vm1 = vcmp.eq.s32.totalorder %v1944_v42, %v5760_v59  ;;  %v1947_v19 = vpop.permute.xlu0 %1946 }
 0x5da   : > { %2265 = vmax.xlane.f32.xlu0 %v5823_v24  ;;  %2237 = vmax.xlane.f32.xlu1 %v5825_v1  ;;  %7577 = vst [vmem:[#allocation44_spill] sm:$0xff] %v5856_v30  ;;  %v1950_v15 = vpop.permute.xlu2 %1949  ;;  %v2318_v40 = vshra.s32 %v5854_v13, 16  ;;  %v2346_v4 = vshra.s32 %v5856_v30, 16  ;;  %v1862_v49 = vsel %vm1830_vm14, 1, %v7558_v12  ;;  %v1864_v11 = vsel %vm1832_vm15, 1, %v7558_v12 }
 0x5db   : > { %v2023_v41 = vsel %vm1991_vm5, 2, %v7558_v12  ;;  %v2022_v21 = vsel %vm1990_vm13, 2, %v7558_v12  ;;  %v2024_v0 = vsel %vm1992_vm1, 2, %v7558_v12  ;;  %v5883_v52 = vcvt.s32.f32 %v2332_v47 }
 0x5dc   : > { %v5879_v46 = vadd.s32 %v2023_v41, %v1863_v61  ;;  %v1953_v14 = vpop.permute.xlu1 %1952  ;;  %v5885_v42 = vadd.s32 %v2022_v21, %v1862_v49  ;;  %v5887_v55 = vadd.s32 %v2024_v0, %v1864_v11  ;;  %v5889_v30 = vcvt.s32.f32 %v2318_v40 }
 0x5dd   : > { %v5891_v13 = vcvt.s32.f32 %v2346_v4  ;;  %vm1834_vm7 = vcmp.eq.s32.totalorder %v7532_v50, %v5751_v2  ;;  %vm1833_vm2 = vcmp.eq.s32.totalorder %v7531_v8, %v5751_v2  ;;  %vm1835_vm6 = vcmp.eq.s32.totalorder %v7533_v7, %v5751_v2 }
 0x5de   : > { %7578 = vst [vmem:[#allocation49_spill] sm:$0xff] %v5879_v46  ;;  %vm1994_vm0 = vcmp.eq.s32.totalorder %v1950_v15, %v5760_v59  ;;  %vm1993_vm8 = vcmp.eq.s32.totalorder %v1947_v19, %v5760_v59  ;;  %v2374_v0 = vshra.s32 %v5879_v46, 16  ;;  %v1866_v47 = vsel %vm1834_vm7, 1, %v7558_v12 }
 0x5df   : > { %7579 = vst [vmem:[#allocation48_spill] sm:$0xff] %v5887_v55  ;;  %vm1995_vm9 = vcmp.eq.s32.totalorder %v1953_v14, %v5760_v59  ;;  %v2360_v61 = vshra.s32 %v5885_v42, 16  ;;  %v2388_v40 = vshra.s32 %v5887_v55, 16  ;;  %v1865_v4 = vsel %vm1833_vm2, 1, %v7558_v12 }
 0x5e0   : > { %v1867_v49 = vsel %vm1835_vm6, 1, %v7558_v12  ;;  %v2026_v11 = vsel %vm1994_vm0, 2, %v7558_v12  ;;  %v2025_v19 = vsel %vm1993_vm8, 2, %v7558_v12  ;;  %v2027_v21 = vsel %vm1995_vm9, 2, %v7558_v12 }
 0x5e1   : > { %2293 = vmax.xlane.f32.xlu2 %v5845_v34  ;;  %v5912_v15 = vadd.s32 %v2026_v11, %v1866_v47  ;;  %v1956_v7 = vpop.permute.xlu0 %1955  ;;  %v5916_v8 = vcvt.s32.f32 %v2374_v0  ;;  %v5918_v14 = vadd.s32 %v2025_v19, %v1865_v4  ;;  %v5920_v50 = vadd.s32 %v2027_v21, %v1867_v49 }
 0x5e2   : > { %2279 = vmax.xlane.f32.xlu1 %v5858_v27  ;;  %2307 = vmax.xlane.f32.xlu0 %v5848_v57  ;;  %v1959_v41 = vpop.permute.xlu2 %1958  ;;  %v5922_v55 = vcvt.s32.f32 %v2360_v61  ;;  %v5924_v46 = vcvt.s32.f32 %v2388_v40  ;;  %vm1837_vm10 = vcmp.eq.s32.totalorder %v7535_v53, %v5751_v2  ;;  %vm1836_vm11 = vcmp.eq.s32.totalorder %v7534_v20, %v5751_v2 }
 0x5e3   : > { %7580 = vst [vmem:[#allocation47_spill] sm:$0xff] %v5912_v15  ;;  %vm1838_vm4 = vcmp.eq.s32.totalorder %v7536_v26, %v5751_v2  ;;  %vm1997_vm12 = vcmp.eq.s32.totalorder %v1959_v41, %v5760_v59  ;;  %vm1996_vm3 = vcmp.eq.s32.totalorder %v1956_v7, %v5760_v59  ;;  %v2416_v0 = vshra.s32 %v5912_v15, 16 }
 0x5e4   : > { %7581 = vst [vmem:[#allocation52_spill] sm:$0xff] %v5920_v50  ;;  %v1962_v47 = vpop.permute.xlu1 %1961  ;;  %v1869_v61 = vsel %vm1837_vm10, 1, %v7558_v12  ;;  %v2402_v40 = vshra.s32 %v5918_v14, 16  ;;  %v2430_v4 = vshra.s32 %v5920_v50, 16  ;;  %v1868_v49 = vsel %vm1836_vm11, 1, %v7558_v12 }
 0x5e5   : > { %vm1998_vm14 = vcmp.eq.s32.totalorder %v1962_v47, %v5760_v59  ;;  %v1870_v11 = vsel %vm1838_vm4, 1, %v7558_v12  ;;  %v2029_v19 = vsel %vm1997_vm12, 2, %v7558_v12  ;;  %v2028_v7 = vsel %vm1996_vm3, 2, %v7558_v12 }
 0x5e6   : > { %v5945_v21 = vadd.s32 %v2029_v19, %v1869_v61  ;;  %v2030_v41 = vsel %vm1998_vm14, 2, %v7558_v12  ;;  %v5949_v20 = vcvt.s32.f32 %v2416_v0  ;;  %v5951_v47 = vadd.s32 %v2028_v7, %v1868_v49 }
 0x5e7   : > { %v5953_v53 = vadd.s32 %v2030_v41, %v1870_v11  ;;  %v5955_v50 = vcvt.s32.f32 %v2402_v40  ;;  %v5957_v15 = vcvt.s32.f32 %v2430_v4  ;;  %vm1840_vm15 = vcmp.eq.s32.totalorder %v7538_v5, %v5751_v2 }
 0x5e8   : > { %vm1839_vm5 = vcmp.eq.s32.totalorder %v7564_v43, %v5751_v2  ;;  %v2458_v0 = vshra.s32 %v5945_v21, 16  ;;  %v1872_v40 = vsel %vm1840_vm15, 1, %v7558_v12  ;;  %v2444_v4 = vshra.s32 %v5951_v47, 16 }
 0x5e9   : > { %2335 = vmax.xlane.f32.xlu2 %v5883_v52  ;;  %v1965_v61 = vpop.permute.xlu0 %1964  ;;  %v2472_v49 = vshra.s32 %v5953_v53, 16  ;;  %v1871_v11 = vsel %vm1839_vm5, 1, %v7558_v12 }
 0x5ea   : > { %2321 = vmax.xlane.f32.xlu1 %v5889_v30  ;;  %2349 = vmax.xlane.f32.xlu0 %v5891_v13  ;;  %v1968_v26 = vpop.permute.xlu2 %1967  ;;  %vm1999_vm1 = vcmp.eq.s32.totalorder %v1965_v61, %v5760_v59  ;;  %v5977_v41 = vcvt.s32.f32 %v2458_v0  ;;  %v5981_v5 = vcvt.s32.f32 %v2444_v4  ;;  %v2093_v0 = vand.u32 65535, %v5509_v39 }
 0x5eb   : > { %vm2000_vm13 = vcmp.eq.s32.totalorder %v1968_v26, %v5760_v59  ;;  %v2031_v7 = vsel %vm1999_vm1, 2, %v7558_v12  ;;  %v5983_v43 = vcvt.s32.f32 %v2472_v49  ;;  %v2079_v4 = vand.u32 65535, %v5511_v3 }
 0x5ec   : > { %v2032_v2 = vsel %vm2000_vm13, 2, %v7558_v12  ;;  %v5979_v26 = vadd.s32 %v2031_v7, %v1871_v11  ;;  %v2065_v49 = vand.u32 65535, %v5521_v29  ;;  %v2095_v7 = vcvt.s32.f32 %v2093_v0 }
 0x5ed   : > { %v5974_v19 = vadd.s32 %v2032_v2, %v1872_v40  ;;  %v2121_v29 = vand.u32 65535, %v5552_v58  ;;  %v2107_v0 = vand.u32 65535, %v5561_v33  ;;  %v2163_v58 = vand.u32 65535, %v5686_v28 }
 0x5ee   : > { %7582 = vst [vmem:[#allocation51_spill] sm:$0xff] %v5979_v26  ;;  %v2486_v61 = vshra.s32 %v5979_v26, 16  ;;  %v2081_v26 = vcvt.s32.f32 %v2079_v4 }
 0x5ef   : > { %v2500_v59 = vshra.s32 %v5974_v19, 16 }
 0x5f0   : > { %v5992_v12 = vcvt.s32.f32 %v2486_v61  ;;  %v2067_v61 = vcvt.s32.f32 %v2065_v49 }
 0x5f1   : > { %2377 = vmax.xlane.f32.xlu2 %v5916_v8  ;;  %v5990_v40 = vcvt.s32.f32 %v2500_v59 }
 0x5f2   : > { %2363 = vmax.xlane.f32.xlu1 %v5922_v55  ;;  %2391 = vmax.xlane.f32.xlu0 %v5924_v46  ;;  %7583 = vst [vmem:[#allocation50_spill] sm:$0xff] %v5992_v12 }
 0x5f9   : > { %2419 = vmax.xlane.f32.xlu2 %v5949_v20 }
 0x5fa   : > { %2405 = vmax.xlane.f32.xlu1 %v5955_v50  ;;  %2433 = vmax.xlane.f32.xlu0 %v5957_v15 }
 0x601   : > { %2461 = vmax.xlane.f32.xlu2 %v5977_v41 }
 0x602   : > { %2447 = vmax.xlane.f32.xlu1 %v5981_v5  ;;  %2475 = vmax.xlane.f32.xlu0 %v5983_v43 }
 0x609   : > { %2503 = vmax.xlane.f32.xlu2 %v5990_v40 }
 0x60a   : > { %2489 = vmax.xlane.f32.xlu1 %v5992_v12 }
 0x619   : > { %v5999_v11 = vpop.xlane.xlu2 %2097  ;;  %v6001_v2 = vpop.xlane.xlu0 %2083 }
 0x61a   : > { %vm2099_vm7 = vcmp.eq.f32.partialorder %v5530_v38, %v5999_v11  ;;  %vm2085_vm2 = vcmp.eq.f32.partialorder %v5532_v17, %v6001_v2  ;;  %v6007_v59 = vpop.xlane.xlu1 %2069  ;;  %v2135_v38 = vand.u32 65535, %v5559_v18  ;;  %v2123_v17 = vcvt.s32.f32 %v2121_v29 }
 0x61b   : > { %v2100_v39 = vsel %vm2099_vm7, %v2095_v7, -inf  ;;  %v2086_v12 = vsel %vm2085_vm2, %v2081_v26, -inf  ;;  %vm2071_vm6 = vcmp.eq.f32.partialorder %v5543_v44, %v6007_v59 }
 0x61c   : > { %2101 = vmax.xlane.f32.xlu2 %v2100_v39  ;;  %2087 = vmax.xlane.f32.xlu1 %v2086_v12  ;;  %v2072_v3 = vsel %vm2071_vm6, %v2067_v61, -inf  ;;  %v2109_v12 = vcvt.s32.f32 %v2107_v0  ;;  %v2137_v7 = vcvt.s32.f32 %v2135_v38  ;;  %v2177_v61 = vand.u32 65535, %v5707_v48 }
 0x61d   : > { %2073 = vmax.xlane.f32.xlu0 %v2072_v3  ;;  %v2165_v3 = vcvt.s32.f32 %v2163_v58  ;;  %v2191_v38 = vand.u32 65535, %v5749_v37  ;;  %v2233_v37 = vand.u32 65535, %v5807_v22 }
 0x61e   : > { %v2179_v0 = vcvt.s32.f32 %v2177_v61 }
 0x634   : > { %v6014_v4 = vpop.xlane.xlu2 %2125 }
 0x635   : > { %vm2127_vm0 = vcmp.eq.f32.partialorder %v5683_v23, %v6014_v4  ;;  %v6018_v49 = vpop.xlane.xlu1 %2111  ;;  %v6020_v44 = vpop.xlane.xlu0 %2139  ;;  %v2149_v23 = vand.u32 65535, %v5714_v32 }
 0x636   : > { %v2128_v26 = vsel %vm2127_vm0, %v2123_v17, -inf  ;;  %vm2113_vm8 = vcmp.eq.f32.partialorder %v5695_v35, %v6018_v49  ;;  %vm2141_vm9 = vcmp.eq.f32.partialorder %v5693_v60, %v6020_v44  ;;  %v2219_v17 = vand.u32 65535, %v5747_v56 }
 0x637   : > { %2129 = vmax.xlane.f32.xlu1 %v2128_v26  ;;  %v2114_v18 = vsel %vm2113_vm8, %v2109_v12, -inf  ;;  %v2142_v33 = vsel %vm2141_vm9, %v2137_v7, -inf  ;;  %v2151_v28 = vcvt.s32.f32 %v2149_v23 }
 0x638   : > { %2115 = vmax.xlane.f32.xlu0 %v2114_v18  ;;  %2143 = vmax.xlane.f32.xlu2 %v2142_v33  ;;  %v2221_v18 = vcvt.s32.f32 %v2219_v17  ;;  %v2261_v33 = vand.u32 65535, %v5801_v25 }
 0x63c   : > { %v6029_v39 = vpop.xlane.xlu2 %2167 }
 0x63d   : > { %vm2169_vm10 = vcmp.eq.f32.partialorder %v5716_v10, %v6029_v39  ;;  %v6033_v29 = vpop.xlane.xlu1 %2153  ;;  %v6035_v60 = vpop.xlane.xlu0 %2181  ;;  %v2205_v10 = vand.u32 65535, %v5736_v31 }
 0x63e   : > { %v2170_v35 = vsel %vm2169_vm10, %v2165_v3, -inf  ;;  %vm2155_vm11 = vcmp.eq.f32.partialorder %v5724_v16, %v6033_v29  ;;  %vm2183_vm4 = vcmp.eq.f32.partialorder %v5722_v36, %v6035_v60  ;;  %v2193_v36 = vcvt.s32.f32 %v2191_v38 }
 0x63f   : > { %2171 = vmax.xlane.f32.xlu1 %v2170_v35  ;;  %v2156_v48 = vsel %vm2155_vm11, %v2151_v28, -inf  ;;  %v2184_v32 = vsel %vm2183_vm4, %v2179_v0, -inf  ;;  %v2207_v12 = vcvt.s32.f32 %v2205_v10  ;;  %v2263_v35 = vcvt.s32.f32 %v2261_v33  ;;  %v7584_v0 = vld [vmem:[#allocation41_spill] sm:$0xff] }
 0x640   : > { %2157 = vmax.xlane.f32.xlu0 %v2156_v48  ;;  %2185 = vmax.xlane.f32.xlu2 %v2184_v32  ;;  %v2289_v28 = vand.u32 65535, %v5819_v63  ;;  %v2303_v48 = vand.u32 65535, %v7584_v0 }
 0x642   : > { %v2291_v38 = vcvt.s32.f32 %v2289_v28  ;;  %v2305_v17 = vcvt.s32.f32 %v2303_v48 }
 0x644   : > { %v6044_v26 = vpop.xlane.xlu2 %2209 }
 0x645   : > { %vm2211_vm12 = vcmp.eq.f32.partialorder %v5762_v51, %v6044_v26  ;;  %v6048_v16 = vpop.xlane.xlu1 %2195  ;;  %v6050_v7 = vpop.xlane.xlu0 %2223  ;;  %v2247_v51 = vand.u32 65535, %v5799_v62 }
 0x646   : > { %v2212_v58 = vsel %vm2211_vm12, %v2207_v12, -inf  ;;  %vm2197_vm3 = vcmp.eq.f32.partialorder %v5773_v54, %v6048_v16  ;;  %vm2225_vm14 = vcmp.eq.f32.partialorder %v5771_v6, %v6050_v7  ;;  %v2235_v6 = vcvt.s32.f32 %v2233_v37 }
 0x647   : > { %2213 = vmax.xlane.f32.xlu1 %v2212_v58  ;;  %v2198_v31 = vsel %vm2197_vm3, %v2193_v36, -inf  ;;  %v2226_v56 = vsel %vm2225_vm14, %v2221_v18, -inf  ;;  %v2249_v3 = vcvt.s32.f32 %v2247_v51  ;;  %v7585_v36 = vld [vmem:[#allocation45_spill] sm:$0xff]  ;;  %v7586_v18 = vld [vmem:[#allocation46_spill] sm:$0xff] }
 0x648   : > { %2199 = vmax.xlane.f32.xlu0 %v2198_v31  ;;  %2227 = vmax.xlane.f32.xlu2 %v2226_v56  ;;  %v2317_v58 = vand.u32 65535, %v7585_v36  ;;  %v7587_v31 = vld [vmem:[#allocation44_spill] sm:$0xff] }
 0x649   : > { %v2345_v56 = vand.u32 65535, %v7587_v31  ;;  %v7591_v36 = vld [vmem:[#allocation52_spill] sm:$0xff] }
 0x64c   : > { %v6059_v23 = vpop.xlane.xlu2 %2251 }
 0x64d   : > { %vm2253_vm15 = vcmp.eq.f32.partialorder %v5821_v45, %v6059_v23  ;;  %v6063_v54 = vpop.xlane.xlu1 %2237  ;;  %v6065_v61 = vpop.xlane.xlu0 %2265  ;;  %v2275_v45 = vand.u32 65535, %v5507_v9 }
 0x64e   : > { %vm2239_vm5 = vcmp.eq.f32.partialorder %v5825_v1, %v6063_v54  ;;  %vm2267_vm13 = vcmp.eq.f32.partialorder %v5823_v24, %v6065_v61  ;;  %v2254_v62 = vsel %vm2253_vm15, %v2249_v3, -inf }
 0x64f   : > { %v2240_v22 = vsel %vm2239_vm5, %v2235_v6, -inf  ;;  %v2268_v25 = vsel %vm2267_vm13, %v2263_v35, -inf  ;;  %2255 = vmax.xlane.f32.xlu1 %v2254_v62  ;;  %v2277_v1 = vcvt.s32.f32 %v2275_v45  ;;  %v2347_v6 = vcvt.s32.f32 %v2345_v56  ;;  %v7589_v45 = vld [vmem:[#allocation48_spill] sm:$0xff] }
 0x650   : > { %2241 = vmax.xlane.f32.xlu0 %v2240_v22  ;;  %2269 = vmax.xlane.f32.xlu2 %v2268_v25  ;;  %v2359_v62 = vand.u32 65535, %v5885_v42  ;;  %v7588_v25 = vld [vmem:[#allocation49_spill] sm:$0xff]  ;;  %v2387_v28 = vand.u32 65535, %v7589_v45  ;;  %v7592_v45 = vld [vmem:[#allocation51_spill] sm:$0xff] }
 0x654   : > { %v6074_v32 = vpop.xlane.xlu2 %2293 }
 0x655   : > { %v6076_v10 = vpop.xlane.xlu1 %2279  ;;  %vm2295_vm1 = vcmp.eq.f32.partialorder %v5845_v34, %v6074_v32  ;;  %v6080_v24 = vpop.xlane.xlu0 %2307  ;;  %v2331_v34 = vand.u32 65535, %v7586_v18 }
 0x656   : > { %vm2281_vm7 = vcmp.eq.f32.partialorder %v5858_v27, %v6076_v10  ;;  %vm2309_vm2 = vcmp.eq.f32.partialorder %v5848_v57, %v6080_v24  ;;  %v2296_v63 = vsel %vm2295_vm1, %v2291_v38, -inf  ;;  %v2319_v27 = vcvt.s32.f32 %v2317_v58 }
 0x657   : > { %v2282_v9 = vsel %vm2281_vm7, %v2277_v1, -inf  ;;  %v2310_v12 = vsel %vm2309_vm2, %v2305_v17, -inf  ;;  %2297 = vmax.xlane.f32.xlu1 %v2296_v63  ;;  %v2333_v33 = vcvt.s32.f32 %v2331_v34  ;;  %v2389_v38 = vcvt.s32.f32 %v2387_v28 }
 0x658   : > { %2283 = vmax.xlane.f32.xlu0 %v2282_v9  ;;  %2311 = vmax.xlane.f32.xlu2 %v2310_v12  ;;  %v2401_v63 = vand.u32 65535, %v5918_v14  ;;  %v7590_v12 = vld [vmem:[#allocation47_spill] sm:$0xff]  ;;  %v2429_v58 = vand.u32 65535, %v7591_v36 }
 0x65a   : > { %v2431_v56 = vcvt.s32.f32 %v2429_v58 }
 0x65c   : > { %v6089_v37 = vpop.xlane.xlu2 %2335 }
 0x65d   : > { %v6091_v51 = vpop.xlane.xlu1 %2321  ;;  %vm2337_vm6 = vcmp.eq.f32.partialorder %v5883_v52, %v6089_v37  ;;  %v6095_v57 = vpop.xlane.xlu0 %2349  ;;  %v2373_v52 = vand.u32 65535, %v7588_v25 }
 0x65e   : > { %vm2323_vm0 = vcmp.eq.f32.partialorder %v5889_v30, %v6091_v51  ;;  %vm2351_vm8 = vcmp.eq.f32.partialorder %v5891_v13, %v6095_v57  ;;  %v2338_v35 = vsel %vm2337_vm6, %v2333_v33, -inf  ;;  %v2361_v30 = vcvt.s32.f32 %v2359_v62 }
 0x65f   : > { %v2324_v3 = vsel %vm2323_vm0, %v2319_v27, -inf  ;;  %v2352_v22 = vsel %vm2351_vm8, %v2347_v6, -inf  ;;  %2339 = vmax.xlane.f32.xlu1 %v2338_v35  ;;  %v2375_v1 = vcvt.s32.f32 %v2373_v52  ;;  %v2443_v6 = vand.u32 65535, %v5951_v47 }
 0x660   : > { %2325 = vmax.xlane.f32.xlu0 %v2324_v3  ;;  %2353 = vmax.xlane.f32.xlu2 %v2352_v22  ;;  %v2471_v3 = vand.u32 65535, %v5953_v53  ;;  %v2499_v52 = vand.u32 65535, %v5974_v19  ;;  %v2104_v19 = vcvt.f32.s32 %v5999_v11  ;;  %v3512_v11 = vld [vmem:[%s7169_s4 + $0x10] sm:$0xff]  ;;  %vm7596_vm8 = vcmask 7168  }
 0x662   : > { %v2473_v25 = vcvt.s32.f32 %v2471_v3 }
 0x664   : > { %v6104_v0 = vpop.xlane.xlu2 %2377 }
 0x665   : > { %v6106_v48 = vpop.xlane.xlu1 %2363  ;;  %vm2379_vm9 = vcmp.eq.f32.partialorder %v5916_v8, %v6104_v0  ;;  %v6110_v13 = vpop.xlane.xlu0 %2391  ;;  %v2415_v8 = vand.u32 65535, %v7590_v12 }
 0x666   : > { %vm2365_vm10 = vcmp.eq.f32.partialorder %v5922_v55, %v6106_v48  ;;  %vm2393_vm11 = vcmp.eq.f32.partialorder %v5924_v46, %v6110_v13  ;;  %v2380_v17 = vsel %vm2379_vm9, %v2375_v1, -inf  ;;  %v2403_v55 = vcvt.s32.f32 %v2401_v63 }
 0x667   : > { %v2366_v42 = vsel %vm2365_vm10, %v2361_v30, -inf  ;;  %v2394_v9 = vsel %vm2393_vm11, %v2389_v38, -inf  ;;  %2381 = vmax.xlane.f32.xlu1 %v2380_v17  ;;  %v2417_v31 = vcvt.s32.f32 %v2415_v8  ;;  %v2501_v30 = vcvt.s32.f32 %v2499_v52  ;;  %vm7597_vm10 = vmmov %vm7596_vm8 }
 0x668   : > { %2367 = vmax.xlane.f32.xlu0 %v2366_v42  ;;  %2395 = vmax.xlane.f32.xlu2 %v2394_v9  ;;  %v2090_v17 = vcvt.f32.s32 %v6001_v2  ;;  %v2076_v9 = vcvt.f32.s32 %v6007_v59  ;;  %v2105_v8 = vshll.u32 %v2104_v19, 16  ;;  %v3513_v59 = vld [vmem:[%s7169_s4 + $0x8] sm:$0xff]  ;;  %v2132_v52 = vcvt.f32.s32 %v6014_v4 }
 0x669   : > { %v2160_v4 = vcvt.f32.s32 %v6033_v29 }
 0x66a   : > { %v2091_v36 = vshll.u32 %v2090_v17, 16 }
 0x66c   : > { %v6119_v18 = vpop.xlane.xlu2 %2419 }
 0x66d   : > { %v6121_v34 = vpop.xlane.xlu1 %2405  ;;  %vm2421_vm4 = vcmp.eq.f32.partialorder %v5949_v20, %v6119_v18  ;;  %v6125_v46 = vpop.xlane.xlu0 %2433  ;;  %v2457_v20 = vand.u32 65535, %v5945_v21 }
 0x66e   : > { %vm2407_vm12 = vcmp.eq.f32.partialorder %v5955_v50, %v6121_v34  ;;  %vm2435_vm3 = vcmp.eq.f32.partialorder %v5957_v15, %v6125_v46  ;;  %v2422_v27 = vsel %vm2421_vm4, %v2417_v31, -inf  ;;  %v2445_v50 = vcvt.s32.f32 %v2443_v6  ;;  %vm7599_vm4 = vmmov %vm7596_vm8 }
 0x66f   : > { %v2408_v14 = vsel %vm2407_vm12, %v2403_v55, -inf  ;;  %v2436_v33 = vsel %vm2435_vm3, %v2431_v56, -inf  ;;  %2423 = vmax.xlane.f32.xlu1 %v2422_v27  ;;  %v2459_v62 = vcvt.s32.f32 %v2457_v20  ;;  %v2077_v27 = vshll.u32 %v2076_v9, 16  ;;  %v7594_v20 = vld [vmem:[#allocation84_spill] sm:$0xff] }
 0x670   : > { %2409 = vmax.xlane.f32.xlu0 %v2408_v14  ;;  %2437 = vmax.xlane.f32.xlu2 %v2436_v33 }
 0x674   : > { %v6134_v35 = vpop.xlane.xlu2 %2461 }
 0x675   : > { %v6136_v22 = vpop.xlane.xlu1 %2447  ;;  %vm2463_vm14 = vcmp.eq.f32.partialorder %v5977_v41, %v6134_v35  ;;  %v6140_v15 = vpop.xlane.xlu0 %2475  ;;  %v2485_v41 = vand.u32 65535, %v7592_v45  ;;  %v2118_v45 = vcvt.f32.s32 %v6018_v49  ;;  %v3515_v49 = vld [vmem:[%s7169_s4 + $0x20] sm:$0xff] }
 0x676   : > { %vm2449_vm15 = vcmp.eq.f32.partialorder %v5981_v5, %v6136_v22  ;;  %vm2477_vm5 = vcmp.eq.f32.partialorder %v5983_v43, %v6140_v15  ;;  %v2464_v53 = vsel %vm2463_vm14, %v2459_v62, -inf  ;;  %v7593_v5 = vld [vmem:[#allocation50_spill] sm:$0xff]  ;;  %vm7600_vm14 = vmmov %vm7599_vm4 }
 0x677   : > { %v2450_v21 = vsel %vm2449_vm15, %v2445_v50, -inf  ;;  %v2478_v47 = vsel %vm2477_vm5, %v2473_v25, -inf  ;;  %2465 = vmax.xlane.f32.xlu1 %v2464_v53  ;;  %v2487_v38 = vcvt.s32.f32 %v2485_v41  ;;  %v7595_v50 = vld [vmem:[#allocation65_spill] sm:$0xff]  ;;  %v3514_v25 = vld [vmem:[%s7169_s4] sm:$0xff]  ;;  %v2146_v41 = vcvt.f32.s32 %v6020_v44  ;;  %vm7602_vm15 = vmmov %vm7599_vm4 }
 0x678   : > { %2451 = vmax.xlane.f32.xlu0 %v2450_v21  ;;  %2479 = vmax.xlane.f32.xlu2 %v2478_v47  ;;  %v7598_v53 = vld [vmem:[#allocation59_spill] sm:$0xff]  ;;  %v2119_v9 = vshll.u32 %v2118_v45, 16  ;;  %vm7603_vm5 = vmmov %vm7599_vm4 }
 0x67c   : > { %v6148_v28 = vpop.xlane.xlu2 %2503 }
 0x67d   : > { %v6150_v1 = vpop.xlane.xlu1 %2489  ;;  %vm2505_vm13 = vcmp.eq.f32.partialorder %v5990_v40, %v6148_v28 }
 0x67e   : > { %vm2491_vm1 = vcmp.eq.f32.partialorder %v7593_v5, %v6150_v1  ;;  %v2506_v43 = vsel %vm2505_vm13, %v2501_v30, -inf }
 0x67f   : > { %v2492_v42 = vsel %vm2491_vm1, %v2487_v38, -inf  ;;  %2507 = vmax.xlane.f32.xlu1 %v2506_v43  ;;  %v2133_v38 = vshll.u32 %v2132_v52, 16  ;;  %v2174_v43 = vcvt.f32.s32 %v6029_v39  ;;  %v2188_v39 = vcvt.f32.s32 %v6035_v60  ;;  %v3516_v60 = vld [vmem:[%s7169_s4 + $0x28] sm:$0xff] }
 0x680   : > { %2493 = vmax.xlane.f32.xlu0 %v2492_v42 }
 0x68f   : > { %v2102_v63 = vpop.xlane.xlu2 %2101  ;;  %v2088_v12 = vpop.xlane.xlu1 %2087 }
 0x690   : > { %v2103_v58 = vcvt.f32.s32 %v2102_v63  ;;  %v2089_v55 = vcvt.f32.s32 %v2088_v12  ;;  %v2074_v40 = vpop.xlane.xlu0 %2073  ;;  %v2147_v63 = vshll.u32 %v2146_v41, 16 }
 0x691   : > { %v2075_v14 = vcvt.f32.s32 %v2074_v40 }
 0x692   : > { %v2106_v31 = vadd.s32 %v2105_v8, %v2103_v58  ;;  %v2092_v56 = vadd.s32 %v2091_v36, %v2089_v55  ;;  %v2175_v55 = vshll.u32 %v2174_v43, 16  ;;  %v3518_v43 = vld [vmem:[%s7169_s4 + $0x38] sm:$0xff] }
 0x693   : > { %v2078_v6 = vadd.s32 %v2077_v27, %v2075_v14 }
 0x694   : > { %vm2515_vm7 = vcmp.eq.s32.totalorder %v2106_v31, 1  ;;  %vm2547_vm2 = vcmp.eq.s32.totalorder %v2106_v31, 2  ;;  %vm2514_vm6 = vcmp.eq.s32.totalorder %v2092_v56, 1  ;;  %vm2546_vm0 = vcmp.eq.s32.totalorder %v2092_v56, 2  ;;  %v7601_v31 = vld [vmem:[#allocation64_spill] sm:$0xff] }
 0x695   : > { %v2579_v2 = vsel %vm2547_vm2, 4294967295, %v3512_v11  ;;  %v2578_v33 = vsel %vm2546_vm0, 4294967295, %v3513_v59  ;;  %vm2513_vm9 = vcmp.eq.s32.totalorder %v2078_v6, 1  ;;  %vm2545_vm11 = vcmp.eq.s32.totalorder %v2078_v6, 2  ;;  %v7604_v59 = vld [vmem:[#allocation40_spill] sm:$0xff]  ;;  %v3517_v6 = vld [vmem:[%s7169_s4 + $0x18] sm:$0xff]  ;;  %vm7605_vm0 = vmmov %vm7599_vm4 }
 0x696   : > { %v6166_v3 = vsel %vm2515_vm7, %v7594_v20, %v2579_v2  ;;  %v2610_v62 = vsel %vm2514_vm6, %v7595_v50, %v2578_v33  ;;  %v2577_v21 = vsel %vm2545_vm11, 4294967295, %v3514_v25  ;;  %v2161_v2 = vshll.u32 %v2160_v4, 16  ;;  %vm7609_vm11 = vmmov %vm7605_vm0  ;;  %v3519_v4 = vld [vmem:[%s7169_s4 + $0x40] sm:$0xff] }
 0x697   : > { %2643 = vst.msk [vmem:[%s7169_s4 + $0x10] sm:$0xff] %vm7596_vm8, %v6166_v3  ;;  %v2609_v47 = vsel %vm2513_vm9, %v7598_v53, %v2577_v21  ;;  %v2746_v25 = vsel %vm7605_vm0, %v2610_v62, 2147483647  ;;  %vm7606_vm8 = vmmov %vm7605_vm0  ;;  %v7608_v53 = vld [vmem:[#allocation63_spill] sm:$0xff] }
 0x698   : > { %2642 = vst.msk [vmem:[%s7169_s4 + $0x8] sm:$0xff] %vm7597_vm10, %v2610_v62  ;;  %v2745_v40 = vsel %vm7600_vm14, %v2609_v47, 2147483647  ;;  %vm7607_vm9 = vmmov %vm7605_vm0 }
 0x699   : > { %2641 = vst.msk [vmem:[%s7169_s4] sm:$0xff] %vm7599_vm4, %v2609_v47  ;;  %vm7612_vm14 = vmmov %vm7605_vm0 }
 0x6aa   : > { %v2130_v30 = vpop.xlane.xlu1 %2129 }
 0x6ab   : > { %v2131_v5 = vcvt.f32.s32 %v2130_v30  ;;  %v2144_v19 = vpop.xlane.xlu2 %2143  ;;  %v2116_v17 = vpop.xlane.xlu0 %2115  ;;  %v2189_v30 = vshll.u32 %v2188_v39, 16 }
 0x6ac   : > { %v2145_v12 = vcvt.f32.s32 %v2144_v19  ;;  %v2117_v8 = vcvt.f32.s32 %v2116_v17 }
 0x6ad   : > { %v2134_v42 = vadd.s32 %v2133_v38, %v2131_v5 }
 0x6ae   : > { %v2148_v36 = vadd.s32 %v2147_v63, %v2145_v12  ;;  %v2120_v58 = vadd.s32 %v2119_v9, %v2117_v8  ;;  %v7611_v63 = vld [vmem:[#allocation71_spill] sm:$0xff] }
 0x6af   : > { %vm2517_vm12 = vcmp.eq.s32.totalorder %v2134_v42, 1  ;;  %vm2549_vm3 = vcmp.eq.s32.totalorder %v2134_v42, 2 }
 0x6b0   : > { %v2581_v44 = vsel %vm2549_vm3, 4294967295, %v3515_v49  ;;  %vm2518_vm13 = vcmp.eq.s32.totalorder %v2148_v36, 1  ;;  %vm2550_vm1 = vcmp.eq.s32.totalorder %v2148_v36, 2  ;;  %vm2516_vm7 = vcmp.eq.s32.totalorder %v2120_v58, 1  ;;  %vm7610_vm3 = vmmov %vm7605_vm0 }
 0x6b1   : > { %v2613_v56 = vsel %vm2517_vm12, %v7601_v31, %v2581_v44  ;;  %v2582_v27 = vsel %vm2550_vm1, 4294967295, %v3516_v60  ;;  %vm2548_vm6 = vcmp.eq.s32.totalorder %v2120_v58, 2  ;;  %v7614_v44 = vld [vmem:[#allocation85_spill] sm:$0xff]  ;;  %v7616_v31 = vld [vmem:[#allocation34_spill] sm:$0xff] }
 0x6b2   : > { %2645 = vst.msk [vmem:[%s7169_s4 + $0x20] sm:$0xff] %vm7602_vm15, %v2613_v56  ;;  %v2749_v29 = vsel %vm7603_vm5, %v2613_v56, 2147483647  ;;  %v2172_v14 = vpop.xlane.xlu1 %2171  ;;  %v2614_v33 = vsel %vm2518_vm13, %v7604_v59, %v2582_v27  ;;  %v2580_v20 = vsel %vm2548_vm6, 4294967295, %v3517_v6  ;;  %vm7613_vm15 = vmmov %vm7605_vm0  ;;  %v3520_v58 = vld [vmem:[%s7169_s4 + $0x30] sm:$0xff]  ;;  %v2202_v27 = vcvt.f32.s32 %v6048_v16 }
 0x6b3   : > { %vm2750_vm2 = vcmp.lt.s32.totalorder %v2745_v40, %v2749_v29  ;;  %v2173_v11 = vcvt.f32.s32 %v2172_v14  ;;  %2646 = vst.msk [vmem:[%s7169_s4 + $0x28] sm:$0xff] %vm7606_vm8, %v2614_v33  ;;  %v2752_v21 = vsel %vm7607_vm9, %v2614_v33, 2147483647  ;;  %v2612_v47 = vsel %vm2516_vm7, %v7608_v53, %v2580_v20  ;;  %v2186_v45 = vpop.xlane.xlu2 %2185  ;;  %v2158_v41 = vpop.xlane.xlu0 %2157  ;;  %vm7615_vm6 = vmmov %vm7605_vm0 }
 0x6b4   : > { %v2751_v50 = vsel %vm2750_vm2, %v2745_v40, %v2749_v29  ;;  %vm2753_vm10 = vcmp.lt.s32.totalorder %v2746_v25, %v2752_v21  ;;  %2644 = vst.msk [vmem:[%s7169_s4 + $0x18] sm:$0xff] %vm7609_vm11, %v2612_v47  ;;  %v2187_v62 = vcvt.f32.s32 %v2186_v45  ;;  %v2159_v38 = vcvt.f32.s32 %v2158_v41  ;;  %vm7617_vm8 = vmmov %vm7605_vm0 }
 0x6b5   : > { %v2176_v52 = vadd.s32 %v2175_v55, %v2173_v11  ;;  %v6220_v5 = vsel %vm2753_vm10, %v2746_v25, %v2752_v21  ;;  %v2748_v9 = vsel %vm7610_vm3, %v2612_v47, 2147483647  ;;  %v2216_v29 = vcvt.f32.s32 %v6044_v26  ;;  %vm7618_vm10 = vmmov %vm7605_vm0 }
 0x6b6   : > { %v2190_v19 = vadd.s32 %v2189_v30, %v2187_v62  ;;  %v2162_v17 = vadd.s32 %v2161_v2, %v2159_v38  ;;  %v2747_v14 = vsel %vm7617_vm8, %v6166_v3, 2147483647  ;;  %vm7619_vm11 = vmmov %vm7605_vm0  ;;  %v2230_v2 = vcvt.f32.s32 %v6050_v7 }
 0x6b7   : > { %vm2520_vm4 = vcmp.eq.s32.totalorder %v2176_v52, 1  ;;  %vm2552_vm12 = vcmp.eq.s32.totalorder %v2176_v52, 2  ;;  %v2217_v33 = vshll.u32 %v2216_v29, 16  ;;  %v2203_v3 = vshll.u32 %v2202_v27, 16 }
 0x6b8   : > { %v2584_v42 = vsel %vm2552_vm12, 4294967295, %v3518_v43  ;;  %vm2521_vm5 = vcmp.eq.s32.totalorder %v2190_v19, 1  ;;  %vm2553_vm13 = vcmp.eq.s32.totalorder %v2190_v19, 2  ;;  %vm2519_vm1 = vcmp.eq.s32.totalorder %v2162_v17, 1  ;;  %v7620_v43 = vld [vmem:[#allocation70_spill] sm:$0xff] }
 0x6b9   : > { %v2616_v12 = vsel %vm2520_vm4, %v7611_v63, %v2584_v42  ;;  %v2585_v49 = vsel %vm2553_vm13, 4294967295, %v3519_v4  ;;  %vm2551_vm2 = vcmp.eq.s32.totalorder %v2162_v17, 2  ;;  %v2258_v20 = vcvt.f32.s32 %v6059_v23  ;;  %v3521_v23 = vld [vmem:[%s7169_s4 + $0x50] sm:$0xff]  ;;  %vm7621_vm13 = vmmov %vm7605_vm0  ;;  %v3522_v17 = vld [vmem:[%s7169_s4 + $0x58] sm:$0xff] }
 0x6ba   : > { %2648 = vst.msk [vmem:[%s7169_s4 + $0x38] sm:$0xff] %vm7612_vm14, %v2616_v12  ;;  %v2758_v8 = vsel %vm7613_vm15, %v2616_v12, 2147483647  ;;  %v2617_v36 = vsel %vm2521_vm5, %v7614_v44, %v2585_v49  ;;  %v2583_v55 = vsel %vm2551_vm2, 4294967295, %v3520_v58  ;;  %v2214_v26 = vpop.xlane.xlu1 %2213  ;;  %v2244_v25 = vcvt.f32.s32 %v6063_v54  ;;  %v7623_v12 = vld [vmem:[#allocation86_spill] sm:$0xff] }
 0x6bb   : > { %vm2759_vm7 = vcmp.lt.s32.totalorder %v2748_v9, %v2758_v8  ;;  %2649 = vst.msk [vmem:[%s7169_s4 + $0x40] sm:$0xff] %vm7615_vm6, %v2617_v36  ;;  %v2761_v40 = vsel %vm7605_vm0, %v2617_v36, 2147483647  ;;  %v2615_v56 = vsel %vm2519_vm1, %v7616_v31, %v2583_v55  ;;  %v2215_v6 = vcvt.f32.s32 %v2214_v26  ;;  %v2228_v53 = vpop.xlane.xlu2 %2227  ;;  %v2200_v47 = vpop.xlane.xlu0 %2199  ;;  %vm7622_vm1 = vmmov %vm7605_vm0  ;;  %v7625_v36 = vld [vmem:[#allocation69_spill] sm:$0xff] }
 0x6bc   : > { %v6239_v39 = vsel %vm2759_vm7, %v2748_v9, %v2758_v8  ;;  %vm2762_vm9 = vcmp.lt.s32.totalorder %v2751_v50, %v2761_v40  ;;  %2647 = vst.msk [vmem:[%s7169_s4 + $0x30] sm:$0xff] %vm7618_vm10, %v2615_v56  ;;  %v2755_v60 = vsel %vm7619_vm11, %v2615_v56, 2147483647  ;;  %v2272_v21 = vcvt.f32.s32 %v6065_v61  ;;  %vm7624_vm6 = vmmov %vm7605_vm0 }
 0x6bd   : > { %vm2756_vm4 = vcmp.lt.s32.totalorder %v2747_v14, %v2755_v60  ;;  %v6256_v11 = vsel %vm2762_vm9, %v2751_v50, %v2761_v40  ;;  %v2231_v52 = vshll.u32 %v2230_v2, 16  ;;  %v2218_v16 = vadd.s32 %v2217_v33, %v2215_v6  ;;  %vm7626_vm9 = vmmov %vm7605_vm0 }
 0x6be   : > { %v2757_v59 = vsel %vm2756_vm4, %v2747_v14, %v2755_v60  ;;  %v2229_v45 = vcvt.f32.s32 %v2228_v53  ;;  %v2201_v50 = vcvt.f32.s32 %v2200_v47  ;;  %v2259_v30 = vshll.u32 %v2258_v20, 16  ;;  %vm7627_vm10 = vmmov %vm7605_vm0 }
 0x6bf   : > { %vm2523_vm12 = vcmp.eq.s32.totalorder %v2218_v16, 1  ;;  %vm2555_vm3 = vcmp.eq.s32.totalorder %v2218_v16, 2  ;;  %v2245_v62 = vshll.u32 %v2244_v25, 16  ;;  %v2273_v38 = vshll.u32 %v2272_v21, 16 }
 0x6c0   : > { %v2232_v7 = vadd.s32 %v2231_v52, %v2229_v45  ;;  %v2204_v41 = vadd.s32 %v2203_v3, %v2201_v50  ;;  %v2587_v54 = vsel %vm2555_vm3, 4294967295, %v3521_v23  ;;  %v2300_v42 = vcvt.f32.s32 %v6074_v32  ;;  %v3523_v32 = vld [vmem:[%s7169_s4 + $0x48] sm:$0xff]  ;;  %v3526_v52 = vld [vmem:[%s7169_s4 + $0x70] sm:$0xff] }
 0x6c1   : > { %v2619_v61 = vsel %vm2523_vm12, %v7620_v43, %v2587_v54  ;;  %v2286_v63 = vcvt.f32.s32 %v6076_v10  ;;  %v2314_v49 = vcvt.f32.s32 %v6080_v24  ;;  %v2328_v3 = vcvt.f32.s32 %v6091_v51  ;;  %v7629_v45 = vld [vmem:[#allocation73_spill] sm:$0xff] }
 0x6c2   : > { %vm2524_vm14 = vcmp.eq.s32.totalorder %v2232_v7, 1  ;;  %vm2556_vm15 = vcmp.eq.s32.totalorder %v2232_v7, 2  ;;  %vm2522_vm5 = vcmp.eq.s32.totalorder %v2204_v41, 1  ;;  %2651 = vst.msk [vmem:[%s7169_s4 + $0x50] sm:$0xff] %vm7621_vm13, %v2619_v61  ;;  %v2767_v19 = vsel %vm7622_vm1, %v2619_v61, 2147483647  ;;  %v2256_v10 = vpop.xlane.xlu1 %2255  ;;  %vm7630_vm13 = vmmov %vm7605_vm0 }
 0x6c3   : > { %v2588_v9 = vsel %vm2556_vm15, 4294967295, %v3522_v17  ;;  %vm2554_vm7 = vcmp.eq.s32.totalorder %v2204_v41, 2  ;;  %vm2768_vm2 = vcmp.lt.s32.totalorder %v2757_v59, %v2767_v19  ;;  %v2242_v40 = vpop.xlane.xlu0 %2241  ;;  %v2257_v31 = vcvt.f32.s32 %v2256_v10  ;;  %v2270_v56 = vpop.xlane.xlu2 %2269  ;;  %vm7631_vm1 = vmmov %vm7605_vm0 }
 0x6c4   : > { %v2620_v8 = vsel %vm2524_vm14, %v7623_v12, %v2588_v9  ;;  %v2586_v4 = vsel %vm2554_vm7, 4294967295, %v3523_v32  ;;  %v2769_v55 = vsel %vm2768_vm2, %v2757_v59, %v2767_v19  ;;  %v2243_v29 = vcvt.f32.s32 %v2242_v40  ;;  %vm7633_vm7 = vmmov %vm7605_vm0 }
 0x6c5   : > { %2652 = vst.msk [vmem:[%s7169_s4 + $0x58] sm:$0xff] %vm7624_vm6, %v2620_v8  ;;  %v2770_v44 = vsel %vm7605_vm0, %v2620_v8, 2147483647  ;;  %v2618_v58 = vsel %vm2522_vm5, %v7625_v36, %v2586_v4  ;;  %v2301_v14 = vshll.u32 %v2300_v42, 16  ;;  %v2271_v60 = vcvt.f32.s32 %v2270_v56  ;;  %vm7634_vm6 = vmmov %vm7605_vm0  ;;  %v7639_v56 = vld [vmem:[#allocation30_spill] sm:$0xff] }
 0x6c6   : > { %vm2771_vm8 = vcmp.lt.s32.totalorder %v6239_v39, %v2770_v44  ;;  %2650 = vst.msk [vmem:[%s7169_s4 + $0x48] sm:$0xff] %vm7626_vm9, %v2618_v58  ;;  %v2764_v24 = vsel %vm7627_vm10, %v2618_v58, 2147483647  ;;  %v2287_v2 = vshll.u32 %v2286_v63, 16  ;;  %v2260_v59 = vadd.s32 %v2259_v30, %v2257_v31  ;;  %v7632_v30 = vld [vmem:[#allocation87_spill] sm:$0xff]  ;;  %vm7635_vm10 = vmmov %vm7605_vm0 }
 0x6c7   : > { %vm2765_vm11 = vcmp.lt.s32.totalorder %v6220_v5, %v2764_v24  ;;  %v6295_v27 = vsel %vm2771_vm8, %v6239_v39, %v2770_v44  ;;  %v2246_v33 = vadd.s32 %v2245_v62, %v2243_v29  ;;  %v2315_v6 = vshll.u32 %v2314_v49, 16  ;;  %v3524_v39 = vld [vmem:[%s7169_s4 + $0x68] sm:$0xff] }
 0x6c8   : > { %v2766_v26 = vsel %vm2765_vm11, %v6220_v5, %v2764_v24  ;;  %v2342_v20 = vcvt.f32.s32 %v6089_v37  ;;  %v2274_v25 = vadd.s32 %v2273_v38, %v2271_v60  ;;  %vm2526_vm4 = vcmp.eq.s32.totalorder %v2260_v59, 1  ;;  %v3525_v5 = vld [vmem:[%s7169_s4 + $0x60] sm:$0xff]  ;;  %v7628_v37 = vld [vmem:[#allocation74_spill] sm:$0xff] }
 0x6c9   : > { %vm2558_vm12 = vcmp.eq.s32.totalorder %v2260_v59, 2  ;;  %vm2525_vm3 = vcmp.eq.s32.totalorder %v2246_v33, 1  ;;  %vm2557_vm14 = vcmp.eq.s32.totalorder %v2246_v33, 2  ;;  %v2356_v51 = vcvt.f32.s32 %v6095_v57  ;;  %v7642_v33 = vld [vmem:[#allocation89_spill] sm:$0xff] }
 0x6ca   : > { %v2590_v21 = vsel %vm2558_vm12, 4294967295, %v3524_v39  ;;  %vm2527_vm15 = vcmp.eq.s32.totalorder %v2274_v25, 1  ;;  %vm2559_vm5 = vcmp.eq.s32.totalorder %v2274_v25, 2  ;;  %v2589_v53 = vsel %vm2557_vm14, 4294967295, %v3525_v5  ;;  %v2298_v23 = vpop.xlane.xlu1 %2297 }
 0x6cb   : > { %v2622_v47 = vsel %vm2526_vm4, %v7628_v37, %v2590_v21  ;;  %v2591_v16 = vsel %vm2559_vm5, 4294967295, %v3526_v52  ;;  %v2621_v50 = vsel %vm2525_vm3, %v7629_v45, %v2589_v53  ;;  %v6312_v7 = vshll.u32 %v2342_v20, 16  ;;  %v2284_v38 = vpop.xlane.xlu0 %2283  ;;  %v2312_v61 = vpop.xlane.xlu2 %2311  ;;  %vm7637_vm5 = vmmov %vm7605_vm0 }
 0x6cc   : > { %2654 = vst.msk [vmem:[%s7169_s4 + $0x68] sm:$0xff] %vm7630_vm13, %v2622_v47  ;;  %v2776_v41 = vsel %vm7631_vm1, %v2622_v47, 2147483647  ;;  %v2623_v57 = vsel %vm2527_vm15, %v7632_v30, %v2591_v16  ;;  %v2773_v62 = vsel %vm7633_vm7, %v2621_v50, 2147483647  ;;  %v2285_v43 = vcvt.f32.s32 %v2284_v38  ;;  %vm7638_vm13 = vmmov %vm7605_vm0  ;;  %v7647_v38 = vld [vmem:[#allocation31_spill] sm:$0xff] }
 0x6cd   : > { %vm2777_vm2 = vcmp.lt.s32.totalorder %v2766_v26, %v2776_v41  ;;  %2655 = vst.msk [vmem:[%s7169_s4 + $0x70] sm:$0xff] %vm7634_vm6, %v2623_v57  ;;  %v2779_v54 = vsel %vm7605_vm0, %v2623_v57, 2147483647  ;;  %vm2774_vm8 = vcmp.lt.s32.totalorder %v6256_v11, %v2773_v62  ;;  %v2299_v42 = vcvt.f32.s32 %v2298_v23  ;;  %vm7640_vm7 = vmmov %vm7605_vm0  ;;  %v7644_v57 = vld [vmem:[#allocation32_spill] sm:$0xff] }
 0x6ce   : > { %vm2780_vm9 = vcmp.lt.s32.totalorder %v2769_v55, %v2779_v54  ;;  %2653 = vst.msk [vmem:[%s7169_s4 + $0x60] sm:$0xff] %vm7635_vm10, %v2621_v50  ;;  %v2775_v19 = vsel %vm2774_vm8, %v6256_v11, %v2773_v62  ;;  %v2313_v17 = vcvt.f32.s32 %v2312_v61  ;;  %v2384_v9 = vcvt.f32.s32 %v6104_v0  ;;  %v3527_v11 = vld [vmem:[%s7169_s4 + $0x78] sm:$0xff]  ;;  %vm7643_vm8 = vmmov %vm7605_vm0 }
 0x6cf   : > { %v2288_v63 = vadd.s32 %v2287_v2, %v2285_v43  ;;  %v2778_v12 = vsel %vm2777_vm2, %v2766_v26, %v2776_v41  ;;  %v6333_v8 = vsel %vm2780_vm9, %v2769_v55, %v2779_v54  ;;  %v2329_v32 = vshll.u32 %v2328_v3, 16  ;;  %v7636_v55 = vld [vmem:[#allocation75_spill] sm:$0xff]  ;;  %vm7641_vm2 = vmmov %vm7605_vm0 }
 0x6d0   : > { %v2370_v4 = vcvt.f32.s32 %v6106_v48  ;;  %v2302_v49 = vadd.s32 %v2301_v14, %v2299_v42  ;;  %v2316_v44 = vadd.s32 %v2315_v6, %v2313_v17  ;;  %v2357_v36 = vshll.u32 %v2356_v51, 16  ;;  %v3528_v48 = vld [vmem:[%s7169_s4 + $0x80] sm:$0xff]  ;;  %v3529_v14 = vld [vmem:[%s7169_s4 + $0x88] sm:$0xff] }
 0x6d1   : > { %v2398_v58 = vcvt.f32.s32 %v6110_v13  ;;  %vm2528_vm11 = vcmp.eq.s32.totalorder %v2288_v63, 1  ;;  %vm2560_vm4 = vcmp.eq.s32.totalorder %v2288_v63, 2  ;;  %v6340_v0 = vshll.u32 %v2384_v9, 16  ;;  %v3532_v54 = vld [vmem:[%s7169_s4 + $0xa0] sm:$0xff] }
 0x6d2   : > { %v2592_v10 = vsel %vm2560_vm4, 4294967295, %v3527_v11  ;;  %vm2529_vm12 = vcmp.eq.s32.totalorder %v2302_v49, 1  ;;  %vm2561_vm3 = vcmp.eq.s32.totalorder %v2302_v49, 2  ;;  %vm2530_vm14 = vcmp.eq.s32.totalorder %v2316_v44, 1  ;;  %v2340_v59 = vpop.xlane.xlu1 %2339  ;;  %v7650_v17 = vld [vmem:[#allocation91_spill] sm:$0xff] }
 0x6d3   : > { %v2624_v40 = vsel %vm2528_vm11, %v7636_v55, %v2592_v10  ;;  %v2593_v24 = vsel %vm2561_vm3, 4294967295, %v3528_v48  ;;  %vm2562_vm15 = vcmp.eq.s32.totalorder %v2316_v44, 2  ;;  %v2371_v13 = vshll.u32 %v2370_v4, 16  ;;  %v2326_v2 = vpop.xlane.xlu0 %2325  ;;  %v2354_v20 = vpop.xlane.xlu2 %2353 }
 0x6d4   : > { %2656 = vst.msk [vmem:[%s7169_s4 + $0x78] sm:$0xff] %vm7637_vm5, %v2624_v40  ;;  %v2782_v31 = vsel %vm7638_vm13, %v2624_v40, 2147483647  ;;  %v2625_v29 = vsel %vm2529_vm12, %v7639_v56, %v2593_v24  ;;  %v2594_v60 = vsel %vm2562_vm15, 4294967295, %v3529_v14  ;;  %v2327_v3 = vcvt.f32.s32 %v2326_v2  ;;  %vm7645_vm15 = vmmov %vm7605_vm0  ;;  %v7652_v56 = vld [vmem:[#allocation29_spill] sm:$0xff] }
 0x6d5   : > { %vm2783_vm1 = vcmp.lt.s32.totalorder %v6295_v27, %v2782_v31  ;;  %2657 = vst.msk [vmem:[%s7169_s4 + $0x80] sm:$0xff] %vm7640_vm7, %v2625_v29  ;;  %v2785_v26 = vsel %vm7641_vm2, %v2625_v29, 2147483647  ;;  %v2626_v6 = vsel %vm2530_vm14, %v7642_v33, %v2594_v60  ;;  %v2341_v39 = vcvt.f32.s32 %v2340_v59  ;;  %vm7646_vm5 = vmmov %vm7605_vm0  ;;  %v7655_v60 = vld [vmem:[#allocation33_spill] sm:$0xff]  ;;  %v3535_v59 = vld [vmem:[%s7169_s4 + $0xb8] sm:$0xff] }
 0x6d6   : > { %vm2786_vm6 = vcmp.lt.s32.totalorder %v2775_v19, %v2785_v26  ;;  %2658 = vst.msk [vmem:[%s7169_s4 + $0x88] sm:$0xff] %vm7605_vm0, %v2626_v6  ;;  %v2788_v25 = vsel %vm7643_vm8, %v2626_v6, 2147483647  ;;  %v2784_v21 = vsel %vm2783_vm1, %v6295_v27, %v2782_v31  ;;  %v2330_v5 = vadd.s32 %v2329_v32, %v2327_v3  ;;  %v3530_v27 = vld [vmem:[%s7169_s4 + $0x90] sm:$0xff]  ;;  %vm7648_vm1 = vmmov %vm7605_vm0  ;;  %v7658_v3 = vld [vmem:[#allocation92_spill] sm:$0xff] }
 0x6d7   : > { %vm2789_vm9 = vcmp.lt.s32.totalorder %v2778_v12, %v2788_v25  ;;  %v2355_v53 = vcvt.f32.s32 %v2354_v20  ;;  %v2787_v51 = vsel %vm2786_vm6, %v2775_v19, %v2785_v26  ;;  %v2399_v37 = vshll.u32 %v2398_v58, 16  ;;  %vm7649_vm7 = vmmov %vm7605_vm0 }
 0x6d8   : > { %v2426_v47 = vcvt.f32.s32 %v6119_v18  ;;  %v2344_v52 = vadd.s32 %v6312_v7, %v2341_v39  ;;  %v6371_v16 = vsel %vm2789_vm9, %v2778_v12, %v2788_v25  ;;  %v2412_v45 = vcvt.f32.s32 %v6121_v34  ;;  %v3531_v7 = vld [vmem:[%s7169_s4 + $0x98] sm:$0xff]  ;;  %vm7651_vm6 = vmmov %vm7605_vm0 }
 0x6d9   : > { %vm2531_vm10 = vcmp.eq.s32.totalorder %v2330_v5, 1  ;;  %vm2563_vm11 = vcmp.eq.s32.totalorder %v2330_v5, 2  ;;  %v2358_v50 = vadd.s32 %v2357_v36, %v2355_v53  ;;  %v2440_v41 = vcvt.f32.s32 %v6125_v46 }
 0x6da   : > { %v2595_v30 = vsel %vm2563_vm11, 4294967295, %v3530_v27  ;;  %vm2532_vm4 = vcmp.eq.s32.totalorder %v2344_v52, 1  ;;  %vm2564_vm12 = vcmp.eq.s32.totalorder %v2344_v52, 2  ;;  %v6382_v34 = vshll.u32 %v2426_v47, 16  ;;  %v2382_v42 = vpop.xlane.xlu1 %2381 }
 0x6db   : > { %v2627_v18 = vsel %vm2531_vm10, %v7644_v57, %v2595_v30  ;;  %v2596_v62 = vsel %vm2564_vm12, 4294967295, %v3531_v7  ;;  %vm2533_vm3 = vcmp.eq.s32.totalorder %v2358_v50, 1  ;;  %vm2565_vm14 = vcmp.eq.s32.totalorder %v2358_v50, 2  ;;  %v2368_v61 = vpop.xlane.xlu0 %2367  ;;  %v2396_v12 = vpop.xlane.xlu2 %2395  ;;  %v3536_v57 = vld [vmem:[%s7169_s4 + $0xc0] sm:$0xff] }
 0x6dc   : > { %2659 = vst.msk [vmem:[%s7169_s4 + $0x90] sm:$0xff] %vm7645_vm15, %v2627_v18  ;;  %v2791_v46 = vsel %vm7646_vm5, %v2627_v18, 2147483647  ;;  %v2628_v23 = vsel %vm2532_vm4, %v7647_v38, %v2596_v62  ;;  %v2597_v43 = vsel %vm2565_vm14, 4294967295, %v3532_v54  ;;  %v2369_v63 = vcvt.f32.s32 %v2368_v61  ;;  %vm7653_vm14 = vmmov %vm7605_vm0  ;;  %v3537_v62 = vld [vmem:[%s7169_s4 + $0xc8] sm:$0xff] }
 0x6dd   : > { %vm2792_vm13 = vcmp.lt.s32.totalorder %v6333_v8, %v2791_v46  ;;  %2660 = vst.msk [vmem:[%s7169_s4 + $0x98] sm:$0xff] %vm7648_vm1, %v2628_v23  ;;  %v2794_v19 = vsel %vm7649_vm7, %v2628_v23, 2147483647  ;;  %v2629_v9 = vsel %vm2533_vm3, %v7650_v17, %v2597_v43  ;;  %v2383_v4 = vcvt.f32.s32 %v2382_v42  ;;  %vm7654_vm15 = vmmov %vm7605_vm0  ;;  %v7664_v23 = vld [vmem:[#allocation78_spill] sm:$0xff]  ;;  %v7667_v17 = vld [vmem:[#allocation93_spill] sm:$0xff] }
 0x6de   : > { %vm2795_vm2 = vcmp.lt.s32.totalorder %v2784_v21, %v2794_v19  ;;  %2661 = vst.msk [vmem:[%s7169_s4 + $0xa0] sm:$0xff] %vm7651_vm6, %v2629_v9  ;;  %v2797_v32 = vsel %vm7605_vm0, %v2629_v9, 2147483647  ;;  %v2793_v49 = vsel %vm2792_vm13, %v6333_v8, %v2791_v46  ;;  %v2372_v44 = vadd.s32 %v2371_v13, %v2369_v63  ;;  %v3533_v8 = vld [vmem:[%s7169_s4 + $0xa8] sm:$0xff]  ;;  %vm7656_vm13 = vmmov %vm7605_vm0  ;;  %v3538_v43 = vld [vmem:[%s7169_s4 + $0xd0] sm:$0xff] }
 0x6df   : > { %vm2798_vm8 = vcmp.lt.s32.totalorder %v2787_v51, %v2797_v32  ;;  %v2397_v36 = vcvt.f32.s32 %v2396_v12  ;;  %v2796_v58 = vsel %vm2795_vm2, %v2784_v21, %v2794_v19  ;;  %v2413_v11 = vshll.u32 %v2412_v45, 16  ;;  %vm7657_vm1 = vmmov %vm7605_vm0 }
 0x6e0   : > { %v2441_v10 = vshll.u32 %v2440_v41, 16  ;;  %v2386_v55 = vadd.s32 %v6340_v0, %v2383_v4  ;;  %v6407_v40 = vsel %vm2798_vm8, %v2787_v51, %v2797_v32  ;;  %v2468_v48 = vcvt.f32.s32 %v6134_v35  ;;  %v3534_v0 = vld [vmem:[%s7169_s4 + $0xb0] sm:$0xff]  ;;  %vm7659_vm2 = vmmov %vm7605_vm0 }
 0x6e1   : > { %vm2534_vm9 = vcmp.eq.s32.totalorder %v2372_v44, 1  ;;  %vm2566_vm10 = vcmp.eq.s32.totalorder %v2372_v44, 2  ;;  %v2400_v24 = vadd.s32 %v2399_v37, %v2397_v36  ;;  %v2454_v31 = vcvt.f32.s32 %v6136_v22  ;;  %vm7660_vm6 = vmmov %vm7605_vm0 }
 0x6e2   : > { %v2598_v13 = vsel %vm2566_vm10, 4294967295, %v3533_v8  ;;  %vm2535_vm11 = vcmp.eq.s32.totalorder %v2386_v55, 1  ;;  %vm2567_vm4 = vcmp.eq.s32.totalorder %v2386_v55, 2  ;;  %v2482_v35 = vcvt.f32.s32 %v6140_v15  ;;  %v2424_v6 = vpop.xlane.xlu1 %2423 }
 0x6e3   : > { %v2630_v29 = vsel %vm2534_vm9, %v7652_v56, %v2598_v13  ;;  %v2599_v14 = vsel %vm2567_vm4, 4294967295, %v3534_v0  ;;  %vm2536_vm12 = vcmp.eq.s32.totalorder %v2400_v24, 1  ;;  %vm2568_vm3 = vcmp.eq.s32.totalorder %v2400_v24, 2  ;;  %v2410_v33 = vpop.xlane.xlu0 %2409  ;;  %v2438_v39 = vpop.xlane.xlu2 %2437  ;;  %v3540_v56 = vld [vmem:[%s7169_s4 + $0xe0] sm:$0xff] }
 0x6e4   : > { %2662 = vst.msk [vmem:[%s7169_s4 + $0xa8] sm:$0xff] %vm7653_vm14, %v2630_v29  ;;  %v2800_v22 = vsel %vm7654_vm15, %v2630_v29, 2147483647  ;;  %v2631_v2 = vsel %vm2535_vm11, %v7655_v60, %v2599_v14  ;;  %v2600_v26 = vsel %vm2568_vm3, 4294967295, %v3535_v59  ;;  %v2411_v25 = vcvt.f32.s32 %v2410_v33  ;;  %vm7662_vm3 = vmmov %vm7657_vm1  ;;  %v7672_v14 = vld [vmem:[#allocation80_spill] sm:$0xff]  ;;  %v7675_v33 = vld [vmem:[#allocation95_spill] sm:$0xff] }
 0x6e5   : > { %vm2801_vm5 = vcmp.lt.s32.totalorder %v6371_v16, %v2800_v22  ;;  %2663 = vst.msk [vmem:[%s7169_s4 + $0xb0] sm:$0xff] %vm7656_vm13, %v2631_v2  ;;  %v2803_v15 = vsel %vm7657_vm1, %v2631_v2, 2147483647  ;;  %v2632_v20 = vsel %vm2536_vm12, %v7658_v3, %v2600_v26  ;;  %v2425_v5 = vcvt.f32.s32 %v2424_v6  ;;  %vm7663_vm14 = vmmov %vm7657_vm1 }
 0x6e6   : > { %vm2804_vm7 = vcmp.lt.s32.totalorder %v2793_v49, %v2803_v15  ;;  %2664 = vst.msk [vmem:[%s7169_s4 + $0xb8] sm:$0xff] %vm7659_vm2, %v2632_v20  ;;  %v2806_v21 = vsel %vm7660_vm6, %v2632_v20, 2147483647  ;;  %v2802_v53 = vsel %vm2801_vm5, %v6371_v16, %v2800_v22  ;;  %v2414_v51 = vadd.s32 %v2413_v11, %v2411_v25  ;;  %v7661_v16 = vld [vmem:[#allocation77_spill] sm:$0xff]  ;;  %vm7665_vm5 = vmmov %vm7657_vm1 }
 0x6e7   : > { %vm2807_vm0 = vcmp.lt.s32.totalorder %v2796_v58, %v2806_v21  ;;  %v2439_v37 = vcvt.f32.s32 %v2438_v39  ;;  %v2805_v47 = vsel %vm2804_vm7, %v2793_v49, %v2803_v15  ;;  %v2469_v52 = vshll.u32 %v2468_v48, 16  ;;  %vm7666_vm13 = vmmov %vm7657_vm1  ;;  %v3541_v22 = vld [vmem:[%s7169_s4 + $0xe8] sm:$0xff] }
 0x6e8   : > { %v2428_v45 = vadd.s32 %v6382_v34, %v2425_v5  ;;  %v6442_v50 = vsel %vm2807_vm0, %v2796_v58, %v2806_v21  ;;  %v2455_v41 = vshll.u32 %v2454_v31, 16  ;;  %vm2537_vm8 = vcmp.eq.s32.totalorder %v2414_v51, 1  ;;  %vm7668_vm7 = vmmov %vm7659_vm2  ;;  %v3539_v31 = vld [vmem:[%s7169_s4 + $0xd8] sm:$0xff] }
 0x6e9   : > { %vm2569_vm9 = vcmp.eq.s32.totalorder %v2414_v51, 2  ;;  %v2442_v27 = vadd.s32 %v2441_v10, %v2439_v37  ;;  %v2483_v30 = vshll.u32 %v2482_v35, 16  ;;  %v2510_v46 = vcvt.f32.s32 %v6148_v28  ;;  %v3542_v51 = vld [vmem:[%s7169_s4 + $0xf0] sm:$0xff] }
 0x6ea   : > { %v2601_v18 = vsel %vm2569_vm9, 4294967295, %v3536_v57  ;;  %vm2538_vm10 = vcmp.eq.s32.totalorder %v2428_v45, 1  ;;  %vm2570_vm11 = vcmp.eq.s32.totalorder %v2428_v45, 2  ;;  %v2466_v19 = vpop.xlane.xlu1 %2465  ;;  %v2496_v11 = vcvt.f32.s32 %v6150_v1 }
 0x6eb   : > { %v2633_v7 = vsel %vm2537_vm8, %v7661_v16, %v2601_v18  ;;  %v2602_v34 = vsel %vm2570_vm11, 4294967295, %v3537_v62  ;;  %vm2539_vm4 = vcmp.eq.s32.totalorder %v2442_v27, 1  ;;  %vm2571_vm12 = vcmp.eq.s32.totalorder %v2442_v27, 2  ;;  %v2452_v42 = vpop.xlane.xlu0 %2451  ;;  %v2480_v12 = vpop.xlane.xlu2 %2479 }
 0x6ec   : > { %2665 = vst.msk [vmem:[%s7169_s4 + $0xc0] sm:$0xff] %vm7662_vm3, %v2633_v7  ;;  %v2809_v38 = vsel %vm7663_vm14, %v2633_v7, 2147483647  ;;  %v2634_v54 = vsel %vm2538_vm10, %v7664_v23, %v2602_v34  ;;  %v2603_v61 = vsel %vm2571_vm12, 4294967295, %v3538_v43  ;;  %v2453_v63 = vcvt.f32.s32 %v2452_v42  ;;  %vm7670_vm12 = vmmov %vm7659_vm2 }
 0x6ed   : > { %vm2810_vm15 = vcmp.lt.s32.totalorder %v6407_v40, %v2809_v38  ;;  %2666 = vst.msk [vmem:[%s7169_s4 + $0xc8] sm:$0xff] %vm7665_vm5, %v2634_v54  ;;  %v2812_v28 = vsel %vm7666_vm13, %v2634_v54, 2147483647  ;;  %v2635_v9 = vsel %vm2539_vm4, %v7667_v17, %v2603_v61  ;;  %v2467_v4 = vcvt.f32.s32 %v2466_v19  ;;  %vm7671_vm3 = vmmov %vm7659_vm2 }
 0x6ee   : > { %vm2813_vm1 = vcmp.lt.s32.totalorder %v2802_v53, %v2812_v28  ;;  %2667 = vst.msk [vmem:[%s7169_s4 + $0xd0] sm:$0xff] %vm7668_vm7, %v2635_v9  ;;  %v2815_v32 = vsel %vm7659_vm2, %v2635_v9, 2147483647  ;;  %v2811_v49 = vsel %vm2810_vm15, %v6407_v40, %v2809_v38  ;;  %v2456_v44 = vadd.s32 %v2455_v41, %v2453_v63  ;;  %v7669_v40 = vld [vmem:[#allocation79_spill] sm:$0xff]  ;;  %vm7673_vm15 = vmmov %vm7659_vm2 }
 0x6ef   : > { %vm2816_vm6 = vcmp.lt.s32.totalorder %v2805_v47, %v2815_v32  ;;  %v2481_v36 = vcvt.f32.s32 %v2480_v12  ;;  %v2814_v58 = vsel %vm2813_vm1, %v2802_v53, %v2812_v28  ;;  %v2470_v10 = vadd.s32 %v2469_v52, %v2467_v4  ;;  %vm7674_vm5 = vmmov %vm7659_vm2  ;;  %v7678_v52 = vld [vmem:[#allocation81_spill] sm:$0xff] }
 0x6f0   : > { %v2817_v55 = vsel %vm2816_vm6, %v2805_v47, %v2815_v32  ;;  %vm2540_vm0 = vcmp.eq.s32.totalorder %v2456_v44, 1  ;;  %vm2572_vm8 = vcmp.eq.s32.totalorder %v2456_v44, 2  ;;  %v2511_v24 = vshll.u32 %v2510_v46, 16  ;;  %vm7676_vm1 = vmmov %vm7659_vm2 }
 0x6f1   : > { %v2484_v48 = vadd.s32 %v2483_v30, %v2481_v36  ;;  %v2604_v8 = vsel %vm2572_vm8, 4294967295, %v3539_v31  ;;  %vm2541_vm9 = vcmp.eq.s32.totalorder %v2470_v10, 1  ;;  %vm2573_vm10 = vcmp.eq.s32.totalorder %v2470_v10, 2  ;;  %vm7677_vm7 = vmmov %vm7676_vm1  ;;  %v7681_v30 = vld [vmem:[#allocation90_spill] sm:$0xff] }
 0x6f2   : > { %v2636_v13 = vsel %vm2540_vm0, %v7669_v40, %v2604_v8  ;;  %v2605_v1 = vsel %vm2573_vm10, 4294967295, %v3540_v56  ;;  %v2497_v29 = vshll.u32 %v2496_v11, 16  ;;  %v2508_v59 = vpop.xlane.xlu1 %2507 }
 0x6f3   : > { %vm2542_vm11 = vcmp.eq.s32.totalorder %v2484_v48, 1  ;;  %vm2574_vm4 = vcmp.eq.s32.totalorder %v2484_v48, 2  ;;  %2668 = vst.msk [vmem:[%s7169_s4 + $0xd8] sm:$0xff] %vm7670_vm12, %v2636_v13  ;;  %v2818_v0 = vsel %vm7671_vm3, %v2636_v13, 2147483647  ;;  %v2637_v35 = vsel %vm2541_vm9, %v7672_v14, %v2605_v1  ;;  %v2494_v2 = vpop.xlane.xlu0 %2493  ;;  %vm7682_vm3 = vmmov %vm7676_vm1 }
 0x6f4   : > { %v2606_v60 = vsel %vm2574_vm4, 4294967295, %v3541_v22  ;;  %vm2819_vm14 = vcmp.lt.s32.totalorder %v6442_v50, %v2818_v0  ;;  %2669 = vst.msk [vmem:[%s7169_s4 + $0xe0] sm:$0xff] %vm7673_vm15, %v2637_v35  ;;  %v2821_v26 = vsel %vm7674_vm5, %v2637_v35, 2147483647  ;;  %v2495_v15 = vcvt.f32.s32 %v2494_v2  ;;  %vm7680_vm4 = vmmov %vm7676_vm1 }
 0x6f5   : > { %v2638_v6 = vsel %vm2542_vm11, %v7675_v33, %v2606_v60  ;;  %vm2822_vm13 = vcmp.lt.s32.totalorder %v2811_v49, %v2821_v26  ;;  %v2509_v20 = vcvt.f32.s32 %v2508_v59  ;;  %v2820_v25 = vsel %vm2819_vm14, %v6442_v50, %v2818_v0  ;;  %v3543_v50 = vld [vmem:[%s7169_s4 + $0xf8] sm:$0xff]  ;;  %vm7679_vm11 = vmmov %vm7676_vm1 }
 0x6f6   : > { %2670 = vst.msk [vmem:[%s7169_s4 + $0xe8] sm:$0xff] %vm7676_vm1, %v2638_v6  ;;  %v2824_v3 = vsel %vm7677_vm7, %v2638_v6, 2147483647  ;;  %v2498_v39 = vadd.s32 %v2497_v29, %v2495_v15  ;;  %v2823_v21 = vsel %vm2822_vm13, %v2811_v49, %v2821_v26  ;;  %vm7683_vm14 = vmmov %vm7676_vm1 }
 0x6f7   : > { %vm2825_vm2 = vcmp.lt.s32.totalorder %v2814_v58, %v2824_v3  ;;  %v2512_v5 = vadd.s32 %v2511_v24, %v2509_v20 }
 0x6f8   : > { %v2826_v53 = vsel %vm2825_vm2, %v2814_v58, %v2824_v3  ;;  %vm2543_vm6 = vcmp.eq.s32.totalorder %v2498_v39, 1  ;;  %vm2575_vm0 = vcmp.eq.s32.totalorder %v2498_v39, 2 }
 0x6f9   : > { %vm2833_vm8 = vcmp.lt.s32.totalorder %v2823_v21, %v2826_v53  ;;  %v2607_v37 = vsel %vm2575_vm0, 4294967295, %v3542_v51  ;;  %vm2544_vm9 = vcmp.eq.s32.totalorder %v2512_v5, 1  ;;  %vm2576_vm10 = vcmp.eq.s32.totalorder %v2512_v5, 2 }
 0x6fa   : > { %v2834_v47 = vsel %vm2833_vm8, %v2823_v21, %v2826_v53  ;;  %v2639_v45 = vsel %vm2543_vm6, %v7678_v52, %v2607_v37  ;;  %v2608_v41 = vsel %vm2576_vm10, 4294967295, %v3543_v50 }
 0x6fb   : > { %2671 = vst.msk [vmem:[%s7169_s4 + $0xf0] sm:$0xff] %vm7679_vm11, %v2639_v45  ;;  %v2827_v27 = vsel %vm7680_vm4, %v2639_v45, 2147483647  ;;  %v2640_v57 = vsel %vm2544_vm9, %v7681_v30, %v2608_v41 }
 0x6fc   : > { %vm2828_vm12 = vcmp.lt.s32.totalorder %v2817_v55, %v2827_v27  ;;  %2672 = vst.msk [vmem:[%s7169_s4 + $0xf8] sm:$0xff] %vm7682_vm3, %v2640_v57  ;;  %v2830_v18 = vsel %vm7683_vm14, %v2640_v57, 2147483647 }
 0x6fd   : > { %vm2831_vm15 = vcmp.lt.s32.totalorder %v2820_v25, %v2830_v18  ;;  %v2829_v16 = vsel %vm2828_vm12, %v2817_v55, %v2827_v27 }
 0x6fe   : > { %v2832_v7 = vsel %vm2831_vm15, %v2820_v25, %v2830_v18 }
 0x6ff   : > { %vm2835_vm5 = vcmp.lt.s32.totalorder %v2829_v16, %v2832_v7 }
 0x700   : > { %v2836_v62 = vsel %vm2835_vm5, %v2829_v16, %v2832_v7 }
 0x701   : > { %vm2837_vm13 = vcmp.lt.s32.totalorder %v2834_v47, %v2836_v62 }
 0x702   : > { %v2838_v34 = vsel %vm2837_vm13, %v2834_v47, %v2836_v62 }
 0x703   : > { %v2840_v46 = vshra.s32 %v2838_v34, 16  ;;  %v2839_v23 = vand.u32 65535, %v2838_v34 }
 0x705   : > { %v2842_v38 = vcvt.s32.f32 %v2840_v46  ;;  %v2841_v43 = vcvt.s32.f32 %v2839_v23 }
 0x707   : > { %2843 = vmin.xlane.f32.xlu2 %v2842_v38 }
 0x77a   : > { %v2844_v54 = vpop.xlane.xlu2 %2843 }
 0x77b   : > { %vm2845_vm1 = vcmp.eq.f32.partialorder %v2842_v38, %v2844_v54  ;;  %v2850_v42 = vcvt.f32.s32 %v2844_v54 }
 0x77c   : > { %v2846_v61 = vsel %vm2845_vm1, %v2841_v43, inf }
 0x77d   : > { %2847 = vmin.xlane.f32.xlu0 %v2846_v61  ;;  %v2851_v28 = vshll.u32 %v2850_v42, 16 }
 0x7f0   : > { %v2848_v19 = vpop.xlane.xlu0 %2847 }
 0x7f1   : > { %v2849_v17 = vcvt.f32.s32 %v2848_v19 }
 0x7f3   : > { %v2852_v9 = vadd.s32 %v2851_v28, %v2849_v17 }
 0x7f5   : > { %v2853_v63 = vrot.slane %v2852_v9, 4 }
 0x7f7   : > { %vm2854_vm7 = vcmp.lt.s32.totalorder %v2852_v9, %v2853_v63 }
 0x7f8   : > { %v2855_v12 = vsel %vm2854_vm7, %v2852_v9, %v2853_v63 }
 0x7f9   : > { %v2856_v32 = vrot.slane %v2855_v12, 2 }
 0x7fb   : > { %vm2857_vm2 = vcmp.lt.s32.totalorder %v2855_v12, %v2856_v32 }
 0x7fc   : > { %v2858_v4 = vsel %vm2857_vm2, %v2855_v12, %v2856_v32 }
 0x7fd   : > { %v2859_v49 = vrot.slane %v2858_v4, 1 }
 0x7ff   : > { %vm2860_vm6 = vcmp.lt.s32.totalorder %v2858_v4, %v2859_v49 }
 0x800   : > { %v2861_v44 = vsel %vm2860_vm6, %v2858_v4, %v2859_v49 }
 0x801   : > { %3436 = vpush %v2861_v44 }
 0x832   : > { %s3437_s15 = spop %3436 }
 0x833   : > { %p2863_p1 = scmp.ge.s32.totalorder %s3437_s15, 0 }
 0x835   : > { %s2864_s16 = scalar_select %p2863_p1, 1, 0 }
 0x837   : > { %2865 = sst [smem:[#allocation4]] %s2864_s16 }
 0x838 PF: > { %s524_s8 = sadd.s32 1, %s3607_s8  }
 0x839   : > { %p521_p2 = scmp.ge.s32.totalorder %s524_s8, 50  }
 0x83a   :  { %v2904_v36 = vld [vmem:[%s7169_s4 + $0x20] sm:$0xff] (%p521_p2)  ;;  %v2902_v58 = vld [vmem:[%s7169_s4 + $0x10] sm:$0xff] (%p521_p2)  ;;  %v3617_v10 = vmov (%p521_p2), 0   ;;  %v2905_v55 = vld [vmem:[%s7169_s4 + $0x28] sm:$0xff] (%p521_p2) }
 0x83b   :  { %523 = sbr.rel (!%p521_p2) target bundleno = 580 (0x244), region = 60  ;;  %v2900_v11 = vld [vmem:[%s7169_s4] sm:$0xff] (%p521_p2)  ;;  %3546 = vset.pattern.permute.xlu2 (%p521_p2), %v3617_v10  ;;  %3545 = vset.pattern.permute.xlu1 (%p521_p2), %v3617_v10  ;;  %v2903_v48 = vld [vmem:[%s7169_s4 + $0x18] sm:$0xff] (%p521_p2)  ;;  %v2901_v24 = vld [vmem:[%s7169_s4 + $0x8] sm:$0xff] (%p521_p2) }
 0x83c   :  { %3544 = vset.pattern.permute.xlu0 (%p521_p2), %v3617_v10  ;;  %2945 = vperm.xlu2 (%p521_p2), %3546, %v2904_v36   ;;  %v2908_v31 = vld [vmem:[%s7169_s4 + $0x40] sm:$0xff] (%p521_p2)  ;;  %v2907_v8 = vld [vmem:[%s7169_s4 + $0x38] sm:$0xff] (%p521_p2)  ;;  %v2906_v40 = vld [vmem:[%s7169_s4 + $0x30] sm:$0xff] (%p521_p2) }
 0x83d   :  { %2939 = vperm.xlu1 (%p521_p2), %3545, %v2902_v58   ;;  %2933 = vperm.xlu0 (%p521_p2), %3544, %v2900_v11   ;;  %v2911_v13 = vld [vmem:[%s7169_s4 + $0x58] sm:$0xff] (%p521_p2)  ;;  %v2910_v56 = vld [vmem:[%s7169_s4 + $0x50] sm:$0xff] (%p521_p2)  ;;  %v2909_v1 = vld [vmem:[%s7169_s4 + $0x48] sm:$0xff] (%p521_p2) }
 0x83e   :  { %v2914_v29 = vld [vmem:[%s7169_s4 + $0x70] sm:$0xff] (%p521_p2)  ;;  %v2913_v0 = vld [vmem:[%s7169_s4 + $0x68] sm:$0xff] (%p521_p2)  ;;  %v2912_v14 = vld [vmem:[%s7169_s4 + $0x60] sm:$0xff] (%p521_p2) }
 0x83f   :  { %v2917_v35 = vld [vmem:[%s7169_s4 + $0x88] sm:$0xff] (%p521_p2)  ;;  %v2916_v22 = vld [vmem:[%s7169_s4 + $0x80] sm:$0xff] (%p521_p2)  ;;  %v2915_v60 = vld [vmem:[%s7169_s4 + $0x78] sm:$0xff] (%p521_p2) }
 0x840   :  { %v2920_v2 = vld [vmem:[%s7169_s4 + $0xa0] sm:$0xff]  ;;  %v2919_v59 = vld [vmem:[%s7169_s4 + $0x98] sm:$0xff]  ;;  %v2918_v26 = vld [vmem:[%s7169_s4 + $0x90] sm:$0xff] }
 0x841   :  { %v2923_v33 = vld [vmem:[%s7169_s4 + $0xb8] sm:$0xff]  ;;  %v2922_v6 = vld [vmem:[%s7169_s4 + $0xb0] sm:$0xff]  ;;  %v2921_v15 = vld [vmem:[%s7169_s4 + $0xa8] sm:$0xff] }
 0x842   :  { %v2926_v3 = vld [vmem:[%s7169_s4 + $0xd0] sm:$0xff]  ;;  %v2925_v20 = vld [vmem:[%s7169_s4 + $0xc8] sm:$0xff]  ;;  %v2924_v25 = vld [vmem:[%s7169_s4 + $0xc0] sm:$0xff] }
 0x843   :  { %v2929_v39 = vld [vmem:[%s7169_s4 + $0xe8] sm:$0xff]  ;;  %v2928_v21 = vld [vmem:[%s7169_s4 + $0xe0] sm:$0xff]  ;;  %v2927_v5 = vld [vmem:[%s7169_s4 + $0xd8] sm:$0xff] }
 0x844   :  { %2948 = vperm.xlu2 %3546, %v2905_v55   ;;  %v2931_v53 = vld [vmem:[%s7169_s4 + $0xf8] sm:$0xff]  ;;  %v2930_v51 = vld [vmem:[%s7169_s4 + $0xf0] sm:$0xff]  ;;  %v2867_v16 = vld [vmem:[#allocation2] sm:$0xff] }
 0x845   :  { %2942 = vperm.xlu1 %3545, %v2903_v48   ;;  %2936 = vperm.xlu0 %3544, %v2901_v24   ;;  %v2866_v52 = vld [vmem:[#allocation2 + $0xb0] sm:$0xff]  ;;  %v2868_v30 = vld [vmem:[#allocation2 + $0xd8] sm:$0xff]  ;;  %v2871_v43 = vld [vmem:[#allocation2 + $0x68] sm:$0xff] }
 0x846   :  { %v7684_v41 = vld [vmem:[#allocation13_spill] sm:$0xff]  ;;  %v2869_v7 = vld [vmem:[#allocation2 + $0x18] sm:$0xff]  ;;  %v2874_v12 = vld [vmem:[#allocation2 + $0x80] sm:$0xff] }
 0x847   :  { %v2872_v54 = vld [vmem:[#allocation2 + $0x30] sm:$0xff]  ;;  %v2875_v63 = vld [vmem:[#allocation2 + $0x88] sm:$0xff]  ;;  %v2878_v10 = vld [vmem:[#allocation2 + $0x60] sm:$0xff] }
 0x848   :  { %v2870_v19 = vld [vmem:[#allocation2 + $0x50] sm:$0xff]  ;;  %v2873_v49 = vld [vmem:[#allocation2 + $0x48] sm:$0xff]  ;;  %v2877_v55 = vld [vmem:[#allocation2 + $0xb8] sm:$0xff] }
 0x84c   :  { %2957 = vperm.xlu2 %3546, %v2908_v31   ;;  %v2876_v31 = vld [vmem:[#allocation2 + $0xe8] sm:$0xff] }
 0x84d   :  { %2954 = vperm.xlu1 %3545, %v2907_v8   ;;  %2951 = vperm.xlu0 %3544, %v2906_v40  }
 0x854   :  { %2966 = vperm.xlu2 %3546, %v2911_v13  }
 0x855   :  { %2963 = vperm.xlu1 %3545, %v2910_v56   ;;  %2960 = vperm.xlu0 %3544, %v2909_v1   ;;  %v2881_v1 = vld [vmem:[#allocation2 + $0x78] sm:$0xff] }
 0x85c   :  { %2975 = vperm.xlu2 %3546, %v2914_v29   ;;  %v2880_v29 = vld [vmem:[#allocation2 + $0x8] sm:$0xff] }
 0x85d   :  { %2972 = vperm.xlu1 %3545, %v2913_v0   ;;  %2969 = vperm.xlu0 %3544, %v2912_v14  }
 0x864   :  { %2984 = vperm.xlu2 %3546, %v2917_v35   ;;  %v2879_v35 = vld [vmem:[#allocation2 + $0xf0] sm:$0xff] }
 0x865   :  { %2981 = vperm.xlu1 %3545, %v2916_v22   ;;  %2978 = vperm.xlu0 %3544, %v2915_v60  }
 0x86c   :  { %2993 = vperm.xlu2 %3546, %v2920_v2  }
 0x86d   :  { %2990 = vperm.xlu1 %3545, %v2919_v59   ;;  %2987 = vperm.xlu0 %3544, %v2918_v26   ;;  %v2884_v26 = vld [vmem:[#allocation2 + $0x40] sm:$0xff] }
 0x874   :  { %3002 = vperm.xlu2 %3546, %v2923_v33   ;;  %v2883_v33 = vld [vmem:[#allocation2 + $0x58] sm:$0xff] }
 0x875   :  { %2999 = vperm.xlu1 %3545, %v2922_v6   ;;  %2996 = vperm.xlu0 %3544, %v2921_v15  }
 0x87c   :  { %3011 = vperm.xlu2 %3546, %v2926_v3   ;;  %v2882_v3 = vld [vmem:[#allocation2 + $0x38] sm:$0xff] }
 0x87d   :  { %3008 = vperm.xlu1 %3545, %v2925_v20   ;;  %3005 = vperm.xlu0 %3544, %v2924_v25  }
 0x884   :  { %3020 = vperm.xlu2 %3546, %v2929_v39  }
 0x885   :  { %3017 = vperm.xlu1 %3545, %v2928_v21   ;;  %3014 = vperm.xlu0 %3544, %v2927_v5   ;;  %v2887_v5 = vld [vmem:[#allocation2 + $0x90] sm:$0xff] }
 0x88d   :  { %3026 = vperm.xlu1 %3545, %v2931_v53   ;;  %3023 = vperm.xlu0 %3544, %v2930_v51   ;;  %v2886_v53 = vld [vmem:[#allocation2 + $0xe0] sm:$0xff] }
 0x896   :  { %v6621_v37 = vpop.permute.xlu2 %2945 }
 0x897   :  { %vm3032_vm4 = vcmp.eq.s32.totalorder %v7684_v41, %v6621_v37 }
 0x898   :  { %v3064_v9 = vsel %vm3032_vm4, %v2870_v19, 0.0 }
 0x89e   :  { %v6623_v47 = vpop.permute.xlu2 %2948 }
 0x89f   :  { %vm3033_vm11 = vcmp.eq.s32.totalorder %v7684_v41, %v6623_v47 }
 0x8a0   :  { %v3065_v17 = vsel %vm3033_vm11, %v2871_v43, 0.0 }
 0x8a6   :  { %v6636_v57 = vpop.permute.xlu2 %2957 }
 0x8a7   :  { %vm3036_vm3 = vcmp.eq.s32.totalorder %v7684_v41, %v6636_v57 }
 0x8a8   :  { %v3068_v58 = vsel %vm3036_vm3, %v2874_v12, 0.0  ;;  %v2892_v12 = vld [vmem:[#allocation2 + $0x10] sm:$0xff] }
 0x8ae   :  { %v6657_v23 = vpop.permute.xlu2 %2966 }
 0x8af   :  { %v6625_v45 = vpop.permute.xlu1 %2939  ;;  %v6627_v50 = vpop.permute.xlu0 %2933  ;;  %vm7332_vm5 = vcmp.eq.s32.totalorder %v7684_v41, %v6657_v23 }
 0x8b0   :  { %vm3028_vm0 = vcmp.eq.s32.totalorder %v7684_v41, %v6627_v50  ;;  %vm3030_vm8 = vcmp.eq.s32.totalorder %v7684_v41, %v6625_v45  ;;  %v3071_v40 = vsel %vm7332_vm5, %v2877_v55, 0.0 }
 0x8b1   :  { %v3060_v27 = vsel %vm3028_vm0, %v2866_v52, 0.0  ;;  %v3062_v18 = vsel %vm3030_vm8, %v2868_v30, 0.0 }
 0x8b2   :  { %3092 = vadd.xlane.f32.xlu2 %v3060_v27  ;;  %v2885_v27 = vld [vmem:[#allocation2 + $0xc8] sm:$0xff] }
 0x8b6   :  { %v6684_v44 = vpop.permute.xlu2 %2975 }
 0x8b7   :  { %v6641_v62 = vpop.permute.xlu1 %2942  ;;  %v6643_v34 = vpop.permute.xlu0 %2936  ;;  %3096 = vadd.xlane.f32.xlu1 %v3062_v18  ;;  %vm7334_vm7 = vcmp.eq.s32.totalorder %v7684_v41, %v6684_v44 }
 0x8b8   :  { %vm3031_vm9 = vcmp.eq.s32.totalorder %v7684_v41, %v6641_v62  ;;  %vm3029_vm10 = vcmp.eq.s32.totalorder %v7684_v41, %v6643_v34  ;;  %v3074_v60 = vsel %vm7334_vm7, %v2880_v29, 0.0 }
 0x8b9   :  { %v3061_v46 = vsel %vm3029_vm10, %v2867_v16, 0.0  ;;  %v3063_v38 = vsel %vm3031_vm9, %v2869_v7, 0.0  ;;  %v2890_v7 = vld [vmem:[#allocation2 + $0xa8] sm:$0xff] }
 0x8ba   :  { %3094 = vadd.xlane.f32.xlu0 %v3061_v46  ;;  %3098 = vadd.xlane.f32.xlu2 %v3063_v38  ;;  %v2889_v46 = vld [vmem:[#allocation2 + $0xc0] sm:$0xff] }
 0x8be   :  { %v6713_v13 = vpop.permute.xlu2 %2984 }
 0x8bf   :  { %v6661_v61 = vpop.permute.xlu1 %2954  ;;  %v6663_v42 = vpop.permute.xlu0 %2951  ;;  %vm7337_vm5 = vcmp.eq.s32.totalorder %v7684_v41, %v6713_v13 }
 0x8c0   :  { %vm3034_vm12 = vcmp.eq.s32.totalorder %v7684_v41, %v6663_v42  ;;  %vm3035_vm14 = vcmp.eq.s32.totalorder %v7684_v41, %v6661_v61  ;;  %v3077_v25 = vsel %vm7337_vm5, %v2883_v33, 0.0 }
 0x8c1   :  { %v3066_v28 = vsel %vm3034_vm12, %v2872_v54, 0.0  ;;  %v3067_v11 = vsel %vm3035_vm14, %v2873_v49, 0.0  ;;  %v2888_v54 = vld [vmem:[#allocation2 + $0x70] sm:$0xff] }
 0x8c2   :  { %3104 = vadd.xlane.f32.xlu1 %v3066_v28  ;;  %3102 = vadd.xlane.f32.xlu0 %v3065_v17 }
 0x8c3   :  { %3100 = vadd.xlane.f32.xlu2 %v3064_v9 }
 0x8c6   :  { %v6737_v59 = vpop.permute.xlu2 %2993 }
 0x8c7   :  { %v6680_v32 = vpop.permute.xlu1 %2963  ;;  %v6682_v4 = vpop.permute.xlu0 %2960 }
 0x8c8   :  { %vm3037_vm15 = vcmp.eq.s32.totalorder %v7684_v41, %v6682_v4  ;;  %vm3038_vm13 = vcmp.eq.s32.totalorder %v7684_v41, %v6680_v32 }
 0x8c9   :  { %v3069_v36 = vsel %vm3037_vm15, %v2875_v63, 0.0  ;;  %v3070_v56 = vsel %vm3038_vm13, %v2876_v31, 0.0  ;;  %v2893_v63 = vld [vmem:[#allocation2 + $0x28] sm:$0xff] }
 0x8ca   :  { %3110 = vadd.xlane.f32.xlu1 %v3069_v36  ;;  %3108 = vadd.xlane.f32.xlu0 %v3068_v58  ;;  %v2891_v36 = vld [vmem:[#allocation2 + $0xd0] sm:$0xff] }
 0x8cb   :  { %3106 = vadd.xlane.f32.xlu2 %v3067_v11 }
 0x8ce   :  { %v6760_v21 = vpop.permute.xlu2 %3002 }
 0x8cf   :  { %v6701_v48 = vpop.permute.xlu1 %2972  ;;  %v6703_v24 = vpop.permute.xlu0 %2969 }
 0x8d0   :  { %vm7335_vm1 = vcmp.eq.s32.totalorder %v7684_v41, %v6703_v24  ;;  %vm7339_vm2 = vcmp.eq.s32.totalorder %v7684_v41, %v6701_v48 }
 0x8d1   :  { %v3072_v8 = vsel %vm7335_vm1, %v2878_v10, 0.0  ;;  %v3073_v2 = vsel %vm7339_vm2, %v2879_v35, 0.0  ;;  %vm7340_vm1 = vcmp.eq.s32.totalorder %v7684_v41, %v6737_v59 }
 0x8d2   :  { %3116 = vadd.xlane.f32.xlu1 %v3072_v8  ;;  %3114 = vadd.xlane.f32.xlu0 %v3071_v40  ;;  %v3080_v18 = vsel %vm7340_vm1, %v2886_v53, 0.0  ;;  %v2896_v8 = vld [vmem:[#allocation2 + $0x20] sm:$0xff]  ;;  %v2895_v40 = vld [vmem:[#allocation2 + $0xf8] sm:$0xff] }
 0x8d3   :  { %3112 = vadd.xlane.f32.xlu2 %v3070_v56 }
 0x8d6   :  { %v6789_v19 = vpop.permute.xlu2 %3011 }
 0x8d7   :  { %v6722_v0 = vpop.permute.xlu1 %2981  ;;  %v6724_v14 = vpop.permute.xlu0 %2978 }
 0x8d8   :  { %vm7333_vm6 = vcmp.eq.s32.totalorder %v7684_v41, %v6724_v14 }
 0x8d9   :  { %v3075_v22 = vsel %vm7333_vm6, %v2881_v1, 0.0  ;;  %vm7338_vm6 = vcmp.eq.s32.totalorder %v7684_v41, %v6722_v0  ;;  %v2894_v1 = vld [vmem:[#allocation2 + $0xa0] sm:$0xff] }
 0x8da   :  { %3122 = vadd.xlane.f32.xlu1 %v3075_v22  ;;  %3120 = vadd.xlane.f32.xlu0 %v3074_v60  ;;  %v3076_v39 = vsel %vm7338_vm6, %v2882_v3, 0.0  ;;  %vm7343_vm6 = vcmp.eq.s32.totalorder %v7684_v41, %v6760_v21 }
 0x8db   :  { %3118 = vadd.xlane.f32.xlu2 %v3073_v2  ;;  %v3083_v17 = vsel %vm7343_vm6, %v2889_v46, 0.0  ;;  %v3547_v2 = vld [vmem:[#allocation3] ss:$0 sm:$0xff] }
 0x8dc   :  { %v3195_v33 = vsel %vm3029_vm10, %v3547_v2, 0.0  ;;  %v3194_v3 = vsel %vm3028_vm0, %v3547_v2, 0.0  ;;  %v3197_v34 = vsel %vm3031_vm9, %v3547_v2, 0.0  ;;  %v3196_v50 = vsel %vm3030_vm8, %v3547_v2, 0.0 }
 0x8dd   :  { %v3200_v37 = vsel %vm3034_vm12, %v3547_v2, 0.0  ;;  %v3199_v62 = vsel %vm3033_vm11, %v3547_v2, 0.0  ;;  %v3204_v45 = vsel %vm3038_vm13, %v3547_v2, 0.0  ;;  %v3203_v61 = vsel %vm3037_vm15, %v3547_v2, 0.0 }
 0x8de   :  { %v6819_v31 = vpop.permute.xlu2 %3020  ;;  %v3202_v42 = vsel %vm3036_vm3, %v3547_v2, 0.0  ;;  %vm7685_vm0 = vcmp.eq.s32.totalorder %v7684_v41, %v6701_v48  ;;  %vm7686_vm8 = vcmp.eq.s32.totalorder %v7684_v41, %v6703_v24  ;;  %vm7687_vm9 = vcmp.eq.s32.totalorder %v7684_v41, %v6657_v23 }
 0x8df   :  { %v6743_v6 = vpop.permute.xlu1 %2990  ;;  %v6745_v15 = vpop.permute.xlu0 %2987  ;;  %v3207_v47 = vsel %vm7685_vm0, %v3547_v2, 0.0  ;;  %v3206_v32 = vsel %vm7686_vm8, %v3547_v2, 0.0  ;;  %v3205_v4 = vsel %vm7687_vm9, %v3547_v2, 0.0  ;;  %vm7688_vm10 = vcmp.eq.s32.totalorder %v7684_v41, %v6722_v0 }
 0x8e0   :  { %vm7336_vm7 = vcmp.eq.s32.totalorder %v7684_v41, %v6745_v15  ;;  %vm7689_vm11 = vcmp.eq.s32.totalorder %v7684_v41, %v6724_v14  ;;  %vm7691_vm12 = vcmp.eq.s32.totalorder %v7684_v41, %v6743_v6  ;;  %vm7692_vm3 = vcmp.eq.s32.totalorder %v7684_v41, %v6745_v15 }
 0x8e1   :  { %v3078_v20 = vsel %vm7336_vm7, %v2884_v26, 0.0  ;;  %vm7342_vm7 = vcmp.eq.s32.totalorder %v7684_v41, %v6743_v6  ;;  %v2897_v26 = vld [vmem:[#allocation2 + $0x98] sm:$0xff]  ;;  %v3209_v24 = vsel %vm7689_vm11, %v3547_v2, 0.0  ;;  %vm7695_vm13 = vcmp.eq.s32.totalorder %v7684_v41, %v6737_v59 }
 0x8e2   :  { %3128 = vadd.xlane.f32.xlu1 %v3078_v20  ;;  %3126 = vadd.xlane.f32.xlu0 %v3077_v25  ;;  %v3079_v16 = vsel %vm7342_vm7, %v2885_v27, 0.0  ;;  %v3198_v25 = vsel %vm3032_vm4, %v3547_v2, 0.0  ;;  %vm7690_vm4 = vcmp.eq.s32.totalorder %v7684_v41, %v6684_v44  ;;  %vm7698_vm8 = vcmp.eq.s32.totalorder %v7684_v41, %v6760_v21 }
 0x8e3   :  { %3124 = vadd.xlane.f32.xlu2 %v3076_v39  ;;  %v3201_v39 = vsel %vm3035_vm14, %v3547_v2, 0.0  ;;  %v3208_v23 = vsel %vm7690_vm4, %v3547_v2, 0.0  ;;  %vm7693_vm14 = vcmp.eq.s32.totalorder %v7684_v41, %v6713_v13 }
 0x8e7   :  { %v6764_v51 = vpop.permute.xlu1 %2999  ;;  %v6766_v52 = vpop.permute.xlu0 %2996 }
 0x8e8   :  { %vm7341_vm5 = vcmp.eq.s32.totalorder %v7684_v41, %v6766_v52  ;;  %vm3050_vm2 = vcmp.eq.s32.totalorder %v7684_v41, %v6764_v51  ;;  %vm7694_vm15 = vcmp.eq.s32.totalorder %v7684_v41, %v6766_v52 }
 0x8e9   :  { %v3081_v30 = vsel %vm7341_vm5, %v2887_v5, 0.0  ;;  %v3082_v9 = vsel %vm3050_vm2, %v2888_v54, 0.0  ;;  %vm7346_vm5 = vcmp.eq.s32.totalorder %v7684_v41, %v6789_v19 }
 0x8ea   :  { %3134 = vadd.xlane.f32.xlu1 %v3081_v30  ;;  %3132 = vadd.xlane.f32.xlu0 %v3080_v18  ;;  %v3086_v11 = vsel %vm7346_vm5, %v2892_v12, 0.0  ;;  %v3548_v30 = vld [vmem:[#allocation3 + $0x1] ss:$0 sm:$0xff] }
 0x8eb   :  { %3130 = vadd.xlane.f32.xlu2 %v3079_v16  ;;  %v3210_v48 = vsel %vm7688_vm10, %v3548_v30, 0.0  ;;  %v3213_v0 = vsel %vm7691_vm12, %v3548_v30, 0.0  ;;  %v3212_v14 = vsel %vm7692_vm3, %v3548_v30, 0.0  ;;  %v3211_v44 = vsel %vm7693_vm14, %v3548_v30, 0.0 }
 0x8ec   :  { %v3216_v6 = vsel %vm3050_vm2, %v3548_v30, 0.0  ;;  %v3215_v15 = vsel %vm7694_vm15, %v3548_v30, 0.0  ;;  %v3214_v13 = vsel %vm7695_vm13, %v3548_v30, 0.0  ;;  %v3217_v59 = vsel %vm7698_vm8, %v3548_v30, 0.0 }
 0x8ed   :  { %vm7700_vm10 = vcmp.eq.s32.totalorder %v7684_v41, %v6789_v19 }
 0x8ee   :  { %v3220_v21 = vsel %vm7700_vm10, %v3548_v30, 0.0 }
 0x8ef   :  { %v6783_v38 = vpop.permute.xlu0 %3005  ;;  %v6785_v43 = vpop.permute.xlu1 %3008 }
 0x8f0   :  { %vm7344_vm1 = vcmp.eq.s32.totalorder %v7684_v41, %v6783_v38  ;;  %vm7347_vm7 = vcmp.eq.s32.totalorder %v7684_v41, %v6785_v43  ;;  %vm7696_vm2 = vcmp.eq.s32.totalorder %v7684_v41, %v6785_v43  ;;  %vm7697_vm0 = vcmp.eq.s32.totalorder %v7684_v41, %v6783_v38 }
 0x8f1   :  { %v3084_v28 = vsel %vm7344_vm1, %v2890_v7, 0.0  ;;  %v3085_v55 = vsel %vm7347_vm7, %v2891_v36, 0.0  ;;  %vm3057_vm1 = vcmp.eq.s32.totalorder %v7684_v41, %v6819_v31  ;;  %v3219_v51 = vsel %vm7696_vm2, %v3548_v30, 0.0 }
 0x8f2   :  { %3140 = vadd.xlane.f32.xlu1 %v3084_v28  ;;  %3138 = vadd.xlane.f32.xlu0 %v3083_v17  ;;  %v3089_v35 = vsel %vm3057_vm1, %v2895_v40, 0.0  ;;  %v3218_v52 = vsel %vm7697_vm0, %v3548_v30, 0.0  ;;  %v3223_v19 = vsel %vm3057_vm1, %v3548_v30, 0.0 }
 0x8f3   :  { %3136 = vadd.xlane.f32.xlu2 %v3082_v9 }
 0x8f7   :  { %v6804_v49 = vpop.permute.xlu0 %3014  ;;  %v6814_v10 = vpop.permute.xlu1 %3017 }
 0x8f8   :  { %vm7345_vm6 = vcmp.eq.s32.totalorder %v7684_v41, %v6804_v49  ;;  %vm7699_vm9 = vcmp.eq.s32.totalorder %v7684_v41, %v6804_v49 }
 0x8f9   :  { %v3087_v58 = vsel %vm7345_vm6, %v2893_v63, 0.0  ;;  %vm3056_vm6 = vcmp.eq.s32.totalorder %v7684_v41, %v6814_v10  ;;  %v3221_v38 = vsel %vm7699_vm9, %v3548_v30, 0.0 }
 0x8fa   :  { %3146 = vadd.xlane.f32.xlu1 %v3087_v58  ;;  %3144 = vadd.xlane.f32.xlu0 %v3086_v11  ;;  %v3088_v22 = vsel %vm3056_vm6, %v2894_v1, 0.0  ;;  %v3222_v43 = vsel %vm3056_vm6, %v3548_v30, 0.0 }
 0x8fb   :  { %3142 = vadd.xlane.f32.xlu2 %v3085_v55 }
 0x8ff   :  { %v6825_v56 = vpop.permute.xlu0 %3023  ;;  %v6838_v60 = vpop.permute.xlu1 %3026 }
 0x900   :  { %vm3058_vm5 = vcmp.eq.s32.totalorder %v7684_v41, %v6825_v56  ;;  %vm3059_vm7 = vcmp.eq.s32.totalorder %v7684_v41, %v6838_v60 }
 0x901   :  { %v3090_v29 = vsel %vm3058_vm5, %v2896_v8, 0.0  ;;  %v3091_v20 = vsel %vm3059_vm7, %v2897_v26, 0.0  ;;  %v3225_v10 = vsel %vm3059_vm7, %v3548_v30, 0.0  ;;  %v3224_v49 = vsel %vm3058_vm5, %v3548_v30, 0.0 }
 0x902   :  { %3152 = vadd.xlane.f32.xlu1 %v3090_v29  ;;  %3150 = vadd.xlane.f32.xlu0 %v3089_v35  ;;  %vm7701_vm5 = vcmask 7168  }
 0x903   :  { %3148 = vadd.xlane.f32.xlu2 %v3088_v22  ;;  %vm7702_vm1 = vmmov %vm7701_vm5 }
 0x904   :  { %vm7703_vm7 = vmmov %vm7702_vm1 }
 0x905   :  { %vm7704_vm6 = vmmov %vm7702_vm1 }
 0x906   :  { %vm7705_vm11 = vmmov %vm7702_vm1 }
 0x907   :  { %vm7706_vm4 = vmmov %vm7702_vm1 }
 0x908   :  { %vm7707_vm12 = vmmov %vm7702_vm1 }
 0x909   :  { %vm7708_vm3 = vmmov %vm7702_vm1 }
 0x90a   :  { %3228 = vadd.xlane.f32.xlu1 %v3195_v33  ;;  %3226 = vadd.xlane.f32.xlu0 %v3194_v3  ;;  %vm7709_vm14 = vmmov %vm7702_vm1 }
 0x90b   :  { %3154 = vadd.xlane.f32.xlu2 %v3091_v20  ;;  %vm7710_vm15 = vmmov %vm7702_vm1 }
 0x90c   :  { %vm7711_vm13 = vmmov %vm7702_vm1 }
 0x90d   :  { %vm7712_vm2 = vmmov %vm7702_vm1 }
 0x90e   :  { %vm7713_vm0 = vmmov %vm7702_vm1 }
 0x90f   :  { %vm7714_vm8 = vmmov %vm7713_vm0 }
 0x910   :  { %vm7715_vm9 = vmmov %vm7713_vm0 }
 0x911   :  { %vm7716_vm10 = vmmov %vm7713_vm0 }
 0x912   :  { %3234 = vadd.xlane.f32.xlu1 %v3198_v25  ;;  %3232 = vadd.xlane.f32.xlu0 %v3197_v34 }
 0x913   :  { %3230 = vadd.xlane.f32.xlu2 %v3196_v50 }
 0x91a   :  { %3240 = vadd.xlane.f32.xlu1 %v3201_v39  ;;  %3238 = vadd.xlane.f32.xlu0 %v3200_v37 }
 0x91b   :  { %3236 = vadd.xlane.f32.xlu2 %v3199_v62 }
 0x922   :  { %3246 = vadd.xlane.f32.xlu1 %v3204_v45  ;;  %3244 = vadd.xlane.f32.xlu0 %v3203_v61 }
 0x923   :  { %3242 = vadd.xlane.f32.xlu2 %v3202_v42 }
 0x925   :  { %v6878_v5 = vpop.xlane.xlu2 %3092 }
 0x926   :  { %v3156_v3 = vsub.f32 0.0, %v6878_v5 }
 0x92a   :  { %3252 = vadd.xlane.f32.xlu1 %v3207_v47  ;;  %3250 = vadd.xlane.f32.xlu0 %v3206_v32  ;;  %v6889_v57 = vpop.xlane.xlu1 %3096 }
 0x92b   :  { %3248 = vadd.xlane.f32.xlu2 %v3205_v4  ;;  %v3158_v5 = vsub.f32 0.0, %v6889_v57 }
 0x92d   :  { %v6891_v53 = vpop.xlane.xlu0 %3094  ;;  %v6893_v27 = vpop.xlane.xlu2 %3098 }
 0x92e   :  { %v3157_v20 = vsub.f32 0.0, %v6891_v53  ;;  %v3159_v61 = vsub.f32 0.0, %v6893_v27 }
 0x932   :  { %3258 = vadd.xlane.f32.xlu1 %v3210_v48  ;;  %3256 = vadd.xlane.f32.xlu0 %v3209_v24 }
 0x933   :  { %3254 = vadd.xlane.f32.xlu2 %v3208_v23 }
 0x935   :  { %v6904_v18 = vpop.xlane.xlu1 %3104  ;;  %v6906_v16 = vpop.xlane.xlu0 %3102 }
 0x936   :  { %v6908_v7 = vpop.xlane.xlu2 %3100  ;;  %v3162_v57 = vsub.f32 0.0, %v6904_v18 }
 0x937   :  { %v3160_v42 = vsub.f32 0.0, %v6908_v7  ;;  %v3161_v7 = vsub.f32 0.0, %v6906_v16 }
 0x93a   :  { %3264 = vadd.xlane.f32.xlu1 %v3213_v0  ;;  %3262 = vadd.xlane.f32.xlu0 %v3212_v14 }
 0x93b   :  { %3260 = vadd.xlane.f32.xlu2 %v3211_v44 }
 0x93d   :  { %v6919_v46 = vpop.xlane.xlu1 %3110  ;;  %v6921_v54 = vpop.xlane.xlu0 %3108 }
 0x93e   :  { %v6923_v28 = vpop.xlane.xlu2 %3106  ;;  %v3165_v18 = vsub.f32 0.0, %v6919_v46 }
 0x93f   :  { %v3163_v27 = vsub.f32 0.0, %v6923_v28  ;;  %v3164_v28 = vsub.f32 0.0, %v6921_v54 }
 0x942   :  { %3270 = vadd.xlane.f32.xlu1 %v3216_v6  ;;  %3268 = vadd.xlane.f32.xlu0 %v3215_v15 }
 0x943   :  { %3266 = vadd.xlane.f32.xlu2 %v3214_v13 }
 0x945   :  { %v6934_v17 = vpop.xlane.xlu1 %3116  ;;  %v6936_v9 = vpop.xlane.xlu0 %3114 }
 0x946   :  { %v6938_v63 = vpop.xlane.xlu2 %3112  ;;  %v3168_v46 = vsub.f32 0.0, %v6934_v17 }
 0x947   :  { %v3166_v16 = vsub.f32 0.0, %v6938_v63  ;;  %v3167_v63 = vsub.f32 0.0, %v6936_v9 }
 0x94a   :  { %3276 = vadd.xlane.f32.xlu1 %v3219_v51  ;;  %3274 = vadd.xlane.f32.xlu0 %v3218_v52 }
 0x94b   :  { %3272 = vadd.xlane.f32.xlu2 %v3217_v59 }
 0x94d   :  { %v6949_v12 = vpop.xlane.xlu1 %3122  ;;  %v6951_v36 = vpop.xlane.xlu0 %3120 }
 0x94e   :  { %v6953_v58 = vpop.xlane.xlu2 %3118  ;;  %v3171_v17 = vsub.f32 0.0, %v6949_v12 }
 0x94f   :  { %v3169_v54 = vsub.f32 0.0, %v6953_v58  ;;  %v3170_v58 = vsub.f32 0.0, %v6951_v36 }
 0x952   :  { %3282 = vadd.xlane.f32.xlu1 %v3222_v43  ;;  %3280 = vadd.xlane.f32.xlu0 %v3221_v38 }
 0x953   :  { %3278 = vadd.xlane.f32.xlu2 %v3220_v21 }
 0x955   :  { %v6964_v11 = vpop.xlane.xlu1 %3128  ;;  %v6966_v55 = vpop.xlane.xlu0 %3126 }
 0x956   :  { %v6968_v8 = vpop.xlane.xlu2 %3124  ;;  %v3174_v12 = vsub.f32 0.0, %v6964_v11 }
 0x957   :  { %v3172_v9 = vsub.f32 0.0, %v6968_v8  ;;  %v3173_v8 = vsub.f32 0.0, %v6966_v55 }
 0x95a   :  { %3288 = vadd.xlane.f32.xlu1 %v3225_v10  ;;  %3286 = vadd.xlane.f32.xlu0 %v3224_v49 }
 0x95b   :  { %3284 = vadd.xlane.f32.xlu2 %v3223_v19 }
 0x95d   :  { %v6979_v40 = vpop.xlane.xlu1 %3134  ;;  %v6981_v1 = vpop.xlane.xlu0 %3132 }
 0x95e   :  { %v6983_v29 = vpop.xlane.xlu2 %3130  ;;  %v3177_v11 = vsub.f32 0.0, %v6979_v40 }
 0x95f   :  { %v3175_v36 = vsub.f32 0.0, %v6983_v29  ;;  %v3176_v29 = vsub.f32 0.0, %v6981_v1 }
 0x965   :  { %v6985_v35 = vpop.xlane.xlu1 %3140  ;;  %v6987_v22 = vpop.xlane.xlu0 %3138 }
 0x966   :  { %v6989_v60 = vpop.xlane.xlu2 %3136  ;;  %v3180_v40 = vsub.f32 0.0, %v6985_v35 }
 0x967   :  { %v3178_v55 = vsub.f32 0.0, %v6989_v60  ;;  %v3179_v60 = vsub.f32 0.0, %v6987_v22 }
 0x96d   :  { %v6991_v56 = vpop.xlane.xlu1 %3146  ;;  %v6993_v2 = vpop.xlane.xlu0 %3144 }
 0x96e   :  { %v6995_v26 = vpop.xlane.xlu2 %3142  ;;  %v3183_v35 = vsub.f32 0.0, %v6991_v56 }
 0x96f   :  { %v3181_v1 = vsub.f32 0.0, %v6995_v26  ;;  %v3182_v26 = vsub.f32 0.0, %v6993_v2 }
 0x975   :  { %v6997_v41 = vpop.xlane.xlu1 %3152  ;;  %v6999_v31 = vpop.xlane.xlu0 %3150 }
 0x976   :  { %v7001_v33 = vpop.xlane.xlu2 %3148  ;;  %v3186_v56 = vsub.f32 0.0, %v6997_v41 }
 0x977   :  { %v3184_v22 = vsub.f32 0.0, %v7001_v33  ;;  %v3185_v33 = vsub.f32 0.0, %v6999_v31 }
 0x97d   :  { %v3229_v25 = vpop.xlane.xlu1 %3228  ;;  %v3227_v34 = vpop.xlane.xlu0 %3226 }
 0x97e   :  { %v3291_v50 = vsub.f32 %v3157_v20, %v3229_v25  ;;  %v3290_v39 = vsub.f32 %v3156_v3, %v3227_v34  ;;  %v7005_v37 = vpop.xlane.xlu2 %3154 }
 0x97f   :  { %v3187_v2 = vsub.f32 0.0, %v7005_v37 }
 0x980   :  { %v3323_v62 = vmax.f32 %v3291_v50, 0.0  ;;  %v3322_v45 = vmax.f32 %v3290_v39, 0.0 }
 0x982   :  { %3355 = vst.msk [vmem:[%s7168_s3 + $0x8] sm:$0xff] %vm7701_vm5, %v3323_v62  ;;  %vm7717_vm5 = vmmov %vm7713_vm0 }
 0x983   :  { %3354 = vst.msk [vmem:[%s7168_s3] sm:$0xff] %vm7702_vm1, %v3322_v45  ;;  %vm7718_vm1 = vmmov %vm7713_vm0 }
 0x985   :  { %v3235_v47 = vpop.xlane.xlu1 %3234  ;;  %v3233_v32 = vpop.xlane.xlu0 %3232 }
 0x986   :  { %v3294_v4 = vsub.f32 %v3160_v42, %v3235_v47  ;;  %v3293_v53 = vsub.f32 %v3159_v61, %v3233_v32  ;;  %v3231_v30 = vpop.xlane.xlu2 %3230 }
 0x987   :  { %v3292_v48 = vsub.f32 %v3158_v5, %v3231_v30 }
 0x988   :  { %v3326_v24 = vmax.f32 %v3294_v4, 0.0  ;;  %v3325_v23 = vmax.f32 %v3293_v53, 0.0 }
 0x989   :  { %v3324_v0 = vmax.f32 %v3292_v48, 0.0 }
 0x98a   :  { %3358 = vst.msk [vmem:[%s7168_s3 + $0x20] sm:$0xff] %vm7703_vm7, %v3326_v24  ;;  %vm7719_vm7 = vmmov %vm7713_vm0 }
 0x98b   :  { %3357 = vst.msk [vmem:[%s7168_s3 + $0x18] sm:$0xff] %vm7704_vm6, %v3325_v23  ;;  %vm7720_vm6 = vmmov %vm7713_vm0 }
 0x98c   :  { %3356 = vst.msk [vmem:[%s7168_s3 + $0x10] sm:$0xff] %vm7705_vm11, %v3324_v0  ;;  %vm7721_vm11 = vmmov %vm7713_vm0 }
 0x98d   :  { %v3241_v14 = vpop.xlane.xlu1 %3240  ;;  %v3239_v44 = vpop.xlane.xlu0 %3238 }
 0x98e   :  { %v3297_v6 = vsub.f32 %v3163_v27, %v3241_v14  ;;  %v3296_v15 = vsub.f32 %v3162_v57, %v3239_v44  ;;  %v3237_v13 = vpop.xlane.xlu2 %3236 }
 0x98f   :  { %v3295_v51 = vsub.f32 %v3161_v7, %v3237_v13 }
 0x990   :  { %v3329_v52 = vmax.f32 %v3297_v6, 0.0  ;;  %v3328_v59 = vmax.f32 %v3296_v15, 0.0 }
 0x991   :  { %v3327_v43 = vmax.f32 %v3295_v51, 0.0 }
 0x992   :  { %3361 = vst.msk [vmem:[%s7168_s3 + $0x38] sm:$0xff] %vm7706_vm4, %v3329_v52  ;;  %vm7722_vm4 = vmmov %vm7713_vm0 }
 0x993   :  { %3360 = vst.msk [vmem:[%s7168_s3 + $0x30] sm:$0xff] %vm7707_vm12, %v3328_v59  ;;  %vm7723_vm12 = vmmov %vm7713_vm0 }
 0x994   :  { %3359 = vst.msk [vmem:[%s7168_s3 + $0x28] sm:$0xff] %vm7708_vm3, %v3327_v43  ;;  %vm7724_vm3 = vmmov %vm7713_vm0 }
 0x995   :  { %v3247_v38 = vpop.xlane.xlu1 %3246  ;;  %v3245_v21 = vpop.xlane.xlu0 %3244 }
 0x996   :  { %v3300_v10 = vsub.f32 %v3166_v16, %v3247_v38  ;;  %v3299_v49 = vsub.f32 %v3165_v18, %v3245_v21  ;;  %v3243_v19 = vpop.xlane.xlu2 %3242 }
 0x997   :  { %v3298_v3 = vsub.f32 %v3164_v28, %v3243_v19 }
 0x998   :  { %v3332_v20 = vmax.f32 %v3300_v10, 0.0  ;;  %v3331_v25 = vmax.f32 %v3299_v49, 0.0 }
 0x999   :  { %v3330_v34 = vmax.f32 %v3298_v3, 0.0 }
 0x99a   :  { %3364 = vst.msk [vmem:[%s7168_s3 + $0x50] sm:$0xff] %vm7709_vm14, %v3332_v20  ;;  %vm7725_vm14 = vmmov %vm7713_vm0 }
 0x99b   :  { %3363 = vst.msk [vmem:[%s7168_s3 + $0x48] sm:$0xff] %vm7710_vm15, %v3331_v25  ;;  %vm7726_vm15 = vmmov %vm7713_vm0 }
 0x99c   :  { %3362 = vst.msk [vmem:[%s7168_s3 + $0x40] sm:$0xff] %vm7711_vm13, %v3330_v34  ;;  %vm7727_vm13 = vmmov %vm7713_vm0 }
 0x99d   :  { %v3253_v50 = vpop.xlane.xlu1 %3252  ;;  %v3251_v39 = vpop.xlane.xlu0 %3250 }
 0x99e   :  { %v3303_v62 = vsub.f32 %v3169_v54, %v3253_v50  ;;  %v3302_v45 = vsub.f32 %v3168_v46, %v3251_v39  ;;  %v3249_v61 = vpop.xlane.xlu2 %3248 }
 0x99f   :  { %v3301_v42 = vsub.f32 %v3167_v63, %v3249_v61 }
 0x9a0   :  { %v3335_v5 = vmax.f32 %v3303_v62, 0.0  ;;  %v3334_v47 = vmax.f32 %v3302_v45, 0.0 }
 0x9a1   :  { %v3333_v32 = vmax.f32 %v3301_v42, 0.0 }
 0x9a2   :  { %3367 = vst.msk [vmem:[%s7168_s3 + $0x68] sm:$0xff] %vm7712_vm2, %v3335_v5  ;;  %vm7728_vm2 = vmmov %vm7713_vm0 }
 0x9a3   :  { %3366 = vst.msk [vmem:[%s7168_s3 + $0x60] sm:$0xff] %vm7713_vm0, %v3334_v47 }
 0x9a4   :  { %3365 = vst.msk [vmem:[%s7168_s3 + $0x58] sm:$0xff] %vm7714_vm8, %v3333_v32  ;;  %vm7729_vm8 = vmmov %vm7713_vm0 }
 0x9a5   :  { %v3259_v4 = vpop.xlane.xlu1 %3258  ;;  %v3257_v53 = vpop.xlane.xlu0 %3256 }
 0x9a6   :  { %v3306_v30 = vsub.f32 %v3172_v9, %v3259_v4  ;;  %v3305_v48 = vsub.f32 %v3171_v17, %v3257_v53  ;;  %v3255_v24 = vpop.xlane.xlu2 %3254 }
 0x9a7   :  { %v3304_v23 = vsub.f32 %v3170_v58, %v3255_v24 }
 0x9a8   :  { %v3338_v0 = vmax.f32 %v3306_v30, 0.0  ;;  %v3337_v57 = vmax.f32 %v3305_v48, 0.0 }
 0x9a9   :  { %v3336_v27 = vmax.f32 %v3304_v23, 0.0 }
 0x9aa   :  { %3370 = vst.msk [vmem:[%s7168_s3 + $0x80] sm:$0xff] %vm7715_vm9, %v3338_v0  ;;  %vm7730_vm9 = vmmov %vm7713_vm0 }
 0x9ab   :  { %3369 = vst.msk [vmem:[%s7168_s3 + $0x78] sm:$0xff] %vm7716_vm10, %v3337_v57  ;;  %vm7731_vm10 = vmmov %vm7713_vm0 }
 0x9ac   :  { %3368 = vst.msk [vmem:[%s7168_s3 + $0x70] sm:$0xff] %vm7717_vm5, %v3336_v27 }
 0x9ad   :  { %v3265_v7 = vpop.xlane.xlu1 %3264  ;;  %v3263_v14 = vpop.xlane.xlu0 %3262 }
 0x9ae   :  { %v3309_v44 = vsub.f32 %v3175_v36, %v3265_v7  ;;  %v3308_v6 = vsub.f32 %v3174_v12, %v3263_v14  ;;  %v3261_v15 = vpop.xlane.xlu2 %3260 }
 0x9af   :  { %v3307_v13 = vsub.f32 %v3173_v8, %v3261_v15 }
 0x9b0   :  { %v3341_v51 = vmax.f32 %v3309_v44, 0.0  ;;  %v3340_v52 = vmax.f32 %v3308_v6, 0.0 }
 0x9b1   :  { %v3339_v59 = vmax.f32 %v3307_v13, 0.0 }
 0x9b2   :  { %3373 = vst.msk [vmem:[%s7168_s3 + $0x98] sm:$0xff] %vm7718_vm1, %v3341_v51 }
 0x9b3   :  { %3372 = vst.msk [vmem:[%s7168_s3 + $0x90] sm:$0xff] %vm7719_vm7, %v3340_v52 }
 0x9b4   :  { %3371 = vst.msk [vmem:[%s7168_s3 + $0x88] sm:$0xff] %vm7720_vm6, %v3339_v59 }
 0x9b5   :  { %v3271_v43 = vpop.xlane.xlu1 %3270  ;;  %v3269_v18 = vpop.xlane.xlu0 %3268 }
 0x9b6   :  { %v3312_v16 = vsub.f32 %v3178_v55, %v3271_v43  ;;  %v3311_v28 = vsub.f32 %v3177_v11, %v3269_v18  ;;  %v3267_v38 = vpop.xlane.xlu2 %3266 }
 0x9b7   :  { %v3310_v21 = vsub.f32 %v3176_v29, %v3267_v38 }
 0x9b8   :  { %v3344_v10 = vmax.f32 %v3312_v16, 0.0  ;;  %v3343_v49 = vmax.f32 %v3311_v28, 0.0 }
 0x9b9   :  { %v3342_v19 = vmax.f32 %v3310_v21, 0.0 }
 0x9ba   :  { %3376 = vst.msk [vmem:[%s7168_s3 + $0xb0] sm:$0xff] %vm7721_vm11, %v3344_v10 }
 0x9bb   :  { %3375 = vst.msk [vmem:[%s7168_s3 + $0xa8] sm:$0xff] %vm7722_vm4, %v3343_v49 }
 0x9bc   :  { %3374 = vst.msk [vmem:[%s7168_s3 + $0xa0] sm:$0xff] %vm7723_vm12, %v3342_v19 }
 0x9bd   :  { %v3277_v3 = vpop.xlane.xlu1 %3276  ;;  %v3275_v20 = vpop.xlane.xlu0 %3274 }
 0x9be   :  { %v3315_v25 = vsub.f32 %v3181_v1, %v3277_v3  ;;  %v3314_v34 = vsub.f32 %v3180_v40, %v3275_v20  ;;  %v3273_v46 = vpop.xlane.xlu2 %3272 }
 0x9bf   :  { %v3313_v54 = vsub.f32 %v3179_v60, %v3273_v46 }
 0x9c0   :  { %v3347_v63 = vmax.f32 %v3315_v25, 0.0  ;;  %v3346_v50 = vmax.f32 %v3314_v34, 0.0 }
 0x9c1   :  { %v3345_v39 = vmax.f32 %v3313_v54, 0.0 }
 0x9c2   :  { %3379 = vst.msk [vmem:[%s7168_s3 + $0xc8] sm:$0xff] %vm7724_vm3, %v3347_v63 }
 0x9c3   :  { %3378 = vst.msk [vmem:[%s7168_s3 + $0xc0] sm:$0xff] %vm7725_vm14, %v3346_v50 }
 0x9c4   :  { %3377 = vst.msk [vmem:[%s7168_s3 + $0xb8] sm:$0xff] %vm7726_vm15, %v3345_v39 }
 0x9c5   :  { %v3283_v62 = vpop.xlane.xlu1 %3282  ;;  %v3281_v45 = vpop.xlane.xlu0 %3280 }
 0x9c6   :  { %v3318_v61 = vsub.f32 %v3184_v22, %v3283_v62  ;;  %v3317_v42 = vsub.f32 %v3183_v35, %v3281_v45  ;;  %v3279_v5 = vpop.xlane.xlu2 %3278 }
 0x9c7   :  { %v3316_v47 = vsub.f32 %v3182_v26, %v3279_v5 }
 0x9c8   :  { %v3350_v32 = vmax.f32 %v3318_v61, 0.0  ;;  %v3349_v17 = vmax.f32 %v3317_v42, 0.0 }
 0x9c9   :  { %v3348_v9 = vmax.f32 %v3316_v47, 0.0 }
 0x9ca   :  { %3382 = vst.msk [vmem:[%s7168_s3 + $0xe0] sm:$0xff] %vm7727_vm13, %v3350_v32 }
 0x9cb   :  { %3381 = vst.msk [vmem:[%s7168_s3 + $0xd8] sm:$0xff] %vm7728_vm2, %v3349_v17 }
 0x9cc   :  { %3380 = vst.msk [vmem:[%s7168_s3 + $0xd0] sm:$0xff] %vm7713_vm0, %v3348_v9 }
 0x9cd   :  { %v3289_v58 = vpop.xlane.xlu1 %3288  ;;  %v3287_v4 = vpop.xlane.xlu0 %3286 }
 0x9ce   :  { %v3321_v53 = vsub.f32 %v3187_v2, %v3289_v58  ;;  %v3320_v30 = vsub.f32 %v3186_v56, %v3287_v4  ;;  %v3285_v48 = vpop.xlane.xlu2 %3284 }
 0x9cf   :  { %v3319_v24 = vsub.f32 %v3185_v33, %v3285_v48 }
 0x9d0   :  { %v3353_v23 = vmax.f32 %v3321_v53, 0.0  ;;  %v3352_v0 = vmax.f32 %v3320_v30, 0.0 }
 0x9d1   :  { %v3351_v57 = vmax.f32 %v3319_v24, 0.0 }
 0x9d2   :  { %3385 = vst.msk [vmem:[%s7168_s3 + $0xf8] sm:$0xff] %vm7729_vm8, %v3353_v23 }
 0x9d3   :  { %3384 = vst.msk [vmem:[%s7168_s3 + $0xf0] sm:$0xff] %vm7730_vm9, %v3352_v0 }
 0x9d4   :  { %3383 = vst.msk [vmem:[%s7168_s3 + $0xe8] sm:$0xff] %vm7731_vm10, %v3351_v57 }
 0x9d5   :  { %3394 = vsyncpa [#allocation7], 1 }
 0x9d6   :  { %3395 = vsyncpa [#allocation9], 1 }

</bundles_post_ra>
